<compile_context>
chip_gen: v7x
topology: tpu7x:2x2x1
jax: 0.10.0
libtpu: 0.0.40
codegen_flags: <defaults>
</compile_context>

<pallas_src>
import functools

import jax
import jax.numpy as jnp
from jax.experimental import pallas as pl
from jax.experimental.pallas import tpu as pltpu

_LANE = 128
_MIB = 1024 * 1024


def _round_up(n, m):
    return ((n + m - 1) // m) * m


def _supports_buffered_blockspec():
    """Construction-time capability check for BlockSpec(pipeline_mode=...)."""
    if not hasattr(pl, "Buffered"):
        return False
    try:
        pl.BlockSpec((8, 128), lambda i: (0, 0), pipeline_mode=pl.Buffered(1))
        return True
    except TypeError:
        return False


def _vmem_capacity_bytes():
    """Physical VMEM of the local TPU; conservative 64 MiB if the query fails."""
    try:
        info = pltpu.get_tpu_info()
        return int(getattr(info, "vmem_capacity_bytes", 64 * _MIB))
    except Exception:  # hardware-info query only -- never hides kernel errors
        return 64 * _MIB


def _pick_batch_tile(B, K, x_itemsize, vmem_bytes, single_buffer_resident):
    """Largest batch tile whose pipeline fits VMEM, with >=2 tiles when B > 16."""
    Kp = _round_up(K, _LANE)                     # lane padding of the x block
    # Resident operands: w1 bf16 ((K->mult of 16) x (64->128)) dominates.
    w1_vmem = _round_up(K, 16) * _LANE * 2
    resident = (1 if single_buffer_resident else 2) * w1_vmem + 2 * _MIB
    budget = int(vmem_bytes * 0.85) - resident
    # Keep >=2 batch tiles so the "parallel" axis can shard across both v7x
    # TensorCores; a single extra grid step is negligible on v5e/v6e.
    cap = max(16, _round_up(-(-B // 2), 16))
    tb = 16
    for cand in (512, 256, 128, 64, 32, 16):
        if cand > cap:
            continue
        # x double-buffer (input dtype) + in-kernel bf16 cast temporary.
        if 2 * cand * Kp * x_itemsize + cand * Kp * 2 <= budget:
            tb = cand
            break
    need = 2 * tb * Kp * x_itemsize + tb * Kp * 2 + resident
    vmem_limit = min(vmem_bytes, max(need + 6 * _MIB, 24 * _MIB))
    return tb, int(vmem_limit)


def _mlp_kernel(x_ref, w1_ref, b1_ref, w2_ref, b2_ref, w3_ref, b3_ref, o_ref):
    # In-kernel cast keeps HBM traffic at the input dtype while the layer-1
    # MXU pass stays strictly bf16 x bf16 with f32 accumulation.
    x = x_ref[...].astype(jnp.bfloat16)
    h1 = jnp.dot(x, w1_ref[...], preferred_element_type=jnp.float32)
    h1 = jnp.maximum(h1 + b1_ref[...], 0.0)              # layer_1 bias + ReLU
    # TODO(synk): nn.Dropout is stochastic only in training; eval forward is
    # identity. Training would need pltpu.prng_random_bits masking here.
    h2 = jnp.dot(h1, w2_ref[...], preferred_element_type=jnp.float32)
    h2 = jnp.maximum(h2 + b2_ref[...], 0.0)               # layer_2 bias + ReLU
    out = jnp.dot(h2, w3_ref[...], preferred_element_type=jnp.float32)
    o_ref[...] = (out + b3_ref[...]).astype(o_ref.dtype)  # layer_3 logits


@functools.partial(jax.jit, static_argnames=("tb", "vmem_limit", "use_buffered"))
def _forward(x, params, *, tb, vmem_limit, use_buffered):
    B, K = x.shape
    w1, b1 = params["w1"], params["b1"]   # (K, 64), (1, 64)
    w2, b2 = params["w2"], params["b2"]   # (64, 32), (1, 32)
    w3, b3 = params["w3"], params["b3"]   # (32, L), (1, L)
    L = w3.shape[1]

    # The only large weight: keep it resident in VMEM as bf16 (~2.2 MiB HBM
    # read once per call); all other params are tiny and stay f32.
    w1_16 = w1.astype(jnp.bfloat16)

    def resident(shape):
        if use_buffered:
            return pl.BlockSpec(shape, lambda i: (0, 0),
                                pipeline_mode=pl.Buffered(1))
        return pl.BlockSpec(shape, lambda i: (0, 0))

    # Ragged last batch tile: Pallas masks the out-of-bounds output rows; the
    # unspecified extra input rows are harmless because there is no cross-row
    # reduction anywhere in this kernel (each logit row uses only its x row).
    grid = (pl.cdiv(B, tb),)

    cost = pl.CostEstimate(
        flops=2 * B * (K * 64 + 64 * 32 + 32 * L),
        transcendentals=0,
        bytes_accessed=(B * K * jnp.dtype(x.dtype).itemsize   # x streamed as-is
                        + K * 64 * 2                          # w1 resident bf16
                        + B * L * 4                           # f32 logits
                        + (64 + 64 * 32 + 32 + 32 * L + L) * 4),
    )

    return pl.pallas_call(
        _mlp_kernel,
        out_shape=jax.ShapeDtypeStruct((B, L), jnp.float32),
        grid_spec=pltpu.PrefetchScalarGridSpec(
            num_scalar_prefetch=0,
            grid=grid,
            in_specs=[
                pl.BlockSpec((tb, K), lambda i: (i, 0)),   # x (streamed, depth-2)
                resident((K, 64)),                         # w1 (resident, bf16)
                resident((1, 64)),                         # b1
                resident((64, 32)),                        # w2
                resident((1, 32)),                         # b2
                resident((32, L)),                         # w3
                resident((1, L)),                          # b3
            ],
            out_specs=pl.BlockSpec((tb, L), lambda i: (i, 0)),
        ),
        compiler_params=pltpu.CompilerParams(
            dimension_semantics=("parallel",),     # batch tiles -> v7x megacore
            vmem_limit_bytes=vmem_limit,           # per-chip budget (see _pick_batch_tile)
        ),
        cost_estimate=cost,
    )(x, w1_16, b1, w2, b2, w3, b3)


def pathway_classification_forward(x, params, *, tb=None):
    """Eval-mode forward of PathwayClassification.

    x: (B, num_features), float32 or bfloat16 (supplying bf16 halves the HBM
    traffic of the dominant x stream).
    """
    B, K = x.shape
    use_buffered = _supports_buffered_blockspec()
    tb_auto, vmem_limit = _pick_batch_tile(
        B, K, jnp.dtype(x.dtype).itemsize, _vmem_capacity_bytes(), use_buffered)
    tb_eff = tb_auto if tb is None else max(16, _round_up(min(tb, tb_auto), 16))
    return _forward(x, params, tb=tb_eff, vmem_limit=vmem_limit,
                    use_buffered=use_buffered)


def init_params(key, num_features, num_labels):
    """Deterministic PyTorch-style (uniform +-1/sqrt(fan_in)) init."""
    def linear(k, fan_in, fan_out):
        kw, kb = jax.random.split(k)
        bound = 1.0 / jnp.sqrt(fan_in)
        w = jax.random.uniform(kw, (fan_in, fan_out), jnp.float32, -bound, bound)
        b = jax.random.uniform(kb, (1, fan_out), jnp.float32, -bound, bound)
        return w, b

    k1, k2, k3 = jax.random.split(key, 3)
    w1, b1 = linear(k1, num_features, 64)
    w2, b2 = linear(k2, 64, 32)
    w3, b3 = linear(k3, 32, num_labels)
    return dict(w1=w1, b1=b1, w2=w2, b2=b2, w3=w3, b3=b3)


def reference_forward(x, p):
    # Mirrors the kernel's numerics: layer_1 operands are bf16 (f32 accum),
    # layers 2/3 in f32.
    hp = jax.lax.Precision.HIGHEST
    x16 = x.astype(jnp.bfloat16).astype(jnp.float32)
    w1 = p["w1"].astype(jnp.bfloat16).astype(jnp.float32)
    h = jnp.maximum(jnp.dot(x16, w1, precision=hp) + p["b1"], 0.0)
    h = jnp.maximum(jnp.dot(h, p["w2"], precision=hp) + p["b2"], 0.0)
    return jnp.dot(h, p["w3"], precision=hp) + p["b3"]


if __name__ == "__main__":
    # Module-default feature/label counts; small, non-tile-aligned batch (24)
    # exercises both the ragged-last-tile path and the >=2-tile megacore split.
    B, NUM_FEATURES, NUM_LABELS = 24, 17052, 4

    key = jax.random.PRNGKey(0)
    kx, kp = jax.random.split(key)
    x = jax.random.normal(kx, (B, NUM_FEATURES), jnp.float32)
    params = init_params(kp, NUM_FEATURES, NUM_LABELS)

    out = pathway_classification_forward(x, params)
    out = jax.block_until_ready(out)

    ref = reference_forward(x, params)
    assert out.shape == (B, NUM_LABELS)
    # bf16 layer_1 operands -> tolerance loosened vs a pure-f32 check.
    assert jnp.allclose(out, ref, atol=1e-2, rtol=1e-2), \
        float(jnp.max(jnp.abs(out - ref)))

    print("KERNEL_OK")
</pallas_src>

<mosaic_0001>
module attributes {stable_mosaic.version = 11 : i64} {
  func.func @_mlp_kernel(%arg0: i32, %arg1: memref<16x17052xf32, #tpu.memory_space<vmem>>, %arg2: memref<17052x64xbf16, #tpu.memory_space<vmem>>, %arg3: memref<1x64xf32, #tpu.memory_space<vmem>>, %arg4: memref<64x32xf32, #tpu.memory_space<vmem>>, %arg5: memref<1x32xf32, #tpu.memory_space<vmem>>, %arg6: memref<32x4xf32, #tpu.memory_space<vmem>>, %arg7: memref<1x4xf32, #tpu.memory_space<vmem>>, %arg8: memref<16x4xf32, #tpu.memory_space<vmem>>) attributes {dimension_semantics = [#tpu.dimension_semantics<parallel>], iteration_bounds = array<i64: 2>, scalar_prefetch = 0 : i64, scratch_operands = 0 : i64, tpu.core_type = #tpu.core_type<tc>, window_params = [{transform_indices = @transform_0, window_bounds = array<i64: 16, 17052>}, {pipeline_mode = #tpu.pipeline_mode<synchronous>, transform_indices = @transform_1, window_bounds = array<i64: 17052, 64>}, {pipeline_mode = #tpu.pipeline_mode<synchronous>, transform_indices = @transform_2, window_bounds = array<i64: 1, 64>}, {pipeline_mode = #tpu.pipeline_mode<synchronous>, transform_indices = @transform_3, window_bounds = array<i64: 64, 32>}, {pipeline_mode = #tpu.pipeline_mode<synchronous>, transform_indices = @transform_4, window_bounds = array<i64: 1, 32>}, {pipeline_mode = #tpu.pipeline_mode<synchronous>, transform_indices = @transform_5, window_bounds = array<i64: 32, 4>}, {pipeline_mode = #tpu.pipeline_mode<synchronous>, transform_indices = @transform_6, window_bounds = array<i64: 1, 4>}, {transform_indices = @transform_7, window_bounds = array<i64: 16, 4>}]} {
    %c0 = arith.constant 0 : index
    %c0_0 = arith.constant 0 : index
    %0 = vector.load %arg1[%c0, %c0_0] : memref<16x17052xf32, #tpu.memory_space<vmem>>, vector<16x17052xf32>
    %1 = arith.truncf %0 : vector<16x17052xf32> to vector<16x17052xbf16>
    %c0_1 = arith.constant 0 : index
    %c0_2 = arith.constant 0 : index
    %2 = vector.load %arg2[%c0_1, %c0_2] : memref<17052x64xbf16, #tpu.memory_space<vmem>>, vector<17052x64xbf16>
    %cst = arith.constant dense<0.000000e+00> : vector<16x64xf32>
    %3 = tpu.matmul %1, %2, %cst {dimension_numbers = #tpu.dot_dimension_numbers<[1], [0], [0], [1], [0, 0, 1, 1], [], []>} : vector<16x17052xbf16>, vector<17052x64xbf16>, vector<16x64xf32> -> vector<16x64xf32>
    %c0_3 = arith.constant 0 : index
    %c0_4 = arith.constant 0 : index
    %4 = vector.load %arg3[%c0_3, %c0_4] : memref<1x64xf32, #tpu.memory_space<vmem>>, vector<1x64xf32>
    %5 = vector.broadcast %4 : vector<1x64xf32> to vector<16x64xf32>
    %6 = arith.addf %3, %5 : vector<16x64xf32>
    %cst_5 = arith.constant 0.000000e+00 : f32
    %7 = vector.broadcast %cst_5 : f32 to vector<16x64xf32>
    %8 = arith.maximumf %6, %7 : vector<16x64xf32>
    %c0_6 = arith.constant 0 : index
    %c0_7 = arith.constant 0 : index
    %9 = vector.load %arg4[%c0_6, %c0_7] : memref<64x32xf32, #tpu.memory_space<vmem>>, vector<64x32xf32>
    %cst_8 = arith.constant dense<0.000000e+00> : vector<16x32xf32>
    %10 = tpu.matmul %8, %9, %cst_8 {dimension_numbers = #tpu.dot_dimension_numbers<[1], [0], [0], [1], [0, 0, 1, 1], [], []>} : vector<16x64xf32>, vector<64x32xf32>, vector<16x32xf32> -> vector<16x32xf32>
    %c0_9 = arith.constant 0 : index
    %c0_10 = arith.constant 0 : index
    %11 = vector.load %arg5[%c0_9, %c0_10] : memref<1x32xf32, #tpu.memory_space<vmem>>, vector<1x32xf32>
    %12 = vector.broadcast %11 : vector<1x32xf32> to vector<16x32xf32>
    %13 = arith.addf %10, %12 : vector<16x32xf32>
    %cst_11 = arith.constant 0.000000e+00 : f32
    %14 = vector.broadcast %cst_11 : f32 to vector<16x32xf32>
    %15 = arith.maximumf %13, %14 : vector<16x32xf32>
    %c0_12 = arith.constant 0 : index
    %c0_13 = arith.constant 0 : index
    %16 = vector.load %arg6[%c0_12, %c0_13] : memref<32x4xf32, #tpu.memory_space<vmem>>, vector<32x4xf32>
    %cst_14 = arith.constant dense<0.000000e+00> : vector<16x4xf32>
    %17 = tpu.matmul %15, %16, %cst_14 {dimension_numbers = #tpu.dot_dimension_numbers<[1], [0], [0], [1], [0, 0, 1, 1], [], []>} : vector<16x32xf32>, vector<32x4xf32>, vector<16x4xf32> -> vector<16x4xf32>
    %c0_15 = arith.constant 0 : index
    %c0_16 = arith.constant 0 : index
    %18 = vector.load %arg7[%c0_15, %c0_16] : memref<1x4xf32, #tpu.memory_space<vmem>>, vector<1x4xf32>
    %19 = vector.broadcast %18 : vector<1x4xf32> to vector<16x4xf32>
    %20 = arith.addf %17, %19 : vector<16x4xf32>
    %c0_17 = arith.constant 0 : index
    %c0_18 = arith.constant 0 : index
    %21 = vector.load %arg8[%c0_17, %c0_18] : memref<16x4xf32, #tpu.memory_space<vmem>>, vector<16x4xf32>
    tpu.vector_store %arg8[%c0_17, %c0_18], %20 {strides = array<i32>} : memref<16x4xf32, #tpu.memory_space<vmem>>, vector<16x4xf32>,
    return
  }
  func.func @transform_0(%arg0: i32) -> (i32, i32) {
    %c0_i32 = arith.constant 0 : i32
    %c0_i32_0 = arith.constant 0 : i32
    return %arg0, %c0_i32 : i32, i32
  }
  func.func @transform_1(%arg0: i32) -> (i32, i32) {
    %c0_i32 = arith.constant 0 : i32
    %c0_i32_0 = arith.constant 0 : i32
    %c0_i32_1 = arith.constant 0 : i32
    return %c0_i32, %c0_i32_0 : i32, i32
  }
  func.func @transform_2(%arg0: i32) -> (i32, i32) {
    %c0_i32 = arith.constant 0 : i32
    %c0_i32_0 = arith.constant 0 : i32
    %c0_i32_1 = arith.constant 0 : i32
    return %c0_i32, %c0_i32_0 : i32, i32
  }
  func.func @transform_3(%arg0: i32) -> (i32, i32) {
    %c0_i32 = arith.constant 0 : i32
    %c0_i32_0 = arith.constant 0 : i32
    %c0_i32_1 = arith.constant 0 : i32
    return %c0_i32, %c0_i32_0 : i32, i32
  }
  func.func @transform_4(%arg0: i32) -> (i32, i32) {
    %c0_i32 = arith.constant 0 : i32
    %c0_i32_0 = arith.constant 0 : i32
    %c0_i32_1 = arith.constant 0 : i32
    return %c0_i32, %c0_i32_0 : i32, i32
  }
  func.func @transform_5(%arg0: i32) -> (i32, i32) {
    %c0_i32 = arith.constant 0 : i32
    %c0_i32_0 = arith.constant 0 : i32
    %c0_i32_1 = arith.constant 0 : i32
    return %c0_i32, %c0_i32_0 : i32, i32
  }
  func.func @transform_6(%arg0: i32) -> (i32, i32) {
    %c0_i32 = arith.constant 0 : i32
    %c0_i32_0 = arith.constant 0 : i32
    %c0_i32_1 = arith.constant 0 : i32
    return %c0_i32, %c0_i32_0 : i32, i32
  }
  func.func @transform_7(%arg0: i32) -> (i32, i32) {
    %c0_i32 = arith.constant 0 : i32
    %c0_i32_0 = arith.constant 0 : i32
    return %arg0, %c0_i32 : i32, i32
  }
}

</mosaic_0001>

<bundles_post_ra>
// kernel: _forward.1
= control target key start
LH: loop header
LB: loop body
LE: loop exit
PB: predicated region body
PF: predicated region fallthrough
CT: control target
= control target key end

     0   :  { %s16324_s24 = smov 0   ;;  %s16326_s25 = smov 0   ;;  %s20083_s0 = inlined_call_operand.vmem [shape: f32[24,17052], index: 0, kind: input, shape index: {}]   ;;  %s20084_s1 = inlined_call_operand.vmem [shape: bf16[17052,64], index: 1, kind: input, shape index: {}]   ;;  %s20085_s2 = inlined_call_operand.vmem [shape: f32[1,64], index: 2, kind: input, shape index: {}]   ;;  %s20086_s3 = inlined_call_operand.vmem [shape: f32[64,32], index: 3, kind: input, shape index: {}]   ;;  %s20087_s4 = inlined_call_operand.vmem [shape: f32[1,32], index: 4, kind: input, shape index: {}]   ;;  %s20088_s5 = inlined_call_operand.vmem [shape: f32[32,4], index: 5, kind: input, shape index: {}]   ;;  %s20089_s6 = inlined_call_operand.vmem [shape: f32[1,4], index: 6, kind: input, shape index: {}]   ;;  %s20090_s7 = inlined_call_operand.vmem [shape: f32[24,4], index: 7, kind: output, shape index: {}]  }
   0x1   :  { %s16328_s26 = smov 0  }
   0x2 LB: > { %s16337_s27 = sadd.s32 4294967295, %s16249_s26   ;;  %s16339_s28 = sadd.s32 1, %s16249_s26   ;;  %s16249_s26 = sphi %s16328_s26, %s20094_s26   ;;  %s16245_s25 = sphi %s16326_s25, %s20093_s25   ;;  %s16241_s24 = sphi %s16324_s24, %s20092_s24  }
   0x3   : > { %s173_s29 = ssub.s32 %s16249_s26, %s16339_s28  ;;  %s176_s30 = sadd.s32 1, %s16245_s25 }
   0x4   : > { %p174_p0 = scmp.eq.s32.totalorder %s173_s29, 0  ;;  %p186_p1 = scmp.ne.s32.totalorder %s16245_s25, %s16241_s24 }
   0x5   : > { %p187_p2 = scmp.eq.s32.totalorder %s16337_s27, 1  ;;  %p12419_p3 = scmp.ge.s32.totalorder %s16249_s26, 1 }
   0x6   : > { %s16347_s8 = scalar_select %p174_p0, %s16245_s25, %s176_s30  }
   0x7   : > { %p16349_p4 = por %p187_p2, %p186_p1  ;;  %p249_p5 = scmp.lt.s32.totalorder %s16249_s26, 3 }
   0x9   : > { %p250_p6 = pnand %p12419_p3, %p249_p5 }
   0xa   : > { %v15129_v0 = vld [vmem:[%s20084_s1 + $0x40] sm:$0xff] (!%p250_p6)   ;;  %v15133_v4 = vld [vmem:[%s20084_s1 + $0x48] sm:$0xff] (!%p250_p6)   ;;  %v15137_v8 = vld [vmem:[%s20084_s1 + $0x50] sm:$0xff] (!%p250_p6)   ;;  %s16396_s21 = sshll.u32 (!%p250_p6), %s16337_s27, 1  ;;  %vm9245_vm0 = vcmask (!%p250_p6), 228352   ;;  %vm9249_vm1 = vcmask (!%p250_p6), 1045504  }
   0xb   : > { %253 = sbr.rel (%p250_p6) target bundleno = 1835 (0x72b), region = 48  ;;  %v15130_v1 = vld [vmem:[%s20084_s1] sm:$0xff] (!%p250_p6)   ;;  %13517 = vmatprep.subr.bf16.mxu0 (!%p250_p6), %v15129_v0  ;;  %v15134_v5 = vld [vmem:[%s20084_s1 + $0x8] sm:$0xff] (!%p250_p6)   ;;  %v15138_v9 = vld [vmem:[%s20084_s1 + $0x10] sm:$0xff] (!%p250_p6)   ;;  %p292_p7 = scmp.lt.s32.totalorder (!%p250_p6), %s16396_s21, 2  ;;  %vm12017_vm2 = vcmask (!%p250_p6), 523264  }
   0xc   : > { %v15131_v2 = vld [vmem:[%s20084_s1 + $0xc0] sm:$0xff] (!%p250_p6)   ;;  %13518 = vmatpush3.bf16.msra.mxu0 (!%p250_p6), %v15130_v1  ;;  %v15135_v6 = vld [vmem:[%s20084_s1 + $0xc8] sm:$0xff] (!%p250_p6)   ;;  %v15139_v10 = vld [vmem:[%s20084_s1 + $0xd0] sm:$0xff] (!%p250_p6)   ;;  %vm12112_vm3 = vcmask (!%p250_p6), 261120   ;;  %s283_s29 = sand.u32 (!%p250_p6), 1, %s16241_s24   ;;  %vm12194_vm4 = vcmask (!%p250_p6), 31744  }
   0xd   : > { %v15132_v3 = vld [vmem:[%s20084_s1 + $0x80] sm:$0xff] (!%p250_p6)   ;;  %13539 = vmatprep.subr.bf16.mxu1 (!%p250_p6), %v15131_v2  ;;  %13519 = vmatprep.subr.bf16.mxu0 (!%p250_p6), %v15133_v4  ;;  %v15136_v7 = vld [vmem:[%s20084_s1 + $0x88] sm:$0xff] (!%p250_p6)   ;;  %v15140_v11 = vld [vmem:[%s20084_s1 + $0x90] sm:$0xff] (!%p250_p6)   ;;  %s12420_s30 = sshll.u32 (!%p250_p6), %s283_s29, 4 }
   0xe   : > { %13540 = vmatpush3.bf16.msra.mxu1 (!%p250_p6), %v15132_v3  ;;  %v15141_v12 = vld [vmem:[%s20084_s1 + $0x58] sm:$0xff] (!%p250_p6)   ;;  %v15145_v16 = vld [vmem:[%s20084_s1 + $0x60] sm:$0xff] (!%p250_p6)   ;;  %v15149_v20 = vld [vmem:[%s20084_s1 + $0x68] sm:$0xff] (!%p250_p6)  }
   0xf   : > { %13541 = vmatprep.subr.bf16.mxu1 (!%p250_p6), %v15135_v6  ;;  %v15142_v13 = vld [vmem:[%s20084_s1 + $0x18] sm:$0xff] (!%p250_p6)   ;;  %v15146_v17 = vld [vmem:[%s20084_s1 + $0x20] sm:$0xff] (!%p250_p6)   ;;  %v15150_v21 = vld [vmem:[%s20084_s1 + $0x28] sm:$0xff] (!%p250_p6)  }
  0x10   : > { %13520 = vmatpush3.bf16.msra.mxu0 (!%p250_p6), %v15134_v5  ;;  %v15143_v14 = vld [vmem:[%s20084_s1 + $0xd8] sm:$0xff] (!%p250_p6)   ;;  %v15147_v18 = vld [vmem:[%s20084_s1 + $0xe0] sm:$0xff] (!%p250_p6)   ;;  %v15151_v22 = vld [vmem:[%s20084_s1 + $0xe8] sm:$0xff] (!%p250_p6)  }
  0x11   : > { %13521 = vmatprep.subr.bf16.mxu0 (!%p250_p6), %v15137_v8  ;;  %v15144_v15 = vld [vmem:[%s20084_s1 + $0x98] sm:$0xff] (!%p250_p6)   ;;  %v15148_v19 = vld [vmem:[%s20084_s1 + $0xa0] sm:$0xff] (!%p250_p6)   ;;  %v15152_v23 = vld [vmem:[%s20084_s1 + $0xa8] sm:$0xff] (!%p250_p6)  }
  0x12   : > { %13542 = vmatpush3.bf16.msra.mxu1 %v15136_v7  ;;  %s293_s19 = scalar_select %p292_p7, %s16396_s21, 2  ;;  %v15153_v24 = vld [vmem:[%s20084_s1 + $0x70] sm:$0xff]   ;;  %v15157_v28 = vld [vmem:[%s20084_s1 + $0x78] sm:$0xff]   ;;  %v15161_v38 = vld [vmem:[%s20084_s1 + $0x140] sm:$0xff]  }
  0x13   : > { %13543 = vmatprep.subr.bf16.mxu1 %v15139_v10  ;;  %v15154_v25 = vld [vmem:[%s20084_s1 + $0x30] sm:$0xff]   ;;  %v15158_v29 = vld [vmem:[%s20084_s1 + $0x38] sm:$0xff]   ;;  %v15162_v42 = vld [vmem:[%s20084_s1 + $0x100] sm:$0xff]   ;;  %s12205_s24 = ssub.s32 (%p16349_p4), 3, %s16396_s21  ;;  %s13514_s13 = sshll.u32 (%p16349_p4), %s16337_s27, 4 }
  0x14   : > { %13522 = vmatpush3.bf16.msra.mxu0 %v15138_v9  ;;  %s15039_s12 = smul.u32 1072, %s293_s19  ;;  %v15155_v26 = vld [vmem:[%s20084_s1 + $0xf0] sm:$0xff]   ;;  %v15159_v30 = vld [vmem:[%s20084_s1 + $0xf8] sm:$0xff]   ;;  %v15163_v46 = vld [vmem:[%s20084_s1 + $0x1c0] sm:$0xff]   ;;  %p12206_p8 = scmp.lt.s32.totalorder (%p16349_p4), %s12205_s24, 2 }
  0x15   : > { %13523 = vmatprep.subr.bf16.mxu0 %v15141_v12  ;;  %v15156_v27 = vld [vmem:[%s20084_s1 + $0xb0] sm:$0xff]   ;;  %v15160_v34 = vld [vmem:[%s20084_s1 + $0xb8] sm:$0xff]   ;;  %v15164_v47 = vld [vmem:[%s20084_s1 + $0x180] sm:$0xff]   ;;  %s20049_s15 = scalar_lea.vmem (%p16349_p4), %s20090_s7, %s13514_s13  }
  0x16   : > { %13544 = vmatpush3.bf16.msra.mxu1 %v15140_v11  ;;  %s16448_s26 = scalar_lea.vmem %s20083_s0, %s15039_s12  ;;  %v15165_v48 = vld [vmem:[%s20084_s1 + $0x148] sm:$0xff]   ;;  %v15169_v52 = vld [vmem:[%s20084_s1 + $0x150] sm:$0xff]   ;;  %v15173_v56 = vld [vmem:[%s20084_s1 + $0x158] sm:$0xff]   ;;  %s20038_s12 = scalar_lea.vmem [#allocation2], %s12420_s30  }
  0x17   : > { %13545 = vmatprep.subr.bf16.mxu1 %v15143_v14  ;;  %v310_v31 = vld [vmem:[%s16448_s26 + $0x8] sm:$0xff]  ;;  %v444_v32 = vld [vmem:[%s16448_s26 + $0x438] sm:$0xff]  ;;  %v309_v35 = vld [vmem:[%s16448_s26] sm:$0xff] }
  0x18   : > { %13524 = vmatpush3.bf16.msra.mxu0 %v15142_v13  ;;  %v578_v33 = vpack.c.bf16 %v444_v32, %v310_v31  ;;  %v443_v36 = vld [vmem:[%s16448_s26 + $0x430] sm:$0xff]  ;;  %v312_v39 = vld [vmem:[%s16448_s26 + $0x18] sm:$0xff]  ;;  %v446_v40 = vld [vmem:[%s16448_s26 + $0x448] sm:$0xff] }
  0x19   : > { %13525 = vmatprep.subr.bf16.mxu0 %v15145_v16  ;;  %v577_v37 = vpack.c.bf16 %v443_v36, %v309_v35  ;;  %v580_v41 = vpack.c.bf16 %v446_v40, %v312_v39  ;;  %v311_v43 = vld [vmem:[%s16448_s26 + $0x10] sm:$0xff]  ;;  %v445_v44 = vld [vmem:[%s16448_s26 + $0x440] sm:$0xff]  ;;  %v15166_v49 = vld [vmem:[%s20084_s1 + $0x108] sm:$0xff]  }
  0x1a   : > { %13546 = vmatpush3.bf16.msra.mxu1 %v15144_v15  ;;  %9285 = vmatprep.mubr.bf16.mxu0 %v578_v33  ;;  %v579_v45 = vpack.c.bf16 %v445_v44, %v311_v43  ;;  %v15167_v50 = vld [vmem:[%s20084_s1 + $0x1c8] sm:$0xff]   ;;  %v15170_v53 = vld [vmem:[%s20084_s1 + $0x110] sm:$0xff]   ;;  %v15174_v57 = vld [vmem:[%s20084_s1 + $0x118] sm:$0xff]  }
  0x1b   : > { %13547 = vmatprep.subr.bf16.mxu1 %v15147_v18  ;;  %9326 = vmatprep.mubr.bf16.mxu1 %v580_v41  ;;  %v15168_v51 = vld [vmem:[%s20084_s1 + $0x188] sm:$0xff]   ;;  %v15171_v54 = vld [vmem:[%s20084_s1 + $0x1d0] sm:$0xff]   ;;  %v15175_v58 = vld [vmem:[%s20084_s1 + $0x1d8] sm:$0xff]  }
  0x1c   : > { %13526 = vmatpush3.bf16.msra.mxu0 %v15146_v17  ;;  %v15172_v55 = vld [vmem:[%s20084_s1 + $0x190] sm:$0xff]   ;;  %v15176_v59 = vld [vmem:[%s20084_s1 + $0x198] sm:$0xff]   ;;  %v15177_v60 = vld [vmem:[%s20084_s1 + $0x160] sm:$0xff]  }
  0x1d   : > { %13527 = vmatprep.subr.bf16.mxu0 %v15149_v20  ;;  %v15178_v61 = vld [vmem:[%s20084_s1 + $0x120] sm:$0xff]   ;;  %v15181_v0 = vld [vmem:[%s20084_s1 + $0x168] sm:$0xff]   ;;  %v15185_v4 = vld [vmem:[%s20084_s1 + $0x170] sm:$0xff]  }
  0x1e   : > { %13548 = vmatpush3.bf16.msra.mxu1 %v15148_v19  ;;  %v15179_v62 = vld [vmem:[%s20084_s1 + $0x1e0] sm:$0xff]   ;;  %v15182_v1 = vld [vmem:[%s20084_s1 + $0x128] sm:$0xff]   ;;  %v15186_v5 = vld [vmem:[%s20084_s1 + $0x130] sm:$0xff]  }
  0x1f   : > { %13549 = vmatprep.subr.bf16.mxu1 %v15151_v22  ;;  %v15180_v63 = vld [vmem:[%s20084_s1 + $0x1a0] sm:$0xff]   ;;  %v15183_v2 = vld [vmem:[%s20084_s1 + $0x1e8] sm:$0xff]   ;;  %v15187_v6 = vld [vmem:[%s20084_s1 + $0x1f0] sm:$0xff]  }
  0x20   : > { %13528 = vmatpush3.bf16.msra.mxu0 %v15150_v21  ;;  %v15184_v3 = vld [vmem:[%s20084_s1 + $0x1a8] sm:$0xff]   ;;  %v15188_v7 = vld [vmem:[%s20084_s1 + $0x1b0] sm:$0xff]   ;;  %v15189_v8 = vld [vmem:[%s20084_s1 + $0x178] sm:$0xff]  }
  0x21   : > { %13529 = vmatprep.subr.bf16.mxu0 %v15153_v24  ;;  %v15190_v9 = vld [vmem:[%s20084_s1 + $0x138] sm:$0xff]   ;;  %v314_v11 = vld [vmem:[%s16448_s26 + $0x28] sm:$0xff]  ;;  %v313_v15 = vld [vmem:[%s16448_s26 + $0x20] sm:$0xff] }
  0x22   : > { %13550 = vmatpush3.bf16.msra.mxu1 %v15152_v23  ;;  %v15191_v10 = vld [vmem:[%s20084_s1 + $0x1f8] sm:$0xff]   ;;  %v447_v16 = vld [vmem:[%s16448_s26 + $0x450] sm:$0xff]  ;;  %v15193_v18 = vld [vmem:[%s20084_s1 + $0x240] sm:$0xff]  }
  0x23   : > { %13551 = vmatprep.subr.bf16.mxu1 %v15155_v26  ;;  %v448_v12 = vld [vmem:[%s16448_s26 + $0x458] sm:$0xff]  ;;  %v581_v17 = vpack.c.bf16 %v447_v16, %v313_v15  ;;  %v450_v20 = vld [vmem:[%s16448_s26 + $0x468] sm:$0xff]  ;;  %v15194_v22 = vld [vmem:[%s20084_s1 + $0x200] sm:$0xff]  }
  0x24   : > { %13530 = vmatpush3.bf16.msra.mxu0 %v15154_v25  ;;  %v582_v13 = vpack.c.bf16 %v448_v12, %v314_v11  ;;  %v15192_v14 = vld [vmem:[%s20084_s1 + $0x1b8] sm:$0xff]   ;;  %v315_v23 = vld [vmem:[%s16448_s26 + $0x30] sm:$0xff]  ;;  %v449_v24 = vld [vmem:[%s16448_s26 + $0x460] sm:$0xff] }
  0x25   : > { %13531 = vmatprep.subr.bf16.mxu0 %v15157_v28  ;;  %v316_v19 = vld [vmem:[%s16448_s26 + $0x38] sm:$0xff]  ;;  %v583_v25 = vpack.c.bf16 %v449_v24, %v315_v23  ;;  %v15195_v26 = vld [vmem:[%s20084_s1 + $0x2c0] sm:$0xff]   ;;  %v15197_v28 = vld [vmem:[%s20084_s1 + $0x248] sm:$0xff]  }
  0x26   : > { %13552 = vmatpush3.bf16.msra.mxu1 %v15156_v27  ;;  %v584_v21 = vpack.c.bf16 %v450_v20, %v316_v19  ;;  %v15196_v27 = vld [vmem:[%s20084_s1 + $0x280] sm:$0xff]   ;;  %v15200_v31 = vld [vmem:[%s20084_s1 + $0x288] sm:$0xff]   ;;  %v15201_v32 = vld [vmem:[%s20084_s1 + $0x250] sm:$0xff]  }
  0x27   : > { %13553 = vmatprep.subr.bf16.mxu1 %v15159_v30  ;;  %v15199_v30 = vld [vmem:[%s20084_s1 + $0x2c8] sm:$0xff]   ;;  %v15202_v33 = vld [vmem:[%s20084_s1 + $0x210] sm:$0xff]   ;;  %v15205_v36 = vld [vmem:[%s20084_s1 + $0x258] sm:$0xff]  }
  0x28   : > { %13532 = vmatpush3.bf16.msra.mxu0 %v15158_v29  ;;  %v15198_v29 = vld [vmem:[%s20084_s1 + $0x208] sm:$0xff]   ;;  %v15204_v35 = vld [vmem:[%s20084_s1 + $0x290] sm:$0xff]   ;;  %v15208_v39 = vld [vmem:[%s20084_s1 + $0x298] sm:$0xff]  }
  0x29   : > { %13561 = vmatprep.subr.bf16.mxu0 %v15161_v38  ;;  %v15207_v38 = vld [vmem:[%s20084_s1 + $0x2d8] sm:$0xff]   ;;  %v15209_v40 = vld [vmem:[%s20084_s1 + $0x260] sm:$0xff]   ;;  %v15213_v44 = vld [vmem:[%s20084_s1 + $0x268] sm:$0xff]  }
  0x2a   : > { %13554 = vmatpush3.bf16.msra.mxu1 %v15160_v34  ;;  %v15203_v34 = vld [vmem:[%s20084_s1 + $0x2d0] sm:$0xff]   ;;  %v15210_v41 = vld [vmem:[%s20084_s1 + $0x220] sm:$0xff]   ;;  %v15232_v11 = vld [vmem:[%s20084_s1 + $0x388] sm:$0xff]  }
  0x2b   : > { %9286 = vmatmul.mubr.bf16.vlgmr.msra.gmra.mrb[0].mxu0 %v577_v37  ;;  %13583 = vmatprep.subr.bf16.mxu1 %v15163_v46  ;;  %v15206_v37 = vld [vmem:[%s20084_s1 + $0x218] sm:$0xff]   ;;  %v15212_v43 = vld [vmem:[%s20084_s1 + $0x2a0] sm:$0xff]   ;;  %v15215_v46 = vld [vmem:[%s20084_s1 + $0x2e8] sm:$0xff]  }
  0x2c   : > { %13562 = vmatpush3.bf16.msra.mxu0 %v15162_v42  ;;  %9367 = vmatprep.mubr.bf16.mxu0 %v582_v13  ;;  %v15211_v42 = vld [vmem:[%s20084_s1 + $0x2e0] sm:$0xff]   ;;  %v15233_v12 = vld [vmem:[%s20084_s1 + $0x350] sm:$0xff]   ;;  %v15237_v16 = vld [vmem:[%s20084_s1 + $0x358] sm:$0xff]  }
  0x2d   : > { %9327 = vmatmul.mubr.bf16.vlgmr.msra.gmra.mrb[0].mxu1 %v579_v45  ;;  %13563 = vmatprep.subr.bf16.mxu0 %v15165_v48  ;;  %v15214_v45 = vld [vmem:[%s20084_s1 + $0x228] sm:$0xff]   ;;  %v15217_v48 = vld [vmem:[%s20084_s1 + $0x270] sm:$0xff]   ;;  %v15240_v19 = vld [vmem:[%s20084_s1 + $0x398] sm:$0xff]  }
  0x2e   : > { %13584 = vmatpush3.bf16.msra.mxu1 %v15164_v47  ;;  %9408 = vmatprep.mubr.bf16.mxu1 %v584_v21  ;;  %v15216_v47 = vld [vmem:[%s20084_s1 + $0x2a8] sm:$0xff]   ;;  %v15234_v13 = vld [vmem:[%s20084_s1 + $0x310] sm:$0xff]   ;;  %v15241_v20 = vld [vmem:[%s20084_s1 + $0x360] sm:$0xff]  }
  0x2f   : > { %13585 = vmatprep.subr.bf16.mxu1 %v15167_v50  ;;  %v15219_v50 = vld [vmem:[%s20084_s1 + $0x2f0] sm:$0xff]   ;;  %v15242_v21 = vld [vmem:[%s20084_s1 + $0x320] sm:$0xff]   ;;  %v15245_v24 = vld [vmem:[%s20084_s1 + $0x368] sm:$0xff]  }
  0x30   : > { %13564 = vmatpush3.bf16.msra.mxu0 %v15166_v49  ;;  %v15218_v49 = vld [vmem:[%s20084_s1 + $0x230] sm:$0xff]   ;;  %v15244_v23 = vld [vmem:[%s20084_s1 + $0x3a0] sm:$0xff]  }
  0x31   : > { %13565 = vmatprep.subr.bf16.mxu0 %v15169_v52  ;;  %v15221_v52 = vld [vmem:[%s20084_s1 + $0x278] sm:$0xff]   ;;  %v15236_v15 = vld [vmem:[%s20084_s1 + $0x390] sm:$0xff]  }
  0x32   : > { %13586 = vmatpush3.bf16.msra.mxu1 %v15168_v51  ;;  %v15220_v51 = vld [vmem:[%s20084_s1 + $0x2b0] sm:$0xff]  }
  0x33   : > { %13587 = vmatprep.subr.bf16.mxu1 %v15171_v54  ;;  %v15223_v54 = vld [vmem:[%s20084_s1 + $0x2f8] sm:$0xff]  }
  0x34   : > { %13566 = vmatpush3.bf16.msra.mxu0 %v15170_v53  ;;  %v15222_v53 = vld [vmem:[%s20084_s1 + $0x238] sm:$0xff]  }
  0x35   : > { %13567 = vmatprep.subr.bf16.mxu0 %v15173_v56  ;;  %v452_v56 = vld [vmem:[%s16448_s26 + $0x478] sm:$0xff] }
  0x36   : > { %13588 = vmatpush3.bf16.msra.mxu1 %v15172_v55  ;;  %v318_v55 = vld [vmem:[%s16448_s26 + $0x48] sm:$0xff] }
  0x37   : > { %13589 = vmatprep.subr.bf16.mxu1 %v15175_v58  ;;  %v15224_v58 = vld [vmem:[%s20084_s1 + $0x2b8] sm:$0xff]  }
  0x38   : > { %13568 = vmatpush3.bf16.msra.mxu0 %v15174_v57  ;;  %v586_v57 = vpack.c.bf16 %v452_v56, %v318_v55  ;;  %v15264_v55 = vld [vmem:[%s20084_s1 + $0x488] sm:$0xff]   ;;  %v15265_v56 = vld [vmem:[%s20084_s1 + $0x450] sm:$0xff]  }
  0x39   : > { %13569 = vmatprep.subr.bf16.mxu0 %v15177_v60  ;;  %v451_v60 = vld [vmem:[%s16448_s26 + $0x470] sm:$0xff] }
  0x3a   : > { %13590 = vmatpush3.bf16.msra.mxu1 %v15176_v59  ;;  %v317_v59 = vld [vmem:[%s16448_s26 + $0x40] sm:$0xff] }
  0x3b   : > { %13591 = vmatprep.subr.bf16.mxu1 %v15179_v62  ;;  %v15225_v62 = vld [vmem:[%s20084_s1 + $0x340] sm:$0xff]  }
  0x3c   : > { %13570 = vmatpush3.bf16.msra.mxu0 %v15178_v61  ;;  %v585_v61 = vpack.c.bf16 %v451_v60, %v317_v59  ;;  %v15268_v59 = vld [vmem:[%s20084_s1 + $0x490] sm:$0xff]   ;;  %v15269_v60 = vld [vmem:[%s20084_s1 + $0x458] sm:$0xff]  }
  0x3d   : > { %13571 = vmatprep.subr.bf16.mxu0 %v15181_v0  ;;  %v454_v0 = vld [vmem:[%s16448_s26 + $0x488] sm:$0xff] }
  0x3e   : > { %13592 = vmatpush3.bf16.msra.mxu1 %v15180_v63  ;;  %v320_v63 = vld [vmem:[%s16448_s26 + $0x58] sm:$0xff] }
  0x3f   : > { %13593 = vmatprep.subr.bf16.mxu1 %v15183_v2  ;;  %v15226_v2 = vld [vmem:[%s20084_s1 + $0x300] sm:$0xff]  }
  0x40   : > { %13572 = vmatpush3.bf16.msra.mxu0 %v15182_v1  ;;  %v588_v1 = vpack.c.bf16 %v454_v0, %v320_v63  ;;  %v15272_v63 = vld [vmem:[%s20084_s1 + $0x498] sm:$0xff]   ;;  %v15273_v0 = vld [vmem:[%s20084_s1 + $0x460] sm:$0xff]  }
  0x41   : > { %13573 = vmatprep.subr.bf16.mxu0 %v15185_v4  ;;  %v453_v4 = vld [vmem:[%s16448_s26 + $0x480] sm:$0xff] }
  0x42   : > { %13594 = vmatpush3.bf16.msra.mxu1 %v15184_v3  ;;  %v319_v3 = vld [vmem:[%s16448_s26 + $0x50] sm:$0xff] }
  0x43   : > { %13595 = vmatprep.subr.bf16.mxu1 %v15187_v6  ;;  %v15227_v6 = vld [vmem:[%s20084_s1 + $0x3c0] sm:$0xff]  }
  0x44   : > { %13574 = vmatpush3.bf16.msra.mxu0 %v15186_v5  ;;  %v587_v5 = vpack.c.bf16 %v453_v4, %v319_v3  ;;  %v15276_v3 = vld [vmem:[%s20084_s1 + $0x4a0] sm:$0xff]   ;;  %v15277_v4 = vld [vmem:[%s20084_s1 + $0x468] sm:$0xff]  }
  0x45   : > { %13575 = vmatprep.subr.bf16.mxu0 %v15189_v8  ;;  %v15229_v8 = vld [vmem:[%s20084_s1 + $0x348] sm:$0xff]  }
  0x46   : > { %13596 = vmatpush3.bf16.msra.mxu1 %v15188_v7  ;;  %v15228_v7 = vld [vmem:[%s20084_s1 + $0x380] sm:$0xff]  }
  0x47   : > { %13597 = vmatprep.subr.bf16.mxu1 %v15191_v10  ;;  %v15231_v10 = vld [vmem:[%s20084_s1 + $0x3c8] sm:$0xff]  }
  0x48   : > { %13576 = vmatpush3.bf16.msra.mxu0 %v15190_v9  ;;  %v15230_v9 = vld [vmem:[%s20084_s1 + $0x308] sm:$0xff]  }
  0x49   : > { %13605 = vmatprep.subr.bf16.mxu0 %v15193_v18  ;;  %v15239_v18 = vld [vmem:[%s20084_s1 + $0x3d8] sm:$0xff]  }
  0x4a   : > { %13598 = vmatpush3.bf16.msra.mxu1 %v15192_v14  ;;  %v15235_v14 = vld [vmem:[%s20084_s1 + $0x3d0] sm:$0xff]  }
  0x4b   : > { %9368 = vmatmul.mubr.bf16.vlgmr.msra.gmra.mrb[4].mxu0 %v581_v17  ;;  %13627 = vmatprep.subr.bf16.mxu1 %v15195_v26  ;;  %v15238_v17 = vld [vmem:[%s20084_s1 + $0x318] sm:$0xff]   ;;  %v15247_v26 = vld [vmem:[%s20084_s1 + $0x3e8] sm:$0xff]  }
  0x4c   : > { %13606 = vmatpush3.bf16.msra.mxu0 %v15194_v22  ;;  %9449 = vmatprep.mubr.bf16.mxu0 %v586_v57  ;;  %v15243_v22 = vld [vmem:[%s20084_s1 + $0x3e0] sm:$0xff]   ;;  %v15266_v57 = vld [vmem:[%s20084_s1 + $0x410] sm:$0xff]  }
  0x4d   : > { %9409 = vmatmul.mubr.bf16.vlgmr.msra.gmra.mrb[4].mxu1 %v583_v25  ;;  %13607 = vmatprep.subr.bf16.mxu0 %v15197_v28  ;;  %v15246_v25 = vld [vmem:[%s20084_s1 + $0x328] sm:$0xff]   ;;  %v15249_v28 = vld [vmem:[%s20084_s1 + $0x370] sm:$0xff]  }
  0x4e   : > { %13628 = vmatpush3.bf16.msra.mxu1 %v15196_v27  ;;  %9490 = vmatprep.mubr.bf16.mxu1 %v588_v1  ;;  %v15248_v27 = vld [vmem:[%s20084_s1 + $0x3a8] sm:$0xff]   ;;  %v15274_v1 = vld [vmem:[%s20084_s1 + $0x420] sm:$0xff]  }
  0x4f   : > { %13629 = vmatprep.subr.bf16.mxu1 %v15199_v30  ;;  %v15251_v30 = vld [vmem:[%s20084_s1 + $0x3f0] sm:$0xff]  }
  0x50   : > { %13608 = vmatpush3.bf16.msra.mxu0 %v15198_v29  ;;  %v15250_v29 = vld [vmem:[%s20084_s1 + $0x330] sm:$0xff]  }
  0x51   : > { %13609 = vmatprep.subr.bf16.mxu0 %v15201_v32  ;;  %v15253_v32 = vld [vmem:[%s20084_s1 + $0x378] sm:$0xff]  }
  0x52   : > { %13630 = vmatpush3.bf16.msra.mxu1 %v15200_v31  ;;  %v15252_v31 = vld [vmem:[%s20084_s1 + $0x3b0] sm:$0xff]  }
  0x53   : > { %13631 = vmatprep.subr.bf16.mxu1 %v15203_v34  ;;  %v15255_v34 = vld [vmem:[%s20084_s1 + $0x3f8] sm:$0xff]  }
  0x54   : > { %13610 = vmatpush3.bf16.msra.mxu0 %v15202_v33  ;;  %v15254_v33 = vld [vmem:[%s20084_s1 + $0x338] sm:$0xff]  }
  0x55   : > { %13611 = vmatprep.subr.bf16.mxu0 %v15205_v36  ;;  %v456_v36 = vld [vmem:[%s16448_s26 + $0x498] sm:$0xff] }
  0x56   : > { %13632 = vmatpush3.bf16.msra.mxu1 %v15204_v35  ;;  %v322_v35 = vld [vmem:[%s16448_s26 + $0x68] sm:$0xff] }
  0x57   : > { %13633 = vmatprep.subr.bf16.mxu1 %v15207_v38  ;;  %v15256_v38 = vld [vmem:[%s20084_s1 + $0x3b8] sm:$0xff]  }
  0x58   : > { %13612 = vmatpush3.bf16.msra.mxu0 %v15206_v37  ;;  %v590_v37 = vpack.c.bf16 %v456_v36, %v322_v35  ;;  %v15296_v35 = vld [vmem:[%s20084_s1 + $0x588] sm:$0xff]   ;;  %v15297_v36 = vld [vmem:[%s20084_s1 + $0x550] sm:$0xff]  }
  0x59   : > { %13613 = vmatprep.subr.bf16.mxu0 %v15209_v40  ;;  %v455_v40 = vld [vmem:[%s16448_s26 + $0x490] sm:$0xff] }
  0x5a   : > { %13634 = vmatpush3.bf16.msra.mxu1 %v15208_v39  ;;  %v321_v39 = vld [vmem:[%s16448_s26 + $0x60] sm:$0xff] }
  0x5b   : > { %13635 = vmatprep.subr.bf16.mxu1 %v15211_v42  ;;  %v15257_v42 = vld [vmem:[%s20084_s1 + $0x440] sm:$0xff]  }
  0x5c   : > { %13614 = vmatpush3.bf16.msra.mxu0 %v15210_v41  ;;  %v589_v41 = vpack.c.bf16 %v455_v40, %v321_v39  ;;  %v15300_v39 = vld [vmem:[%s20084_s1 + $0x590] sm:$0xff]   ;;  %v15301_v40 = vld [vmem:[%s20084_s1 + $0x558] sm:$0xff]  }
  0x5d   : > { %13615 = vmatprep.subr.bf16.mxu0 %v15213_v44  ;;  %v458_v44 = vld [vmem:[%s16448_s26 + $0x4a8] sm:$0xff] }
  0x5e   : > { %13636 = vmatpush3.bf16.msra.mxu1 %v15212_v43  ;;  %v324_v43 = vld [vmem:[%s16448_s26 + $0x78] sm:$0xff] }
  0x5f   : > { %13637 = vmatprep.subr.bf16.mxu1 %v15215_v46  ;;  %v15258_v46 = vld [vmem:[%s20084_s1 + $0x400] sm:$0xff]  }
  0x60   : > { %13616 = vmatpush3.bf16.msra.mxu0 %v15214_v45  ;;  %v592_v45 = vpack.c.bf16 %v458_v44, %v324_v43  ;;  %v15304_v43 = vld [vmem:[%s20084_s1 + $0x598] sm:$0xff]   ;;  %v15305_v44 = vld [vmem:[%s20084_s1 + $0x560] sm:$0xff]  }
  0x61   : > { %13617 = vmatprep.subr.bf16.mxu0 %v15217_v48  ;;  %v457_v48 = vld [vmem:[%s16448_s26 + $0x4a0] sm:$0xff] }
  0x62   : > { %13638 = vmatpush3.bf16.msra.mxu1 %v15216_v47  ;;  %v323_v47 = vld [vmem:[%s16448_s26 + $0x70] sm:$0xff] }
  0x63   : > { %13639 = vmatprep.subr.bf16.mxu1 %v15219_v50  ;;  %v15259_v50 = vld [vmem:[%s20084_s1 + $0x4c0] sm:$0xff]  }
  0x64   : > { %13618 = vmatpush3.bf16.msra.mxu0 %v15218_v49  ;;  %v591_v49 = vpack.c.bf16 %v457_v48, %v323_v47  ;;  %v15308_v47 = vld [vmem:[%s20084_s1 + $0x5a0] sm:$0xff]   ;;  %v15309_v48 = vld [vmem:[%s20084_s1 + $0x568] sm:$0xff]  }
  0x65   : > { %13619 = vmatprep.subr.bf16.mxu0 %v15221_v52  ;;  %v15261_v52 = vld [vmem:[%s20084_s1 + $0x448] sm:$0xff]  }
  0x66   : > { %13640 = vmatpush3.bf16.msra.mxu1 %v15220_v51  ;;  %v15260_v51 = vld [vmem:[%s20084_s1 + $0x480] sm:$0xff]  }
  0x67   : > { %13641 = vmatprep.subr.bf16.mxu1 %v15223_v54  ;;  %v15263_v54 = vld [vmem:[%s20084_s1 + $0x4c8] sm:$0xff]  }
  0x68   : > { %13620 = vmatpush3.bf16.msra.mxu0 %v15222_v53  ;;  %v15262_v53 = vld [vmem:[%s20084_s1 + $0x408] sm:$0xff]  }
  0x69   : > { %13649 = vmatprep.subr.bf16.mxu0 %v15225_v62  ;;  %v15271_v62 = vld [vmem:[%s20084_s1 + $0x4d8] sm:$0xff]  }
  0x6a   : > { %13642 = vmatpush3.bf16.msra.mxu1 %v15224_v58  ;;  %v15267_v58 = vld [vmem:[%s20084_s1 + $0x4d0] sm:$0xff]  }
  0x6b   : > { %9450 = vmatmul.mubr.bf16.vlgmr.msra.gmra.mrb[8].mxu0 %v585_v61  ;;  %13671 = vmatprep.subr.bf16.mxu1 %v15227_v6  ;;  %v15270_v61 = vld [vmem:[%s20084_s1 + $0x418] sm:$0xff]   ;;  %v15279_v6 = vld [vmem:[%s20084_s1 + $0x4e8] sm:$0xff]  }
  0x6c   : > { %13650 = vmatpush3.bf16.msra.mxu0 %v15226_v2  ;;  %9531 = vmatprep.mubr.bf16.mxu0 %v590_v37  ;;  %v15275_v2 = vld [vmem:[%s20084_s1 + $0x4e0] sm:$0xff]   ;;  %v15298_v37 = vld [vmem:[%s20084_s1 + $0x510] sm:$0xff]  }
  0x6d   : > { %9491 = vmatmul.mubr.bf16.vlgmr.msra.gmra.mrb[8].mxu1 %v587_v5  ;;  %13651 = vmatprep.subr.bf16.mxu0 %v15229_v8  ;;  %v15278_v5 = vld [vmem:[%s20084_s1 + $0x428] sm:$0xff]   ;;  %v15281_v8 = vld [vmem:[%s20084_s1 + $0x470] sm:$0xff]  }
  0x6e   : > { %13672 = vmatpush3.bf16.msra.mxu1 %v15228_v7  ;;  %9572 = vmatprep.mubr.bf16.mxu1 %v592_v45  ;;  %v15280_v7 = vld [vmem:[%s20084_s1 + $0x4a8] sm:$0xff]   ;;  %v15306_v45 = vld [vmem:[%s20084_s1 + $0x520] sm:$0xff]  }
  0x6f   : > { %13673 = vmatprep.subr.bf16.mxu1 %v15231_v10  ;;  %v15283_v10 = vld [vmem:[%s20084_s1 + $0x4f0] sm:$0xff]  }
  0x70   : > { %13652 = vmatpush3.bf16.msra.mxu0 %v15230_v9  ;;  %v15282_v9 = vld [vmem:[%s20084_s1 + $0x430] sm:$0xff]  }
  0x71   : > { %13653 = vmatprep.subr.bf16.mxu0 %v15233_v12  ;;  %v15285_v12 = vld [vmem:[%s20084_s1 + $0x478] sm:$0xff]  }
  0x72   : > { %13674 = vmatpush3.bf16.msra.mxu1 %v15232_v11  ;;  %v15284_v11 = vld [vmem:[%s20084_s1 + $0x4b0] sm:$0xff]  }
  0x73   : > { %13675 = vmatprep.subr.bf16.mxu1 %v15235_v14  ;;  %v15287_v14 = vld [vmem:[%s20084_s1 + $0x4f8] sm:$0xff]  }
  0x74   : > { %13654 = vmatpush3.bf16.msra.mxu0 %v15234_v13  ;;  %v15286_v13 = vld [vmem:[%s20084_s1 + $0x438] sm:$0xff]  }
  0x75   : > { %13655 = vmatprep.subr.bf16.mxu0 %v15237_v16  ;;  %v460_v16 = vld [vmem:[%s16448_s26 + $0x4b8] sm:$0xff] }
  0x76   : > { %13676 = vmatpush3.bf16.msra.mxu1 %v15236_v15  ;;  %v326_v15 = vld [vmem:[%s16448_s26 + $0x88] sm:$0xff] }
  0x77   : > { %13677 = vmatprep.subr.bf16.mxu1 %v15239_v18  ;;  %v15288_v18 = vld [vmem:[%s20084_s1 + $0x4b8] sm:$0xff]  }
  0x78   : > { %13656 = vmatpush3.bf16.msra.mxu0 %v15238_v17  ;;  %v594_v17 = vpack.c.bf16 %v460_v16, %v326_v15  ;;  %v15328_v15 = vld [vmem:[%s20084_s1 + $0x688] sm:$0xff]   ;;  %v15329_v16 = vld [vmem:[%s20084_s1 + $0x650] sm:$0xff]  }
  0x79   : > { %13657 = vmatprep.subr.bf16.mxu0 %v15241_v20  ;;  %v459_v20 = vld [vmem:[%s16448_s26 + $0x4b0] sm:$0xff] }
  0x7a   : > { %13678 = vmatpush3.bf16.msra.mxu1 %v15240_v19  ;;  %v325_v19 = vld [vmem:[%s16448_s26 + $0x80] sm:$0xff] }
  0x7b   : > { %13679 = vmatprep.subr.bf16.mxu1 %v15243_v22  ;;  %v15289_v22 = vld [vmem:[%s20084_s1 + $0x540] sm:$0xff]  }
  0x7c   : > { %13658 = vmatpush3.bf16.msra.mxu0 %v15242_v21  ;;  %v593_v21 = vpack.c.bf16 %v459_v20, %v325_v19  ;;  %v15332_v19 = vld [vmem:[%s20084_s1 + $0x690] sm:$0xff]   ;;  %v15333_v20 = vld [vmem:[%s20084_s1 + $0x658] sm:$0xff]  }
  0x7d   : > { %13659 = vmatprep.subr.bf16.mxu0 %v15245_v24  ;;  %v462_v24 = vld [vmem:[%s16448_s26 + $0x4c8] sm:$0xff] }
  0x7e   : > { %13680 = vmatpush3.bf16.msra.mxu1 %v15244_v23  ;;  %v328_v23 = vld [vmem:[%s16448_s26 + $0x98] sm:$0xff] }
  0x7f   : > { %13681 = vmatprep.subr.bf16.mxu1 %v15247_v26  ;;  %v15290_v26 = vld [vmem:[%s20084_s1 + $0x500] sm:$0xff]  }
  0x80   : > { %13660 = vmatpush3.bf16.msra.mxu0 %v15246_v25  ;;  %v596_v25 = vpack.c.bf16 %v462_v24, %v328_v23  ;;  %v15336_v23 = vld [vmem:[%s20084_s1 + $0x698] sm:$0xff]   ;;  %v15337_v24 = vld [vmem:[%s20084_s1 + $0x660] sm:$0xff]  }
  0x81   : > { %13661 = vmatprep.subr.bf16.mxu0 %v15249_v28  ;;  %v461_v28 = vld [vmem:[%s16448_s26 + $0x4c0] sm:$0xff] }
  0x82   : > { %13682 = vmatpush3.bf16.msra.mxu1 %v15248_v27  ;;  %v327_v27 = vld [vmem:[%s16448_s26 + $0x90] sm:$0xff] }
  0x83   : > { %13683 = vmatprep.subr.bf16.mxu1 %v15251_v30  ;;  %v15291_v30 = vld [vmem:[%s20084_s1 + $0x5c0] sm:$0xff]  }
  0x84   : > { %13662 = vmatpush3.bf16.msra.mxu0 %v15250_v29  ;;  %v595_v29 = vpack.c.bf16 %v461_v28, %v327_v27  ;;  %v15340_v27 = vld [vmem:[%s20084_s1 + $0x6a0] sm:$0xff]   ;;  %v15341_v28 = vld [vmem:[%s20084_s1 + $0x668] sm:$0xff]  }
  0x85   : > { %13663 = vmatprep.subr.bf16.mxu0 %v15253_v32  ;;  %v15293_v32 = vld [vmem:[%s20084_s1 + $0x548] sm:$0xff]  }
  0x86   : > { %13684 = vmatpush3.bf16.msra.mxu1 %v15252_v31  ;;  %v15292_v31 = vld [vmem:[%s20084_s1 + $0x580] sm:$0xff]  }
  0x87   : > { %13685 = vmatprep.subr.bf16.mxu1 %v15255_v34  ;;  %v15295_v34 = vld [vmem:[%s20084_s1 + $0x5c8] sm:$0xff]  }
  0x88   : > { %13664 = vmatpush3.bf16.msra.mxu0 %v15254_v33  ;;  %v15294_v33 = vld [vmem:[%s20084_s1 + $0x508] sm:$0xff]  }
  0x89   : > { %13693 = vmatprep.subr.bf16.mxu0 %v15257_v42  ;;  %v15303_v42 = vld [vmem:[%s20084_s1 + $0x5d8] sm:$0xff]  }
  0x8a   : > { %13686 = vmatpush3.bf16.msra.mxu1 %v15256_v38  ;;  %v15299_v38 = vld [vmem:[%s20084_s1 + $0x5d0] sm:$0xff]  }
  0x8b   : > { %9532 = vmatmul.mubr.bf16.vlgmr.msra.gmra.mrb[12].mxu0 %v589_v41  ;;  %13715 = vmatprep.subr.bf16.mxu1 %v15259_v50  ;;  %v15302_v41 = vld [vmem:[%s20084_s1 + $0x518] sm:$0xff]   ;;  %v15311_v50 = vld [vmem:[%s20084_s1 + $0x5e8] sm:$0xff]  }
  0x8c   : > { %13694 = vmatpush3.bf16.msra.mxu0 %v15258_v46  ;;  %9613 = vmatprep.mubr.bf16.mxu0 %v594_v17  ;;  %v15307_v46 = vld [vmem:[%s20084_s1 + $0x5e0] sm:$0xff]   ;;  %v15330_v17 = vld [vmem:[%s20084_s1 + $0x610] sm:$0xff]  }
  0x8d   : > { %9573 = vmatmul.mubr.bf16.vlgmr.msra.gmra.mrb[12].mxu1 %v591_v49  ;;  %13695 = vmatprep.subr.bf16.mxu0 %v15261_v52  ;;  %v15310_v49 = vld [vmem:[%s20084_s1 + $0x528] sm:$0xff]   ;;  %v15313_v52 = vld [vmem:[%s20084_s1 + $0x570] sm:$0xff]  }
  0x8e   : > { %13716 = vmatpush3.bf16.msra.mxu1 %v15260_v51  ;;  %9654 = vmatprep.mubr.bf16.mxu1 %v596_v25  ;;  %v15312_v51 = vld [vmem:[%s20084_s1 + $0x5a8] sm:$0xff]   ;;  %v15338_v25 = vld [vmem:[%s20084_s1 + $0x620] sm:$0xff]  }
  0x8f   : > { %13717 = vmatprep.subr.bf16.mxu1 %v15263_v54  ;;  %v15315_v54 = vld [vmem:[%s20084_s1 + $0x5f0] sm:$0xff]  }
  0x90   : > { %13696 = vmatpush3.bf16.msra.mxu0 %v15262_v53  ;;  %v15314_v53 = vld [vmem:[%s20084_s1 + $0x530] sm:$0xff]  }
  0x91   : > { %13697 = vmatprep.subr.bf16.mxu0 %v15265_v56  ;;  %v15317_v56 = vld [vmem:[%s20084_s1 + $0x578] sm:$0xff]  }
  0x92   : > { %13718 = vmatpush3.bf16.msra.mxu1 %v15264_v55  ;;  %v15316_v55 = vld [vmem:[%s20084_s1 + $0x5b0] sm:$0xff]  }
  0x93   : > { %13719 = vmatprep.subr.bf16.mxu1 %v15267_v58  ;;  %v15319_v58 = vld [vmem:[%s20084_s1 + $0x5f8] sm:$0xff]  }
  0x94   : > { %13698 = vmatpush3.bf16.msra.mxu0 %v15266_v57  ;;  %v15318_v57 = vld [vmem:[%s20084_s1 + $0x538] sm:$0xff]  }
  0x95   : > { %13699 = vmatprep.subr.bf16.mxu0 %v15269_v60  ;;  %v464_v60 = vld [vmem:[%s16448_s26 + $0x4d8] sm:$0xff] }
  0x96   : > { %13720 = vmatpush3.bf16.msra.mxu1 %v15268_v59  ;;  %v330_v59 = vld [vmem:[%s16448_s26 + $0xa8] sm:$0xff] }
  0x97   : > { %13721 = vmatprep.subr.bf16.mxu1 %v15271_v62  ;;  %v15320_v62 = vld [vmem:[%s20084_s1 + $0x5b8] sm:$0xff]  }
  0x98   : > { %13700 = vmatpush3.bf16.msra.mxu0 %v15270_v61  ;;  %v598_v61 = vpack.c.bf16 %v464_v60, %v330_v59  ;;  %v15359_v60 = vld [vmem:[%s20084_s1 + $0x7c8] sm:$0xff]  }
  0x99   : > { %13701 = vmatprep.subr.bf16.mxu0 %v15273_v0  ;;  %v463_v0 = vld [vmem:[%s16448_s26 + $0x4d0] sm:$0xff] }
  0x9a   : > { %13722 = vmatpush3.bf16.msra.mxu1 %v15272_v63  ;;  %v329_v63 = vld [vmem:[%s16448_s26 + $0xa0] sm:$0xff] }
  0x9b   : > { %13723 = vmatprep.subr.bf16.mxu1 %v15275_v2  ;;  %v15321_v2 = vld [vmem:[%s20084_s1 + $0x640] sm:$0xff]  }
  0x9c   : > { %13702 = vmatpush3.bf16.msra.mxu0 %v15274_v1  ;;  %v597_v1 = vpack.c.bf16 %v463_v0, %v329_v63  ;;  %v15360_v63 = vld [vmem:[%s20084_s1 + $0x788] sm:$0xff]  }
  0x9d   : > { %13703 = vmatprep.subr.bf16.mxu0 %v15277_v4  ;;  %v466_v4 = vld [vmem:[%s16448_s26 + $0x4e8] sm:$0xff] }
  0x9e   : > { %13724 = vmatpush3.bf16.msra.mxu1 %v15276_v3  ;;  %v332_v3 = vld [vmem:[%s16448_s26 + $0xb8] sm:$0xff] }
  0x9f   : > { %13725 = vmatprep.subr.bf16.mxu1 %v15279_v6  ;;  %v15322_v6 = vld [vmem:[%s20084_s1 + $0x600] sm:$0xff]  }
  0xa0   : > { %13704 = vmatpush3.bf16.msra.mxu0 %v15278_v5  ;;  %v600_v5 = vpack.c.bf16 %v466_v4, %v332_v3  ;;  %v15362_v3 = vld [vmem:[%s20084_s1 + $0x710] sm:$0xff]  }
  0xa1   : > { %13705 = vmatprep.subr.bf16.mxu0 %v15281_v8  ;;  %v465_v8 = vld [vmem:[%s16448_s26 + $0x4e0] sm:$0xff] }
  0xa2   : > { %13726 = vmatpush3.bf16.msra.mxu1 %v15280_v7  ;;  %v331_v7 = vld [vmem:[%s16448_s26 + $0xb0] sm:$0xff] }
  0xa3   : > { %13727 = vmatprep.subr.bf16.mxu1 %v15283_v10  ;;  %v15323_v10 = vld [vmem:[%s20084_s1 + $0x6c0] sm:$0xff]  }
  0xa4   : > { %13706 = vmatpush3.bf16.msra.mxu0 %v15282_v9  ;;  %v599_v9 = vpack.c.bf16 %v465_v8, %v331_v7 }
  0xa5   : > { %13707 = vmatprep.subr.bf16.mxu0 %v15285_v12  ;;  %v15325_v12 = vld [vmem:[%s20084_s1 + $0x648] sm:$0xff]  }
  0xa6   : > { %13728 = vmatpush3.bf16.msra.mxu1 %v15284_v11  ;;  %v15324_v11 = vld [vmem:[%s20084_s1 + $0x680] sm:$0xff]  }
  0xa7   : > { %13729 = vmatprep.subr.bf16.mxu1 %v15287_v14  ;;  %v15327_v14 = vld [vmem:[%s20084_s1 + $0x6c8] sm:$0xff]  }
  0xa8   : > { %13708 = vmatpush3.bf16.msra.mxu0 %v15286_v13  ;;  %v15326_v13 = vld [vmem:[%s20084_s1 + $0x608] sm:$0xff]  }
  0xa9   : > { %13737 = vmatprep.subr.bf16.mxu0 %v15289_v22  ;;  %v15335_v22 = vld [vmem:[%s20084_s1 + $0x6d8] sm:$0xff]  }
  0xaa   : > { %13730 = vmatpush3.bf16.msra.mxu1 %v15288_v18  ;;  %v15331_v18 = vld [vmem:[%s20084_s1 + $0x6d0] sm:$0xff]  }
  0xab   : > { %9614 = vmatmul.mubr.bf16.vlgmr.msra.gmra.mrb[16].mxu0 %v593_v21  ;;  %13759 = vmatprep.subr.bf16.mxu1 %v15291_v30  ;;  %v15334_v21 = vld [vmem:[%s20084_s1 + $0x618] sm:$0xff]   ;;  %v15343_v30 = vld [vmem:[%s20084_s1 + $0x6e8] sm:$0xff]  }
  0xac   : > { %13738 = vmatpush3.bf16.msra.mxu0 %v15290_v26  ;;  %9695 = vmatprep.mubr.bf16.mxu0 %v598_v61  ;;  %v15339_v26 = vld [vmem:[%s20084_s1 + $0x6e0] sm:$0xff]  }
  0xad   : > { %9655 = vmatmul.mubr.bf16.vlgmr.msra.gmra.mrb[16].mxu1 %v595_v29  ;;  %13739 = vmatprep.subr.bf16.mxu0 %v15293_v32  ;;  %v15342_v29 = vld [vmem:[%s20084_s1 + $0x628] sm:$0xff]   ;;  %v15345_v32 = vld [vmem:[%s20084_s1 + $0x670] sm:$0xff]  }
  0xae   : > { %13760 = vmatpush3.bf16.msra.mxu1 %v15292_v31  ;;  %9736 = vmatprep.mubr.bf16.mxu1 %v600_v5  ;;  %v15344_v31 = vld [vmem:[%s20084_s1 + $0x6a8] sm:$0xff]  }
  0xaf   : > { %13761 = vmatprep.subr.bf16.mxu1 %v15295_v34  ;;  %v15347_v34 = vld [vmem:[%s20084_s1 + $0x6f0] sm:$0xff]  }
  0xb0   : > { %13740 = vmatpush3.bf16.msra.mxu0 %v15294_v33  ;;  %v15346_v33 = vld [vmem:[%s20084_s1 + $0x630] sm:$0xff]  }
  0xb1   : > { %13741 = vmatprep.subr.bf16.mxu0 %v15297_v36  ;;  %v15349_v36 = vld [vmem:[%s20084_s1 + $0x678] sm:$0xff]  }
  0xb2   : > { %13762 = vmatpush3.bf16.msra.mxu1 %v15296_v35  ;;  %v15348_v35 = vld [vmem:[%s20084_s1 + $0x6b0] sm:$0xff]  }
  0xb3   : > { %13763 = vmatprep.subr.bf16.mxu1 %v15299_v38  ;;  %v15351_v38 = vld [vmem:[%s20084_s1 + $0x6f8] sm:$0xff]  }
  0xb4   : > { %13742 = vmatpush3.bf16.msra.mxu0 %v15298_v37  ;;  %v15350_v37 = vld [vmem:[%s20084_s1 + $0x638] sm:$0xff]  }
  0xb5   : > { %13743 = vmatprep.subr.bf16.mxu0 %v15301_v40  ;;  %v468_v40 = vld [vmem:[%s16448_s26 + $0x4f8] sm:$0xff] }
  0xb6   : > { %13764 = vmatpush3.bf16.msra.mxu1 %v15300_v39  ;;  %v334_v39 = vld [vmem:[%s16448_s26 + $0xc8] sm:$0xff] }
  0xb7   : > { %13765 = vmatprep.subr.bf16.mxu1 %v15303_v42  ;;  %v15352_v42 = vld [vmem:[%s20084_s1 + $0x6b8] sm:$0xff]  }
  0xb8   : > { %13744 = vmatpush3.bf16.msra.mxu0 %v15302_v41  ;;  %v602_v41 = vpack.c.bf16 %v468_v40, %v334_v39  ;;  %v15384_v39 = vld [vmem:[%s20084_s1 + $0x7b8] sm:$0xff]   ;;  %v337_v40 = vld [vmem:[%s16448_s26 + $0xe0] sm:$0xff] }
  0xb9   : > { %13745 = vmatprep.subr.bf16.mxu0 %v15305_v44  ;;  %v467_v44 = vld [vmem:[%s16448_s26 + $0x4f0] sm:$0xff] }
  0xba   : > { %13766 = vmatpush3.bf16.msra.mxu1 %v15304_v43  ;;  %v333_v43 = vld [vmem:[%s16448_s26 + $0xc0] sm:$0xff] }
  0xbb   : > { %13767 = vmatprep.subr.bf16.mxu1 %v15307_v46  ;;  %v15353_v46 = vld [vmem:[%s20084_s1 + $0x740] sm:$0xff]  }
  0xbc   : > { %13746 = vmatpush3.bf16.msra.mxu0 %v15306_v45  ;;  %v601_v45 = vpack.c.bf16 %v467_v44, %v333_v43  ;;  %v15385_v43 = vld [vmem:[%s20084_s1 + $0x840] sm:$0xff]   ;;  %v340_v44 = vld [vmem:[%s16448_s26 + $0xf8] sm:$0xff] }
  0xbd   : > { %13747 = vmatprep.subr.bf16.mxu0 %v15309_v48  ;;  %v470_v48 = vld [vmem:[%s16448_s26 + $0x508] sm:$0xff] }
  0xbe   : > { %13768 = vmatpush3.bf16.msra.mxu1 %v15308_v47  ;;  %v336_v47 = vld [vmem:[%s16448_s26 + $0xd8] sm:$0xff] }
  0xbf   : > { %13769 = vmatprep.subr.bf16.mxu1 %v15311_v50  ;;  %v15354_v50 = vld [vmem:[%s20084_s1 + $0x700] sm:$0xff]  }
  0xc0   : > { %13748 = vmatpush3.bf16.msra.mxu0 %v15310_v49  ;;  %v604_v49 = vpack.c.bf16 %v470_v48, %v336_v47  ;;  %v15386_v47 = vld [vmem:[%s20084_s1 + $0x800] sm:$0xff]   ;;  %v339_v48 = vld [vmem:[%s16448_s26 + $0xf0] sm:$0xff] }
  0xc1   : > { %13749 = vmatprep.subr.bf16.mxu0 %v15313_v52  ;;  %v469_v52 = vld [vmem:[%s16448_s26 + $0x500] sm:$0xff] }
  0xc2   : > { %13770 = vmatpush3.bf16.msra.mxu1 %v15312_v51  ;;  %v335_v51 = vld [vmem:[%s16448_s26 + $0xd0] sm:$0xff] }
  0xc3   : > { %13771 = vmatprep.subr.bf16.mxu1 %v15315_v54  ;;  %v15355_v54 = vld [vmem:[%s20084_s1 + $0x7c0] sm:$0xff]  }
  0xc4   : > { %13750 = vmatpush3.bf16.msra.mxu0 %v15314_v53  ;;  %v603_v53 = vpack.c.bf16 %v469_v52, %v335_v51  ;;  %v15387_v51 = vld [vmem:[%s20084_s1 + $0x8c0] sm:$0xff]  }
  0xc5   : > { %13751 = vmatprep.subr.bf16.mxu0 %v15317_v56  ;;  %v15357_v56 = vld [vmem:[%s20084_s1 + $0x748] sm:$0xff]   ;;  %v15388_v52 = vld [vmem:[%s20084_s1 + $0x880] sm:$0xff]  }
  0xc6   : > { %13772 = vmatpush3.bf16.msra.mxu1 %v15316_v55  ;;  %v15356_v55 = vld [vmem:[%s20084_s1 + $0x780] sm:$0xff]  }
  0xc7   : > { %13773 = vmatprep.subr.bf16.mxu1 %v15319_v58  ;;  %v15358_v58 = vld [vmem:[%s20084_s1 + $0x708] sm:$0xff]  }
  0xc8   : > { %13752 = vmatpush3.bf16.msra.mxu0 %v15318_v57 }
  0xc9   : > { %13781 = vmatprep.subr.bf16.mxu0 %v15321_v2 }
  0xca   : > { %13774 = vmatpush3.bf16.msra.mxu1 %v15320_v62 }
  0xcb   : > { %9696 = vmatmul.mubr.bf16.vlgmr.msra.gmra.mrb[20].mxu0 %v597_v1  ;;  %13803 = vmatprep.subr.bf16.mxu1 %v15323_v10  ;;  %v15361_v1 = vld [vmem:[%s20084_s1 + $0x750] sm:$0xff]  }
  0xcc   : > { %13782 = vmatpush3.bf16.msra.mxu0 %v15322_v6  ;;  %9777 = vmatprep.mubr.bf16.mxu0 %v602_v41  ;;  %v15363_v6 = vld [vmem:[%s20084_s1 + $0x7d0] sm:$0xff]  }
  0xcd   : > { %9737 = vmatmul.mubr.bf16.vlgmr.msra.gmra.mrb[20].mxu1 %v599_v9  ;;  %13783 = vmatprep.subr.bf16.mxu0 %v15325_v12  ;;  %v15364_v9 = vld [vmem:[%s20084_s1 + $0x790] sm:$0xff]  }
  0xce   : > { %13804 = vmatpush3.bf16.msra.mxu1 %v15324_v11  ;;  %9818 = vmatprep.mubr.bf16.mxu1 %v604_v49  ;;  %v15365_v11 = vld [vmem:[%s20084_s1 + $0x758] sm:$0xff]   ;;  %v471_v41 = vld [vmem:[%s16448_s26 + $0x510] sm:$0xff]  ;;  %v473_v49 = vld [vmem:[%s16448_s26 + $0x520] sm:$0xff] }
  0xcf   : > { %13805 = vmatprep.subr.bf16.mxu1 %v15327_v14  ;;  %v15367_v14 = vld [vmem:[%s20084_s1 + $0x7d8] sm:$0xff]  }
  0xd0   : > { %13784 = vmatpush3.bf16.msra.mxu0 %v15326_v13  ;;  %v15366_v13 = vld [vmem:[%s20084_s1 + $0x718] sm:$0xff]  }
  0xd1   : > { %13785 = vmatprep.subr.bf16.mxu0 %v15329_v16  ;;  %v15369_v16 = vld [vmem:[%s20084_s1 + $0x760] sm:$0xff]  }
  0xd2   : > { %13806 = vmatpush3.bf16.msra.mxu1 %v15328_v15  ;;  %v15368_v15 = vld [vmem:[%s20084_s1 + $0x798] sm:$0xff]  }
  0xd3   : > { %13807 = vmatprep.subr.bf16.mxu1 %v15331_v18  ;;  %v15371_v18 = vld [vmem:[%s20084_s1 + $0x7e0] sm:$0xff]  }
  0xd4   : > { %13786 = vmatpush3.bf16.msra.mxu0 %v15330_v17  ;;  %v15370_v17 = vld [vmem:[%s20084_s1 + $0x720] sm:$0xff]  }
  0xd5   : > { %13787 = vmatprep.subr.bf16.mxu0 %v15333_v20  ;;  %v12423_v20 = vld [vmem:[%s20085_s2] ss:$0 sm:$0xff] }
  0xd6   : > { %13808 = vmatpush3.bf16.msra.mxu1 %v15332_v19  ;;  %v15372_v19 = vld [vmem:[%s20084_s1 + $0x7a0] sm:$0xff]  }
  0xd7   : > { %13809 = vmatprep.subr.bf16.mxu1 %v15335_v22  ;;  %v15373_v22 = vld [vmem:[%s20084_s1 + $0x768] sm:$0xff]  }
  0xd8   : > { %13788 = vmatpush3.bf16.msra.mxu0 %v15334_v21 }
  0xd9   : > { %13789 = vmatprep.subr.bf16.mxu0 %v15337_v24  ;;  %v15374_v24 = vld [vmem:[%s20084_s1 + $0x728] sm:$0xff]  }
  0xda   : > { %13810 = vmatpush3.bf16.msra.mxu1 %v15336_v23 }
  0xdb   : > { %13811 = vmatprep.subr.bf16.mxu1 %v15339_v26  ;;  %v15375_v26 = vld [vmem:[%s20084_s1 + $0x7e8] sm:$0xff]  }
  0xdc   : > { %13790 = vmatpush3.bf16.msra.mxu0 %v15338_v25 }
  0xdd   : > { %13791 = vmatprep.subr.bf16.mxu0 %v15341_v28  ;;  %v15376_v28 = vld [vmem:[%s20084_s1 + $0x7a8] sm:$0xff]  }
  0xde   : > { %13812 = vmatpush3.bf16.msra.mxu1 %v15340_v27 }
  0xdf   : > { %13813 = vmatprep.subr.bf16.mxu1 %v15343_v30  ;;  %v15378_v30 = vld [vmem:[%s20084_s1 + $0x730] sm:$0xff]  }
  0xe0   : > { %13792 = vmatpush3.bf16.msra.mxu0 %v15342_v29  ;;  %v15377_v29 = vld [vmem:[%s20084_s1 + $0x770] sm:$0xff]  }
  0xe1   : > { %13793 = vmatprep.subr.bf16.mxu0 %v15345_v32  ;;  %v15380_v32 = vld [vmem:[%s20084_s1 + $0x7b0] sm:$0xff]  }
  0xe2   : > { %13814 = vmatpush3.bf16.msra.mxu1 %v15344_v31  ;;  %v15379_v31 = vld [vmem:[%s20084_s1 + $0x7f0] sm:$0xff]  }
  0xe3   : > { %13815 = vmatprep.subr.bf16.mxu1 %v15347_v34  ;;  %v15382_v34 = vld [vmem:[%s20084_s1 + $0x738] sm:$0xff]  }
  0xe4   : > { %13794 = vmatpush3.bf16.msra.mxu0 %v15346_v33  ;;  %v15381_v33 = vld [vmem:[%s20084_s1 + $0x778] sm:$0xff]  }
  0xe5   : > { %13795 = vmatprep.subr.bf16.mxu0 %v15349_v36  ;;  %v338_v36 = vld [vmem:[%s16448_s26 + $0xe8] sm:$0xff] }
  0xe6   : > { %13816 = vmatpush3.bf16.msra.mxu1 %v15348_v35  ;;  %v15383_v35 = vld [vmem:[%s20084_s1 + $0x7f8] sm:$0xff]  }
  0xe7   : > { %13817 = vmatprep.subr.bf16.mxu1 %v15351_v38 }
  0xe8   : > { %13796 = vmatpush3.bf16.msra.mxu0 %v15350_v37  ;;  %v472_v37 = vld [vmem:[%s16448_s26 + $0x518] sm:$0xff] }
  0xe9   : > { %13825 = vmatprep.subr.bf16.mxu0 %v15353_v46  ;;  %v606_v38 = vpack.c.bf16 %v472_v37, %v338_v36  ;;  %v341_v36 = vld [vmem:[%s16448_s26 + $0x100] sm:$0xff]  ;;  %v475_v37 = vld [vmem:[%s16448_s26 + $0x530] sm:$0xff] }
  0xea   : > { %13818 = vmatpush3.bf16.msra.mxu1 %v15352_v42  ;;  %v605_v42 = vpack.c.bf16 %v471_v41, %v337_v40  ;;  %v344_v40 = vld [vmem:[%s16448_s26 + $0x118] sm:$0xff]  ;;  %v478_v41 = vld [vmem:[%s16448_s26 + $0x548] sm:$0xff] }
  0xeb   : > { %9778 = vmatmul.mubr.bf16.vlgmr.msra.gmra.mrb[24].mxu0 %v601_v45  ;;  %13847 = vmatprep.subr.bf16.mxu1 %v15355_v54  ;;  %v474_v45 = vld [vmem:[%s16448_s26 + $0x528] sm:$0xff] }
  0xec   : > { %13826 = vmatpush3.bf16.msra.mxu0 %v15354_v50  ;;  %9859 = vmatprep.mubr.bf16.mxu0 %v606_v38  ;;  %v608_v46 = vpack.c.bf16 %v474_v45, %v340_v44  ;;  %v607_v50 = vpack.c.bf16 %v473_v49, %v339_v48  ;;  %v15389_v54 = vld [vmem:[%s20084_s1 + $0x848] sm:$0xff]   ;;  %v609_v38 = vpack.c.bf16 %v475_v37, %v341_v36  ;;  %v343_v44 = vld [vmem:[%s16448_s26 + $0x110] sm:$0xff]  ;;  %v477_v45 = vld [vmem:[%s16448_s26 + $0x540] sm:$0xff] }
  0xed   : > { %9819 = vmatmul.mubr.bf16.vlgmr.msra.gmra.mrb[24].mxu1 %v603_v53  ;;  %13827 = vmatprep.subr.bf16.mxu0 %v15357_v56  ;;  %v15390_v56 = vld [vmem:[%s20084_s1 + $0x808] sm:$0xff]   ;;  %v15420_v48 = vld [vmem:[%s20084_s1 + $0x980] sm:$0xff]   ;;  %v348_v36 = vld [vmem:[%s16448_s26 + $0x138] sm:$0xff] }
  0xee   : > { %13848 = vmatpush3.bf16.msra.mxu1 %v15356_v55  ;;  %9900 = vmatprep.mubr.bf16.mxu1 %v608_v46  ;;  %v611_v46 = vpack.c.bf16 %v477_v45, %v343_v44  ;;  %v482_v37 = vld [vmem:[%s16448_s26 + $0x568] sm:$0xff]  ;;  %v15452_v44 = vld [vmem:[%s20084_s1 + $0xa80] sm:$0xff]  }
  0xef   : > { %13849 = vmatprep.subr.bf16.mxu1 %v15359_v60  ;;  %v15453_v45 = vld [vmem:[%s20084_s1 + $0xa48] sm:$0xff]  }
  0xf0   : > { %13828 = vmatpush3.bf16.msra.mxu0 %v15358_v58 }
  0xf1   : > { %13829 = vmatprep.subr.bf16.mxu0 %v15361_v1  ;;  %v15393_v1 = vld [vmem:[%s20084_s1 + $0x850] sm:$0xff]  }
  0xf2   : > { %13850 = vmatpush3.bf16.msra.mxu1 %v15360_v63 }
  0xf3   : > { %13851 = vmatprep.subr.bf16.mxu1 %v15363_v6 }
  0xf4   : > { %13830 = vmatpush3.bf16.msra.mxu0 %v15362_v3  ;;  %v15394_v3 = vld [vmem:[%s20084_s1 + $0x810] sm:$0xff]  }
  0xf5   : > { %13831 = vmatprep.subr.bf16.mxu0 %v15365_v11 }
  0xf6   : > { %13852 = vmatpush3.bf16.msra.mxu1 %v15364_v9  ;;  %v15396_v9 = vld [vmem:[%s20084_s1 + $0x890] sm:$0xff]  }
  0xf7   : > { %13853 = vmatprep.subr.bf16.mxu1 %v15367_v14 }
  0xf8   : > { %13832 = vmatpush3.bf16.msra.mxu0 %v15366_v13  ;;  %v15398_v13 = vld [vmem:[%s20084_s1 + $0x818] sm:$0xff]  }
  0xf9   : > { %13833 = vmatprep.subr.bf16.mxu0 %v15369_v16  ;;  %v15400_v16 = vld [vmem:[%s20084_s1 + $0x898] sm:$0xff]  }
  0xfa   : > { %13854 = vmatpush3.bf16.msra.mxu1 %v15368_v15  ;;  %v15399_v15 = vld [vmem:[%s20084_s1 + $0x8d8] sm:$0xff]  }
  0xfb   : > { %13855 = vmatprep.subr.bf16.mxu1 %v15371_v18  ;;  %v15402_v18 = vld [vmem:[%s20084_s1 + $0x820] sm:$0xff]  }
  0xfc   : > { %13834 = vmatpush3.bf16.msra.mxu0 %v15370_v17  ;;  %v15401_v17 = vld [vmem:[%s20084_s1 + $0x860] sm:$0xff]  }
  0xfd   : > { %13835 = vmatprep.subr.bf16.mxu0 %v15373_v22  ;;  %v15406_v22 = vld [vmem:[%s20084_s1 + $0x828] sm:$0xff]  }
  0xfe   : > { %v13533_v57 = vpop.f32.mrb[0].mxu0  ;;  %13856 = vmatpush3.bf16.msra.mxu1 %v15372_v19  ;;  %v15403_v19 = vld [vmem:[%s20084_s1 + $0x8e0] sm:$0xff]  }
  0xff   : > { %v13534_v59 = vpop.f32.mrb[1].mxu0  ;;  %13857 = vmatprep.subr.bf16.mxu1 %v15375_v26  ;;  %v15410_v26 = vld [vmem:[%s20084_s1 + $0x830] sm:$0xff]  }
 0x100   : > { %v13535_v61 = vadd.f32 %v13534_v59, %v13533_v57  ;;  %v13536_v62 = vpop.f32.mrb[2].mxu0  ;;  %v13555_v0 = vpop.f32.mrb[0].mxu1  ;;  %13836 = vmatpush3.bf16.msra.mxu0 %v15374_v24  ;;  %v15391_v59 = vld [vmem:[%s20084_s1 + $0x8c8] sm:$0xff]  }
 0x101   : > { %v13537_v2 = vpop.f32.mrb[3].mxu0  ;;  %v13556_v5 = vpop.f32.mrb[1].mxu1  ;;  %13837 = vmatprep.subr.bf16.mxu0 %v15377_v29  ;;  %v15408_v24 = vld [vmem:[%s20084_s1 + $0x8a8] sm:$0xff]   ;;  %v15413_v29 = vld [vmem:[%s20084_s1 + $0x878] sm:$0xff]  }
 0x102   : > { %v13538_v4 = vadd.f32 %v13537_v2, %v13536_v62  ;;  %v13557_v7 = vadd.f32 %v13556_v5, %v13555_v0  ;;  %v13558_v8 = vpop.f32.mrb[2].mxu1  ;;  %v9288_v21 = vadd.f32 %v13535_v61, %v12423_v20  ;;  %13858 = vmatpush3.bf16.msra.mxu1 %v15376_v28  ;;  %v15392_v61 = vld [vmem:[%s20084_s1 + $0x888] sm:$0xff]   ;;  %v15412_v28 = vld [vmem:[%s20084_s1 + $0x8b0] sm:$0xff]  }
 0x103   : > { %v13559_v10 = vpop.f32.mrb[3].mxu1  ;;  %13859 = vmatprep.subr.bf16.mxu1 %v15379_v31  ;;  %v15415_v31 = vld [vmem:[%s20084_s1 + $0x8f8] sm:$0xff]  }
 0x104   : > { %v13560_v12 = vadd.f32 %v13559_v10, %v13558_v8  ;;  %v9291_v23 = vadd.f32 %v13538_v4, %v12423_v20  ;;  %v9329_v25 = vadd.f32 %v13557_v7, %v9288_v21  ;;  %13838 = vmatpush3.bf16.msra.mxu0 %v15378_v30  ;;  %v15395_v7 = vld [vmem:[%s20084_s1 + $0x8d0] sm:$0xff]   ;;  %v15404_v20 = vld [vmem:[%s20084_s1 + $0x8a0] sm:$0xff]   ;;  %v15405_v21 = vld [vmem:[%s20084_s1 + $0x868] sm:$0xff]  }
 0x105   : > { %13839 = vmatprep.subr.bf16.mxu0 %v15381_v33  ;;  %v15414_v30 = vld [vmem:[%s20084_s1 + $0x838] sm:$0xff]  }
 0x106   : > { %v17163_v27 = vadd.f32 %v13560_v12, %v9291_v23  ;;  %13860 = vmatpush3.bf16.msra.mxu1 %v15380_v32  ;;  %v15397_v12 = vld [vmem:[%s20084_s1 + $0x858] sm:$0xff]   ;;  %v15407_v23 = vld [vmem:[%s20084_s1 + $0x8e8] sm:$0xff]  }
 0x107   : > { %13861 = vmatprep.subr.bf16.mxu1 %v15383_v35  ;;  %v342_v32 = vld [vmem:[%s16448_s26 + $0x108] sm:$0xff]  ;;  %v476_v33 = vld [vmem:[%s16448_s26 + $0x538] sm:$0xff] }
 0x108   : > { %13840 = vmatpush3.bf16.msra.mxu0 %v15382_v34  ;;  %v610_v34 = vpack.c.bf16 %v476_v33, %v342_v32  ;;  %v15416_v35 = vld [vmem:[%s20084_s1 + $0x8b8] sm:$0xff]   ;;  %v345_v32 = vld [vmem:[%s16448_s26 + $0x120] sm:$0xff]  ;;  %v479_v33 = vld [vmem:[%s16448_s26 + $0x550] sm:$0xff] }
 0x109   : > { %13869 = vmatprep.subr.bf16.mxu0 %v15385_v43  ;;  %v15418_v43 = vld [vmem:[%s20084_s1 + $0x900] sm:$0xff]  }
 0x10a   : > { %13862 = vmatpush3.bf16.msra.mxu1 %v15384_v39  ;;  %v15417_v39 = vld [vmem:[%s20084_s1 + $0x940] sm:$0xff]  }
 0x10b   : > { %9860 = vmatmul.mubr.bf16.vlgmr.msra.gmra.mrb[28].mxu0 %v605_v42  ;;  %13891 = vmatprep.subr.bf16.mxu1 %v15387_v51  ;;  %v612_v42 = vpack.c.bf16 %v478_v41, %v344_v40  ;;  %v347_v40 = vld [vmem:[%s16448_s26 + $0x130] sm:$0xff]  ;;  %v481_v41 = vld [vmem:[%s16448_s26 + $0x560] sm:$0xff] }
 0x10c   : > { %13870 = vmatpush3.bf16.msra.mxu0 %v15386_v47  ;;  %9941 = vmatprep.mubr.bf16.mxu0 %v610_v34  ;;  %v15419_v47 = vld [vmem:[%s20084_s1 + $0x9c0] sm:$0xff]   ;;  %v613_v34 = vpack.c.bf16 %v479_v33, %v345_v32  ;;  %v352_v32 = vld [vmem:[%s16448_s26 + $0x158] sm:$0xff]  ;;  %v486_v33 = vld [vmem:[%s16448_s26 + $0x588] sm:$0xff] }
 0x10d   : > { %9901 = vmatmul.mubr.bf16.vlgmr.msra.gmra.mrb[28].mxu1 %v607_v50  ;;  %13871 = vmatprep.subr.bf16.mxu0 %v15389_v54  ;;  %v15421_v50 = vld [vmem:[%s20084_s1 + $0x948] sm:$0xff]  }
 0x10e   : > { %13892 = vmatpush3.bf16.msra.mxu1 %v15388_v52  ;;  %9982 = vmatprep.mubr.bf16.mxu1 %v612_v42  ;;  %v15422_v52 = vld [vmem:[%s20084_s1 + $0x908] sm:$0xff]   ;;  %v615_v42 = vpack.c.bf16 %v481_v41, %v347_v40  ;;  %v15484_v40 = vld [vmem:[%s20084_s1 + $0xb80] sm:$0xff]  }
 0x10f   : > { %13893 = vmatprep.subr.bf16.mxu1 %v15391_v59 }
 0x110   : > { %13872 = vmatpush3.bf16.msra.mxu0 %v15390_v56 }
 0x111   : > { %13873 = vmatprep.subr.bf16.mxu0 %v15393_v1 }
 0x112   : > { %13894 = vmatpush3.bf16.msra.mxu1 %v15392_v61 }
 0x113   : > { %13895 = vmatprep.subr.bf16.mxu1 %v15395_v7 }
 0x114   : > { %13874 = vmatpush3.bf16.msra.mxu0 %v15394_v3 }
 0x115   : > { %13875 = vmatprep.subr.bf16.mxu0 %v15397_v12  ;;  %v15432_v12 = vld [vmem:[%s20084_s1 + $0x998] sm:$0xff]  }
 0x116   : > { %13896 = vmatpush3.bf16.msra.mxu1 %v15396_v9  ;;  %v15430_v9 = vld [vmem:[%s20084_s1 + $0x918] sm:$0xff]  }
 0x117   : > { %13897 = vmatprep.subr.bf16.mxu1 %v15399_v15  ;;  %v15435_v15 = vld [vmem:[%s20084_s1 + $0x9e0] sm:$0xff]  }
 0x118   : > { %13876 = vmatpush3.bf16.msra.mxu0 %v15398_v13  ;;  %v15433_v13 = vld [vmem:[%s20084_s1 + $0x960] sm:$0xff]  }
 0x119   : > { %13877 = vmatprep.subr.bf16.mxu0 %v15401_v17  ;;  %v15437_v17 = vld [vmem:[%s20084_s1 + $0x968] sm:$0xff]  }
 0x11a   : > { %13898 = vmatpush3.bf16.msra.mxu1 %v15400_v16  ;;  %v15436_v16 = vld [vmem:[%s20084_s1 + $0x9a0] sm:$0xff]  }
 0x11b   : > { %13899 = vmatprep.subr.bf16.mxu1 %v15403_v19  ;;  %v15439_v19 = vld [vmem:[%s20084_s1 + $0x9e8] sm:$0xff]  }
 0x11c   : > { %13878 = vmatpush3.bf16.msra.mxu0 %v15402_v18  ;;  %v15438_v18 = vld [vmem:[%s20084_s1 + $0x928] sm:$0xff]  }
 0x11d   : > { %13879 = vmatprep.subr.bf16.mxu0 %v15405_v21  ;;  %v15441_v21 = vld [vmem:[%s20084_s1 + $0x970] sm:$0xff]  }
 0x11e   : > { %v13577_v53 = vpop.f32.mrb[4].mxu0  ;;  %13900 = vmatpush3.bf16.msra.mxu1 %v15404_v20  ;;  %v15440_v20 = vld [vmem:[%s20084_s1 + $0x9a8] sm:$0xff]  }
 0x11f   : > { %v13578_v55 = vpop.f32.mrb[5].mxu0  ;;  %13901 = vmatprep.subr.bf16.mxu1 %v15407_v23  ;;  %v15443_v23 = vld [vmem:[%s20084_s1 + $0x9f0] sm:$0xff]  }
 0x120   : > { %v13579_v57 = vadd.f32 %v13578_v55, %v13577_v53  ;;  %v13580_v58 = vpop.f32.mrb[6].mxu0  ;;  %v13599_v63 = vpop.f32.mrb[4].mxu1  ;;  %13880 = vmatpush3.bf16.msra.mxu0 %v15406_v22  ;;  %v15423_v55 = vld [vmem:[%s20084_s1 + $0x9c8] sm:$0xff]   ;;  %v15442_v22 = vld [vmem:[%s20084_s1 + $0x930] sm:$0xff]  }
 0x121   : > { %v13581_v60 = vpop.f32.mrb[7].mxu0  ;;  %v13600_v2 = vpop.f32.mrb[5].mxu1 }
 0x122   : > { %v9370_v62 = vadd.f32 %v13579_v57, %v9329_v25  ;;  %v13582_v0 = vadd.f32 %v13581_v60, %v13580_v58  ;;  %v13601_v5 = vadd.f32 %v13600_v2, %v13599_v63  ;;  %v13602_v6 = vpop.f32.mrb[6].mxu1  ;;  %v15409_v25 = vld [vmem:[%s20084_s1 + $0x870] sm:$0xff]   ;;  %13902 = vmatpush3.bf16.msra.mxu1 %v15408_v24  ;;  %v15424_v57 = vld [vmem:[%s20084_s1 + $0x988] sm:$0xff]  }
 0x123   : > { %v13603_v8 = vpop.f32.mrb[7].mxu1  ;;  %13881 = vmatprep.subr.bf16.mxu0 %v15409_v25  ;;  %v15425_v60 = vld [vmem:[%s20084_s1 + $0x950] sm:$0xff]   ;;  %v15445_v25 = vld [vmem:[%s20084_s1 + $0x978] sm:$0xff]  }
 0x124   : > { %v9373_v4 = vadd.f32 %v13582_v0, %v17163_v27  ;;  %v17237_v10 = vadd.f32 %v13601_v5, %v9370_v62  ;;  %v13604_v11 = vadd.f32 %v13603_v8, %v13602_v6  ;;  %v15411_v27 = vld [vmem:[%s20084_s1 + $0x8f0] sm:$0xff]   ;;  %13882 = vmatpush3.bf16.msra.mxu0 %v15410_v26  ;;  %v15429_v8 = vld [vmem:[%s20084_s1 + $0x958] sm:$0xff]  }
 0x125   : > { %13903 = vmatprep.subr.bf16.mxu1 %v15411_v27  ;;  %13883 = vmatprep.subr.bf16.mxu0 %v15413_v29  ;;  %v15426_v63 = vld [vmem:[%s20084_s1 + $0x910] sm:$0xff]   ;;  %v15446_v26 = vld [vmem:[%s20084_s1 + $0x938] sm:$0xff]  }
 0x126   : > { %v17245_v14 = vadd.f32 %v13604_v11, %v9373_v4  ;;  %13904 = vmatpush3.bf16.msra.mxu1 %v15412_v28  ;;  %v15427_v2 = vld [vmem:[%s20084_s1 + $0x9d0] sm:$0xff]   ;;  %v15431_v11 = vld [vmem:[%s20084_s1 + $0x9d8] sm:$0xff]   ;;  %v346_v28 = vld [vmem:[%s16448_s26 + $0x128] sm:$0xff] }
 0x127   : > { %13905 = vmatprep.subr.bf16.mxu1 %v15415_v31  ;;  %v15428_v5 = vld [vmem:[%s20084_s1 + $0x990] sm:$0xff]   ;;  %v15447_v27 = vld [vmem:[%s20084_s1 + $0x9f8] sm:$0xff]  }
 0x128   : > { %13884 = vmatpush3.bf16.msra.mxu0 %v15414_v30  ;;  %v15444_v24 = vld [vmem:[%s20084_s1 + $0x9b0] sm:$0xff]   ;;  %v480_v29 = vld [vmem:[%s16448_s26 + $0x558] sm:$0xff] }
 0x129   : > { %13913 = vmatprep.subr.bf16.mxu0 %v15417_v39  ;;  %v614_v30 = vpack.c.bf16 %v480_v29, %v346_v28  ;;  %v15448_v31 = vld [vmem:[%s20084_s1 + $0x9b8] sm:$0xff]   ;;  %v15450_v39 = vld [vmem:[%s20084_s1 + $0xa00] sm:$0xff]   ;;  %v483_v29 = vld [vmem:[%s16448_s26 + $0x570] sm:$0xff] }
 0x12a   : > { %13906 = vmatpush3.bf16.msra.mxu1 %v15416_v35  ;;  %v15449_v35 = vld [vmem:[%s20084_s1 + $0xa40] sm:$0xff]  }
 0x12b   : > { %9942 = vmatmul.mubr.bf16.vlgmr.msra.gmra.mrb[32].mxu0 %v609_v38  ;;  %13935 = vmatprep.subr.bf16.mxu1 %v15419_v47  ;;  %v616_v38 = vpack.c.bf16 %v482_v37, %v348_v36  ;;  %v15454_v47 = vld [vmem:[%s20084_s1 + $0xa08] sm:$0xff]   ;;  %v349_v28 = vld [vmem:[%s16448_s26 + $0x140] sm:$0xff]  ;;  %v351_v36 = vld [vmem:[%s16448_s26 + $0x150] sm:$0xff] }
 0x12c   : > { %13914 = vmatpush3.bf16.msra.mxu0 %v15418_v43  ;;  %10023 = vmatprep.mubr.bf16.mxu0 %v614_v30  ;;  %v15451_v43 = vld [vmem:[%s20084_s1 + $0xac0] sm:$0xff]   ;;  %v617_v30 = vpack.c.bf16 %v483_v29, %v349_v28  ;;  %v356_v28 = vld [vmem:[%s16448_s26 + $0x178] sm:$0xff]  ;;  %v490_v29 = vld [vmem:[%s16448_s26 + $0x5a8] sm:$0xff] }
 0x12d   : > { %9983 = vmatmul.mubr.bf16.vlgmr.msra.gmra.mrb[32].mxu1 %v611_v46  ;;  %13915 = vmatprep.subr.bf16.mxu0 %v15421_v50  ;;  %v485_v37 = vld [vmem:[%s16448_s26 + $0x580] sm:$0xff] }
 0x12e   : > { %13936 = vmatpush3.bf16.msra.mxu1 %v15420_v48  ;;  %10064 = vmatprep.mubr.bf16.mxu1 %v616_v38  ;;  %v619_v38 = vpack.c.bf16 %v485_v37, %v351_v36  ;;  %v15516_v36 = vld [vmem:[%s20084_s1 + $0xc80] sm:$0xff]  }
 0x12f   : > { %13937 = vmatprep.subr.bf16.mxu1 %v15423_v55 }
 0x130   : > { %13916 = vmatpush3.bf16.msra.mxu0 %v15422_v52  ;;  %v15456_v52 = vld [vmem:[%s20084_s1 + $0xa88] sm:$0xff]  }
 0x131   : > { %13917 = vmatprep.subr.bf16.mxu0 %v15425_v60  ;;  %v15459_v60 = vld [vmem:[%s20084_s1 + $0xad0] sm:$0xff]  }
 0x132   : > { %13938 = vmatpush3.bf16.msra.mxu1 %v15424_v57  ;;  %v15458_v57 = vld [vmem:[%s20084_s1 + $0xa10] sm:$0xff]  }
 0x133   : > { %13939 = vmatprep.subr.bf16.mxu1 %v15427_v2  ;;  %v15461_v2 = vld [vmem:[%s20084_s1 + $0xa58] sm:$0xff]  }
 0x134   : > { %13918 = vmatpush3.bf16.msra.mxu0 %v15426_v63  ;;  %v15460_v63 = vld [vmem:[%s20084_s1 + $0xa90] sm:$0xff]  }
 0x135   : > { %13919 = vmatprep.subr.bf16.mxu0 %v15429_v8  ;;  %v15464_v8 = vld [vmem:[%s20084_s1 + $0xa98] sm:$0xff]  }
 0x136   : > { %13940 = vmatpush3.bf16.msra.mxu1 %v15428_v5  ;;  %v15462_v5 = vld [vmem:[%s20084_s1 + $0xa18] sm:$0xff]  }
 0x137   : > { %13941 = vmatprep.subr.bf16.mxu1 %v15431_v11  ;;  %v15467_v11 = vld [vmem:[%s20084_s1 + $0xae0] sm:$0xff]  }
 0x138   : > { %13920 = vmatpush3.bf16.msra.mxu0 %v15430_v9  ;;  %v15465_v9 = vld [vmem:[%s20084_s1 + $0xa60] sm:$0xff]  }
 0x139   : > { %13921 = vmatprep.subr.bf16.mxu0 %v15433_v13  ;;  %v15469_v13 = vld [vmem:[%s20084_s1 + $0xa68] sm:$0xff]  }
 0x13a   : > { %13942 = vmatpush3.bf16.msra.mxu1 %v15432_v12  ;;  %v15468_v12 = vld [vmem:[%s20084_s1 + $0xaa0] sm:$0xff]  }
 0x13b   : > { %13943 = vmatprep.subr.bf16.mxu1 %v15435_v15  ;;  %v15471_v15 = vld [vmem:[%s20084_s1 + $0xae8] sm:$0xff]  }
 0x13e   : > { %v13621_v49 = vpop.f32.mrb[8].mxu0  ;;  %13944 = vmatpush3.bf16.msra.mxu1 %v15436_v16  ;;  %v15472_v16 = vld [vmem:[%s20084_s1 + $0xaa8] sm:$0xff]  }
 0x13f   : > { %v13622_v51 = vpop.f32.mrb[9].mxu0  ;;  %13945 = vmatprep.subr.bf16.mxu1 %v15439_v19  ;;  %v15475_v19 = vld [vmem:[%s20084_s1 + $0xaf0] sm:$0xff]  }
 0x140   : > { %v13623_v53 = vadd.f32 %v13622_v51, %v13621_v49  ;;  %v13624_v54 = vpop.f32.mrb[10].mxu0  ;;  %v13643_v56 = vpop.f32.mrb[8].mxu1  ;;  %v15455_v49 = vld [vmem:[%s20084_s1 + $0xac8] sm:$0xff]  }
 0x141   : > { %v13625_v59 = vpop.f32.mrb[11].mxu0  ;;  %v13644_v62 = vpop.f32.mrb[9].mxu1 }
 0x142   : > { %v9452_v58 = vadd.f32 %v13623_v53, %v17237_v10  ;;  %v13626_v61 = vadd.f32 %v13625_v59, %v13624_v54  ;;  %v13645_v0 = vadd.f32 %v13644_v62, %v13643_v56  ;;  %v13646_v1 = vpop.f32.mrb[10].mxu1  ;;  %13946 = vmatpush3.bf16.msra.mxu1 %v15440_v20  ;;  %v15457_v54 = vld [vmem:[%s20084_s1 + $0xa50] sm:$0xff]  }
 0x143   : > { %v13647_v4 = vpop.f32.mrb[11].mxu1  ;;  %13947 = vmatprep.subr.bf16.mxu1 %v15443_v23  ;;  %v15476_v20 = vld [vmem:[%s20084_s1 + $0xab0] sm:$0xff]   ;;  %v15479_v23 = vld [vmem:[%s20084_s1 + $0xaf8] sm:$0xff]  }
 0x144   : > { %v9455_v3 = vadd.f32 %v13626_v61, %v17245_v14  ;;  %v17347_v6 = vadd.f32 %v13645_v0, %v9452_v58  ;;  %v13648_v7 = vadd.f32 %v13647_v4, %v13646_v1  ;;  %v15434_v14 = vld [vmem:[%s20084_s1 + $0x920] sm:$0xff]  }
 0x145   : > { %13922 = vmatpush3.bf16.msra.mxu0 %v15434_v14  ;;  %v15470_v14 = vld [vmem:[%s20084_s1 + $0xa28] sm:$0xff]  }
 0x146   : > { %v17355_v10 = vadd.f32 %v13648_v7, %v9455_v3  ;;  %13923 = vmatprep.subr.bf16.mxu0 %v15437_v17  ;;  %13948 = vmatpush3.bf16.msra.mxu1 %v15444_v24  ;;  %v15473_v17 = vld [vmem:[%s20084_s1 + $0xa70] sm:$0xff]   ;;  %v350_v24 = vld [vmem:[%s16448_s26 + $0x148] sm:$0xff] }
 0x147   : > { %13949 = vmatprep.subr.bf16.mxu1 %v15447_v27  ;;  %v15480_v27 = vld [vmem:[%s20084_s1 + $0xab8] sm:$0xff]  }
 0x149   : > { %13924 = vmatpush3.bf16.msra.mxu0 %v15438_v18  ;;  %v15474_v18 = vld [vmem:[%s20084_s1 + $0xa30] sm:$0xff]  }
 0x14a   : > { %13925 = vmatprep.subr.bf16.mxu0 %v15441_v21  ;;  %13950 = vmatpush3.bf16.msra.mxu1 %v15448_v31  ;;  %v15477_v21 = vld [vmem:[%s20084_s1 + $0xa78] sm:$0xff]   ;;  %v15481_v31 = vld [vmem:[%s20084_s1 + $0xb40] sm:$0xff]  }
 0x14b   : > { %13979 = vmatprep.subr.bf16.mxu1 %v15451_v43 }
 0x14d   : > { %13926 = vmatpush3.bf16.msra.mxu0 %v15442_v22  ;;  %10065 = vmatmul.mubr.bf16.vlgmr.msra.gmra.mrb[36].mxu1 %v615_v42  ;;  %v15478_v22 = vld [vmem:[%s20084_s1 + $0xa38] sm:$0xff]   ;;  %v15485_v42 = vld [vmem:[%s20084_s1 + $0xb48] sm:$0xff]  }
 0x14e   : > { %13927 = vmatprep.subr.bf16.mxu0 %v15445_v25  ;;  %13980 = vmatpush3.bf16.msra.mxu1 %v15452_v44  ;;  %v484_v25 = vld [vmem:[%s16448_s26 + $0x578] sm:$0xff]  ;;  %v15486_v44 = vld [vmem:[%s20084_s1 + $0xb08] sm:$0xff]  }
 0x14f   : > { %13981 = vmatprep.subr.bf16.mxu1 %v15455_v49  ;;  %v15488_v49 = vld [vmem:[%s20084_s1 + $0xb88] sm:$0xff]  }
 0x151   : > { %13928 = vmatpush3.bf16.msra.mxu0 %v15446_v26  ;;  %v618_v26 = vpack.c.bf16 %v484_v25, %v350_v24  ;;  %v353_v24 = vld [vmem:[%s16448_s26 + $0x160] sm:$0xff]  ;;  %v487_v25 = vld [vmem:[%s16448_s26 + $0x590] sm:$0xff] }
 0x152   : > { %13957 = vmatprep.subr.bf16.mxu0 %v15449_v35  ;;  %13982 = vmatpush3.bf16.msra.mxu1 %v15456_v52  ;;  %v15482_v35 = vld [vmem:[%s20084_s1 + $0xb00] sm:$0xff]  }
 0x153   : > { %13983 = vmatprep.subr.bf16.mxu1 %v15459_v60 }
 0x154   : > { %10024 = vmatmul.mubr.bf16.vlgmr.msra.gmra.mrb[36].mxu0 %v613_v34  ;;  %v620_v34 = vpack.c.bf16 %v486_v33, %v352_v32  ;;  %v355_v32 = vld [vmem:[%s16448_s26 + $0x170] sm:$0xff]  ;;  %v489_v33 = vld [vmem:[%s16448_s26 + $0x5a0] sm:$0xff] }
 0x155   : > { %13958 = vmatpush3.bf16.msra.mxu0 %v15450_v39  ;;  %10105 = vmatprep.mubr.bf16.mxu0 %v618_v26  ;;  %v15483_v39 = vld [vmem:[%s20084_s1 + $0xbc0] sm:$0xff]   ;;  %v621_v26 = vpack.c.bf16 %v487_v25, %v353_v24  ;;  %v360_v24 = vld [vmem:[%s16448_s26 + $0x198] sm:$0xff]  ;;  %v494_v25 = vld [vmem:[%s16448_s26 + $0x5c8] sm:$0xff] }
 0x156   : > { %13959 = vmatprep.subr.bf16.mxu0 %v15453_v45  ;;  %13984 = vmatpush3.bf16.msra.mxu1 %v15460_v63 }
 0x157   : > { %10146 = vmatprep.mubr.bf16.mxu1 %v620_v34  ;;  %v623_v34 = vpack.c.bf16 %v489_v33, %v355_v32  ;;  %v15548_v32 = vld [vmem:[%s20084_s1 + $0xd80] sm:$0xff]   ;;  %v15549_v33 = vld [vmem:[%s20084_s1 + $0xd48] sm:$0xff]  }
 0x159   : > { %13960 = vmatpush3.bf16.msra.mxu0 %v15454_v47  ;;  %v15487_v47 = vld [vmem:[%s20084_s1 + $0xbc8] sm:$0xff]  }
 0x15a   : > { %13961 = vmatprep.subr.bf16.mxu0 %v15457_v54 }
 0x15d   : > { %13962 = vmatpush3.bf16.msra.mxu0 %v15458_v57 }
 0x15e   : > { %v13665_v46 = vpop.f32.mrb[12].mxu0  ;;  %13963 = vmatprep.subr.bf16.mxu0 %v15461_v2 }
 0x15f   : > { %v13666_v48 = vpop.f32.mrb[13].mxu0 }
 0x160   : > { %v13667_v50 = vadd.f32 %v13666_v48, %v13665_v46  ;;  %v13668_v51 = vpop.f32.mrb[14].mxu0  ;;  %v13687_v53 = vpop.f32.mrb[12].mxu1 }
 0x161   : > { %v13669_v56 = vpop.f32.mrb[15].mxu0  ;;  %v13688_v59 = vpop.f32.mrb[13].mxu1  ;;  %13964 = vmatpush3.bf16.msra.mxu0 %v15462_v5  ;;  %v15497_v5 = vld [vmem:[%s20084_s1 + $0xb60] sm:$0xff]  }
 0x162   : > { %v9534_v55 = vadd.f32 %v13667_v50, %v17347_v6  ;;  %v13670_v58 = vadd.f32 %v13669_v56, %v13668_v51  ;;  %v13689_v61 = vadd.f32 %v13688_v59, %v13687_v53  ;;  %v13690_v62 = vpop.f32.mrb[14].mxu1  ;;  %v15463_v6 = vld [vmem:[%s20084_s1 + $0xad8] sm:$0xff]   ;;  %13965 = vmatprep.subr.bf16.mxu0 %v15465_v9  ;;  %v15489_v53 = vld [vmem:[%s20084_s1 + $0xb50] sm:$0xff]   ;;  %v15501_v9 = vld [vmem:[%s20084_s1 + $0xb68] sm:$0xff]  }
 0x163   : > { %v13691_v1 = vpop.f32.mrb[15].mxu1  ;;  %13985 = vmatprep.subr.bf16.mxu1 %v15463_v6  ;;  %v15491_v59 = vld [vmem:[%s20084_s1 + $0xbd0] sm:$0xff]   ;;  %v15498_v6 = vld [vmem:[%s20084_s1 + $0xb20] sm:$0xff]  }
 0x164   : > { %v9537_v0 = vadd.f32 %v13670_v58, %v17355_v10  ;;  %v17460_v3 = vadd.f32 %v13689_v61, %v9534_v55  ;;  %v13692_v4 = vadd.f32 %v13691_v1, %v13690_v62  ;;  %13986 = vmatpush3.bf16.msra.mxu1 %v15464_v8  ;;  %v15466_v10 = vld [vmem:[%s20084_s1 + $0xa20] sm:$0xff]   ;;  %v15490_v55 = vld [vmem:[%s20084_s1 + $0xb10] sm:$0xff]   ;;  %v15494_v1 = vld [vmem:[%s20084_s1 + $0xb18] sm:$0xff]  }
 0x165   : > { %13966 = vmatpush3.bf16.msra.mxu0 %v15466_v10  ;;  %13987 = vmatprep.subr.bf16.mxu1 %v15467_v11  ;;  %v15492_v61 = vld [vmem:[%s20084_s1 + $0xb90] sm:$0xff]   ;;  %v15500_v8 = vld [vmem:[%s20084_s1 + $0xba0] sm:$0xff]   ;;  %v15502_v10 = vld [vmem:[%s20084_s1 + $0xb28] sm:$0xff]  }
 0x166   : > { %v17468_v7 = vadd.f32 %v13692_v4, %v9537_v0  ;;  %13967 = vmatprep.subr.bf16.mxu0 %v15469_v13  ;;  %v15493_v0 = vld [vmem:[%s20084_s1 + $0xb58] sm:$0xff]   ;;  %v15503_v11 = vld [vmem:[%s20084_s1 + $0xbe8] sm:$0xff]   ;;  %v15505_v13 = vld [vmem:[%s20084_s1 + $0xb70] sm:$0xff]  }
 0x167   : > { %v15496_v4 = vld [vmem:[%s20084_s1 + $0xb98] sm:$0xff]  }
 0x168   : > { %13988 = vmatpush3.bf16.msra.mxu1 %v15468_v12  ;;  %v15504_v12 = vld [vmem:[%s20084_s1 + $0xba8] sm:$0xff]  }
 0x169   : > { %13968 = vmatpush3.bf16.msra.mxu0 %v15470_v14  ;;  %13989 = vmatprep.subr.bf16.mxu1 %v15471_v15  ;;  %v15506_v14 = vld [vmem:[%s20084_s1 + $0xb30] sm:$0xff]  }
 0x16a   : > { %13969 = vmatprep.subr.bf16.mxu0 %v15473_v17  ;;  %v15507_v15 = vld [vmem:[%s20084_s1 + $0xbf0] sm:$0xff]   ;;  %v15509_v17 = vld [vmem:[%s20084_s1 + $0xb78] sm:$0xff]  }
 0x16c   : > { %13990 = vmatpush3.bf16.msra.mxu1 %v15472_v16  ;;  %v15508_v16 = vld [vmem:[%s20084_s1 + $0xbb0] sm:$0xff]  }
 0x16d   : > { %13970 = vmatpush3.bf16.msra.mxu0 %v15474_v18  ;;  %13991 = vmatprep.subr.bf16.mxu1 %v15475_v19  ;;  %v15510_v18 = vld [vmem:[%s20084_s1 + $0xb38] sm:$0xff]  }
 0x16e   : > { %13971 = vmatprep.subr.bf16.mxu0 %v15477_v21  ;;  %v15511_v19 = vld [vmem:[%s20084_s1 + $0xbf8] sm:$0xff]  }
 0x16f   : > { %v488_v21 = vld [vmem:[%s16448_s26 + $0x598] sm:$0xff] }
 0x170   : > { %13992 = vmatpush3.bf16.msra.mxu1 %v15476_v20  ;;  %v354_v20 = vld [vmem:[%s16448_s26 + $0x168] sm:$0xff] }
 0x171   : > { %13972 = vmatpush3.bf16.msra.mxu0 %v15478_v22  ;;  %13993 = vmatprep.subr.bf16.mxu1 %v15479_v23  ;;  %v622_v22 = vpack.c.bf16 %v488_v21, %v354_v20  ;;  %v15512_v23 = vld [vmem:[%s20084_s1 + $0xbb8] sm:$0xff]   ;;  %v357_v20 = vld [vmem:[%s16448_s26 + $0x180] sm:$0xff]  ;;  %v491_v21 = vld [vmem:[%s16448_s26 + $0x5b0] sm:$0xff] }
 0x172   : > { %14001 = vmatprep.subr.bf16.mxu0 %v15481_v31  ;;  %v15514_v31 = vld [vmem:[%s20084_s1 + $0xc00] sm:$0xff]  }
 0x174   : > { %13994 = vmatpush3.bf16.msra.mxu1 %v15480_v27  ;;  %10106 = vmatmul.mubr.bf16.vlgmr.msra.gmra.mrb[40].mxu0 %v617_v30  ;;  %v15513_v27 = vld [vmem:[%s20084_s1 + $0xc40] sm:$0xff]   ;;  %v624_v30 = vpack.c.bf16 %v490_v29, %v356_v28  ;;  %v359_v28 = vld [vmem:[%s16448_s26 + $0x190] sm:$0xff] }
 0x175   : > { %14002 = vmatpush3.bf16.msra.mxu0 %v15482_v35  ;;  %14023 = vmatprep.subr.bf16.mxu1 %v15483_v39  ;;  %v15515_v35 = vld [vmem:[%s20084_s1 + $0xcc0] sm:$0xff]  }
 0x176   : > { %14003 = vmatprep.subr.bf16.mxu0 %v15485_v42  ;;  %10187 = vmatprep.mubr.bf16.mxu0 %v622_v22  ;;  %v625_v22 = vpack.c.bf16 %v491_v21, %v357_v20  ;;  %v493_v29 = vld [vmem:[%s16448_s26 + $0x5c0] sm:$0xff]  ;;  %v364_v20 = vld [vmem:[%s16448_s26 + $0x1b8] sm:$0xff]  ;;  %v498_v21 = vld [vmem:[%s16448_s26 + $0x5e8] sm:$0xff] }
 0x177   : > { %10147 = vmatmul.mubr.bf16.vlgmr.msra.gmra.mrb[40].mxu1 %v619_v38  ;;  %v15517_v38 = vld [vmem:[%s20084_s1 + $0xc48] sm:$0xff]  }
 0x178   : > { %14024 = vmatpush3.bf16.msra.mxu1 %v15484_v40  ;;  %10228 = vmatprep.mubr.bf16.mxu1 %v624_v30  ;;  %v15518_v40 = vld [vmem:[%s20084_s1 + $0xc08] sm:$0xff]   ;;  %v627_v30 = vpack.c.bf16 %v493_v29, %v359_v28  ;;  %v15580_v28 = vld [vmem:[%s20084_s1 + $0xe80] sm:$0xff]  }
 0x179   : > { %14004 = vmatpush3.bf16.msra.mxu0 %v15486_v44  ;;  %14025 = vmatprep.subr.bf16.mxu1 %v15487_v47  ;;  %v15581_v29 = vld [vmem:[%s20084_s1 + $0xe48] sm:$0xff]  }
 0x17a   : > { %14005 = vmatprep.subr.bf16.mxu0 %v15489_v53 }
 0x17c   : > { %14026 = vmatpush3.bf16.msra.mxu1 %v15488_v49 }
 0x17d   : > { %14006 = vmatpush3.bf16.msra.mxu0 %v15490_v55  ;;  %14027 = vmatprep.subr.bf16.mxu1 %v15491_v59 }
 0x17e   : > { %v13709_v41 = vpop.f32.mrb[16].mxu0  ;;  %14007 = vmatprep.subr.bf16.mxu0 %v15493_v0  ;;  %v15528_v0 = vld [vmem:[%s20084_s1 + $0xc98] sm:$0xff]  }
 0x17f   : > { %v13710_v43 = vpop.f32.mrb[17].mxu0 }
 0x180   : > { %v13711_v45 = vadd.f32 %v13710_v43, %v13709_v41  ;;  %v13712_v46 = vpop.f32.mrb[18].mxu0  ;;  %v13731_v51 = vpop.f32.mrb[16].mxu1  ;;  %14028 = vmatpush3.bf16.msra.mxu1 %v15492_v61  ;;  %v15519_v43 = vld [vmem:[%s20084_s1 + $0xcc8] sm:$0xff]   ;;  %v15526_v61 = vld [vmem:[%s20084_s1 + $0xc18] sm:$0xff]  }
 0x181   : > { %v13713_v48 = vpop.f32.mrb[19].mxu0  ;;  %v13732_v54 = vpop.f32.mrb[17].mxu1  ;;  %14008 = vmatpush3.bf16.msra.mxu0 %v15494_v1  ;;  %v15529_v1 = vld [vmem:[%s20084_s1 + $0xc60] sm:$0xff]  }
 0x182   : > { %v9616_v50 = vadd.f32 %v13711_v45, %v17460_v3  ;;  %v13714_v52 = vadd.f32 %v13713_v48, %v13712_v46  ;;  %v13733_v57 = vadd.f32 %v13732_v54, %v13731_v51  ;;  %v13734_v58 = vpop.f32.mrb[18].mxu1  ;;  %v15495_v3 = vld [vmem:[%s20084_s1 + $0xbd8] sm:$0xff]   ;;  %14009 = vmatprep.subr.bf16.mxu0 %v15497_v5  ;;  %v15520_v45 = vld [vmem:[%s20084_s1 + $0xc88] sm:$0xff]   ;;  %v15521_v48 = vld [vmem:[%s20084_s1 + $0xc50] sm:$0xff]  }
 0x183   : > { %v13735_v60 = vpop.f32.mrb[19].mxu1  ;;  %14029 = vmatprep.subr.bf16.mxu1 %v15495_v3  ;;  %v15522_v51 = vld [vmem:[%s20084_s1 + $0xc10] sm:$0xff]   ;;  %v15531_v3 = vld [vmem:[%s20084_s1 + $0xce0] sm:$0xff]   ;;  %v15533_v5 = vld [vmem:[%s20084_s1 + $0xc68] sm:$0xff]  }
 0x184   : > { %v9619_v56 = vadd.f32 %v13714_v52, %v17468_v7  ;;  %v17567_v62 = vadd.f32 %v13733_v57, %v9616_v50  ;;  %v13736_v63 = vadd.f32 %v13735_v60, %v13734_v58  ;;  %14030 = vmatpush3.bf16.msra.mxu1 %v15496_v4  ;;  %v15499_v7 = vld [vmem:[%s20084_s1 + $0xbe0] sm:$0xff]   ;;  %v15523_v54 = vld [vmem:[%s20084_s1 + $0xcd0] sm:$0xff]   ;;  %v15525_v60 = vld [vmem:[%s20084_s1 + $0xc58] sm:$0xff]  }
 0x185   : > { %14010 = vmatpush3.bf16.msra.mxu0 %v15498_v6  ;;  %14031 = vmatprep.subr.bf16.mxu1 %v15499_v7  ;;  %v15524_v57 = vld [vmem:[%s20084_s1 + $0xc90] sm:$0xff]   ;;  %v15532_v4 = vld [vmem:[%s20084_s1 + $0xca0] sm:$0xff]   ;;  %v15534_v6 = vld [vmem:[%s20084_s1 + $0xc28] sm:$0xff]  }
 0x186   : > { %v17575_v2 = vadd.f32 %v13736_v63, %v9619_v56  ;;  %14011 = vmatprep.subr.bf16.mxu0 %v15501_v9  ;;  %v15527_v63 = vld [vmem:[%s20084_s1 + $0xcd8] sm:$0xff]   ;;  %v15535_v7 = vld [vmem:[%s20084_s1 + $0xce8] sm:$0xff]   ;;  %v15537_v9 = vld [vmem:[%s20084_s1 + $0xc70] sm:$0xff]  }
 0x188   : > { %14032 = vmatpush3.bf16.msra.mxu1 %v15500_v8  ;;  %v15536_v8 = vld [vmem:[%s20084_s1 + $0xca8] sm:$0xff]  }
 0x189   : > { %14012 = vmatpush3.bf16.msra.mxu0 %v15502_v10  ;;  %14033 = vmatprep.subr.bf16.mxu1 %v15503_v11  ;;  %v15538_v10 = vld [vmem:[%s20084_s1 + $0xc30] sm:$0xff]  }
 0x18a   : > { %14013 = vmatprep.subr.bf16.mxu0 %v15505_v13  ;;  %v15539_v11 = vld [vmem:[%s20084_s1 + $0xcf0] sm:$0xff]   ;;  %v15541_v13 = vld [vmem:[%s20084_s1 + $0xc78] sm:$0xff]  }
 0x18c   : > { %14034 = vmatpush3.bf16.msra.mxu1 %v15504_v12  ;;  %v15540_v12 = vld [vmem:[%s20084_s1 + $0xcb0] sm:$0xff]  }
 0x18d   : > { %14014 = vmatpush3.bf16.msra.mxu0 %v15506_v14  ;;  %14035 = vmatprep.subr.bf16.mxu1 %v15507_v15  ;;  %v15542_v14 = vld [vmem:[%s20084_s1 + $0xc38] sm:$0xff]  }
 0x18e   : > { %14015 = vmatprep.subr.bf16.mxu0 %v15509_v17  ;;  %v15543_v15 = vld [vmem:[%s20084_s1 + $0xcf8] sm:$0xff]  }
 0x18f   : > { %v492_v17 = vld [vmem:[%s16448_s26 + $0x5b8] sm:$0xff] }
 0x190   : > { %14036 = vmatpush3.bf16.msra.mxu1 %v15508_v16  ;;  %v358_v16 = vld [vmem:[%s16448_s26 + $0x188] sm:$0xff] }
 0x191   : > { %14016 = vmatpush3.bf16.msra.mxu0 %v15510_v18  ;;  %14037 = vmatprep.subr.bf16.mxu1 %v15511_v19  ;;  %v626_v18 = vpack.c.bf16 %v492_v17, %v358_v16  ;;  %v15544_v19 = vld [vmem:[%s20084_s1 + $0xcb8] sm:$0xff]   ;;  %v361_v16 = vld [vmem:[%s16448_s26 + $0x1a0] sm:$0xff]  ;;  %v495_v17 = vld [vmem:[%s16448_s26 + $0x5d0] sm:$0xff] }
 0x192   : > { %14045 = vmatprep.subr.bf16.mxu0 %v15513_v27  ;;  %v15546_v27 = vld [vmem:[%s20084_s1 + $0xd00] sm:$0xff]  }
 0x194   : > { %14038 = vmatpush3.bf16.msra.mxu1 %v15512_v23  ;;  %10188 = vmatmul.mubr.bf16.vlgmr.msra.gmra.mrb[44].mxu0 %v621_v26  ;;  %v15545_v23 = vld [vmem:[%s20084_s1 + $0xd40] sm:$0xff]   ;;  %v628_v26 = vpack.c.bf16 %v494_v25, %v360_v24  ;;  %v363_v24 = vld [vmem:[%s16448_s26 + $0x1b0] sm:$0xff] }
 0x195   : > { %14046 = vmatpush3.bf16.msra.mxu0 %v15514_v31  ;;  %14067 = vmatprep.subr.bf16.mxu1 %v15515_v35  ;;  %v15547_v31 = vld [vmem:[%s20084_s1 + $0xdc0] sm:$0xff]   ;;  %v15550_v35 = vld [vmem:[%s20084_s1 + $0xd08] sm:$0xff]  }
 0x196   : > { %14047 = vmatprep.subr.bf16.mxu0 %v15517_v38  ;;  %10269 = vmatprep.mubr.bf16.mxu0 %v626_v18  ;;  %v629_v18 = vpack.c.bf16 %v495_v17, %v361_v16  ;;  %v497_v25 = vld [vmem:[%s16448_s26 + $0x5e0] sm:$0xff]  ;;  %v368_v16 = vld [vmem:[%s16448_s26 + $0x1d8] sm:$0xff]  ;;  %v502_v17 = vld [vmem:[%s16448_s26 + $0x608] sm:$0xff] }
 0x197   : > { %10229 = vmatmul.mubr.bf16.vlgmr.msra.gmra.mrb[44].mxu1 %v623_v34 }
 0x198   : > { %14068 = vmatpush3.bf16.msra.mxu1 %v15516_v36  ;;  %10310 = vmatprep.mubr.bf16.mxu1 %v628_v26  ;;  %v631_v26 = vpack.c.bf16 %v497_v25, %v363_v24  ;;  %v15612_v24 = vld [vmem:[%s20084_s1 + $0xf80] sm:$0xff]  }
 0x199   : > { %14048 = vmatpush3.bf16.msra.mxu0 %v15518_v40  ;;  %14069 = vmatprep.subr.bf16.mxu1 %v15519_v43  ;;  %v15552_v40 = vld [vmem:[%s20084_s1 + $0xd88] sm:$0xff]  }
 0x19a   : > { %14049 = vmatprep.subr.bf16.mxu0 %v15521_v48  ;;  %v15555_v48 = vld [vmem:[%s20084_s1 + $0xdd0] sm:$0xff]  }
 0x19c   : > { %14070 = vmatpush3.bf16.msra.mxu1 %v15520_v45  ;;  %v15554_v45 = vld [vmem:[%s20084_s1 + $0xd10] sm:$0xff]  }
 0x19d   : > { %14050 = vmatpush3.bf16.msra.mxu0 %v15522_v51  ;;  %14071 = vmatprep.subr.bf16.mxu1 %v15523_v54  ;;  %v15556_v51 = vld [vmem:[%s20084_s1 + $0xd90] sm:$0xff]   ;;  %v15557_v54 = vld [vmem:[%s20084_s1 + $0xd58] sm:$0xff]  }
 0x19e   : > { %v13753_v37 = vpop.f32.mrb[20].mxu0  ;;  %14051 = vmatprep.subr.bf16.mxu0 %v15525_v60  ;;  %v15560_v60 = vld [vmem:[%s20084_s1 + $0xd98] sm:$0xff]  }
 0x19f   : > { %v13754_v39 = vpop.f32.mrb[21].mxu0 }
 0x1a0   : > { %v13755_v41 = vadd.f32 %v13754_v39, %v13753_v37  ;;  %v13756_v42 = vpop.f32.mrb[22].mxu0  ;;  %v13775_v44 = vpop.f32.mrb[20].mxu1  ;;  %14072 = vmatpush3.bf16.msra.mxu1 %v15524_v57  ;;  %v15551_v37 = vld [vmem:[%s20084_s1 + $0xdc8] sm:$0xff]   ;;  %v15558_v57 = vld [vmem:[%s20084_s1 + $0xd18] sm:$0xff]  }
 0x1a1   : > { %v13757_v47 = vpop.f32.mrb[23].mxu0  ;;  %v13776_v50 = vpop.f32.mrb[21].mxu1  ;;  %14052 = vmatpush3.bf16.msra.mxu0 %v15526_v61  ;;  %14073 = vmatprep.subr.bf16.mxu1 %v15527_v63  ;;  %v15561_v61 = vld [vmem:[%s20084_s1 + $0xd60] sm:$0xff]  }
 0x1a2   : > { %v9698_v46 = vadd.f32 %v13755_v41, %v17567_v62  ;;  %v13758_v49 = vadd.f32 %v13757_v47, %v13756_v42  ;;  %v13777_v52 = vadd.f32 %v13776_v50, %v13775_v44  ;;  %v13778_v53 = vpop.f32.mrb[22].mxu1  ;;  %14053 = vmatprep.subr.bf16.mxu0 %v15529_v1  ;;  %v15553_v42 = vld [vmem:[%s20084_s1 + $0xd50] sm:$0xff]   ;;  %v15563_v63 = vld [vmem:[%s20084_s1 + $0xde0] sm:$0xff]   ;;  %v15565_v1 = vld [vmem:[%s20084_s1 + $0xd68] sm:$0xff]  }
 0x1a3   : > { %v13779_v56 = vpop.f32.mrb[23].mxu1 }
 0x1a4   : > { %v9701_v55 = vadd.f32 %v13758_v49, %v17575_v2  ;;  %v17677_v58 = vadd.f32 %v13777_v52, %v9698_v46  ;;  %v13780_v59 = vadd.f32 %v13779_v56, %v13778_v53  ;;  %14074 = vmatpush3.bf16.msra.mxu1 %v15528_v0  ;;  %v15530_v2 = vld [vmem:[%s20084_s1 + $0xc20] sm:$0xff]  }
 0x1a5   : > { %14054 = vmatpush3.bf16.msra.mxu0 %v15530_v2  ;;  %14075 = vmatprep.subr.bf16.mxu1 %v15531_v3  ;;  %v15564_v0 = vld [vmem:[%s20084_s1 + $0xda0] sm:$0xff]   ;;  %v15566_v2 = vld [vmem:[%s20084_s1 + $0xd28] sm:$0xff]  }
 0x1a6   : > { %v17685_v62 = vadd.f32 %v13780_v59, %v9701_v55  ;;  %14055 = vmatprep.subr.bf16.mxu0 %v15533_v5  ;;  %v15567_v3 = vld [vmem:[%s20084_s1 + $0xde8] sm:$0xff]   ;;  %v15569_v5 = vld [vmem:[%s20084_s1 + $0xd70] sm:$0xff]  }
 0x1a8   : > { %14076 = vmatpush3.bf16.msra.mxu1 %v15532_v4  ;;  %v15568_v4 = vld [vmem:[%s20084_s1 + $0xda8] sm:$0xff]  }
 0x1a9   : > { %14056 = vmatpush3.bf16.msra.mxu0 %v15534_v6  ;;  %14077 = vmatprep.subr.bf16.mxu1 %v15535_v7  ;;  %v15570_v6 = vld [vmem:[%s20084_s1 + $0xd30] sm:$0xff]  }
 0x1aa   : > { %14057 = vmatprep.subr.bf16.mxu0 %v15537_v9  ;;  %v15571_v7 = vld [vmem:[%s20084_s1 + $0xdf0] sm:$0xff]   ;;  %v15573_v9 = vld [vmem:[%s20084_s1 + $0xd78] sm:$0xff]  }
 0x1ac   : > { %14078 = vmatpush3.bf16.msra.mxu1 %v15536_v8  ;;  %v15572_v8 = vld [vmem:[%s20084_s1 + $0xdb0] sm:$0xff]  }
 0x1ad   : > { %14058 = vmatpush3.bf16.msra.mxu0 %v15538_v10  ;;  %14079 = vmatprep.subr.bf16.mxu1 %v15539_v11  ;;  %v15574_v10 = vld [vmem:[%s20084_s1 + $0xd38] sm:$0xff]  }
 0x1ae   : > { %14059 = vmatprep.subr.bf16.mxu0 %v15541_v13  ;;  %v15575_v11 = vld [vmem:[%s20084_s1 + $0xdf8] sm:$0xff]  }
 0x1af   : > { %v496_v13 = vld [vmem:[%s16448_s26 + $0x5d8] sm:$0xff] }
 0x1b0   : > { %14080 = vmatpush3.bf16.msra.mxu1 %v15540_v12  ;;  %v362_v12 = vld [vmem:[%s16448_s26 + $0x1a8] sm:$0xff] }
 0x1b1   : > { %14060 = vmatpush3.bf16.msra.mxu0 %v15542_v14  ;;  %14081 = vmatprep.subr.bf16.mxu1 %v15543_v15  ;;  %v630_v14 = vpack.c.bf16 %v496_v13, %v362_v12  ;;  %v15576_v15 = vld [vmem:[%s20084_s1 + $0xdb8] sm:$0xff]   ;;  %v365_v12 = vld [vmem:[%s16448_s26 + $0x1c0] sm:$0xff]  ;;  %v499_v13 = vld [vmem:[%s16448_s26 + $0x5f0] sm:$0xff] }
 0x1b2   : > { %14089 = vmatprep.subr.bf16.mxu0 %v15545_v23  ;;  %v15578_v23 = vld [vmem:[%s20084_s1 + $0xe00] sm:$0xff]  }
 0x1b4   : > { %14082 = vmatpush3.bf16.msra.mxu1 %v15544_v19  ;;  %10270 = vmatmul.mubr.bf16.vlgmr.msra.gmra.mrb[48].mxu0 %v625_v22  ;;  %v15577_v19 = vld [vmem:[%s20084_s1 + $0xe40] sm:$0xff]   ;;  %v632_v22 = vpack.c.bf16 %v498_v21, %v364_v20  ;;  %v367_v20 = vld [vmem:[%s16448_s26 + $0x1d0] sm:$0xff] }
 0x1b5   : > { %14090 = vmatpush3.bf16.msra.mxu0 %v15546_v27  ;;  %14111 = vmatprep.subr.bf16.mxu1 %v15547_v31  ;;  %v15579_v27 = vld [vmem:[%s20084_s1 + $0xec0] sm:$0xff]   ;;  %v15582_v31 = vld [vmem:[%s20084_s1 + $0xe08] sm:$0xff]  }
 0x1b6   : > { %14091 = vmatprep.subr.bf16.mxu0 %v15549_v33  ;;  %10351 = vmatprep.mubr.bf16.mxu0 %v630_v14  ;;  %v15583_v33 = vld [vmem:[%s20084_s1 + $0xec8] sm:$0xff]   ;;  %v633_v14 = vpack.c.bf16 %v499_v13, %v365_v12  ;;  %v501_v21 = vld [vmem:[%s16448_s26 + $0x600] sm:$0xff]  ;;  %v372_v12 = vld [vmem:[%s16448_s26 + $0x1f8] sm:$0xff] }
 0x1b7   : > { %10311 = vmatmul.mubr.bf16.vlgmr.msra.gmra.mrb[48].mxu1 %v627_v30  ;;  %v506_v13 = vld [vmem:[%s16448_s26 + $0x628] sm:$0xff] }
 0x1b8   : > { %14112 = vmatpush3.bf16.msra.mxu1 %v15548_v32  ;;  %10392 = vmatprep.mubr.bf16.mxu1 %v632_v22  ;;  %v635_v22 = vpack.c.bf16 %v501_v21, %v367_v20  ;;  %v15644_v20 = vld [vmem:[%s20084_s1 + $0x1080] sm:$0xff]   ;;  %v15645_v21 = vld [vmem:[%s20084_s1 + $0x1048] sm:$0xff]  }
 0x1b9   : > { %14092 = vmatpush3.bf16.msra.mxu0 %v15550_v35  ;;  %14113 = vmatprep.subr.bf16.mxu1 %v15551_v37 }
 0x1ba   : > { %14093 = vmatprep.subr.bf16.mxu0 %v15553_v42 }
 0x1bc   : > { %14114 = vmatpush3.bf16.msra.mxu1 %v15552_v40 }
 0x1bd   : > { %14094 = vmatpush3.bf16.msra.mxu0 %v15554_v45  ;;  %14115 = vmatprep.subr.bf16.mxu1 %v15555_v48 }
 0x1be   : > { %v13797_v34 = vpop.f32.mrb[24].mxu0  ;;  %14095 = vmatprep.subr.bf16.mxu0 %v15557_v54  ;;  %v15591_v54 = vld [vmem:[%s20084_s1 + $0xed8] sm:$0xff]  }
 0x1bf   : > { %v13798_v36 = vpop.f32.mrb[25].mxu0 }
 0x1c0   : > { %v13799_v38 = vadd.f32 %v13798_v36, %v13797_v34  ;;  %v13800_v39 = vpop.f32.mrb[26].mxu0  ;;  %v13819_v41 = vpop.f32.mrb[24].mxu1  ;;  %14116 = vmatpush3.bf16.msra.mxu1 %v15556_v51  ;;  %v15584_v36 = vld [vmem:[%s20084_s1 + $0xe88] sm:$0xff]  }
 0x1c1   : > { %v13801_v44 = vpop.f32.mrb[27].mxu0  ;;  %v13820_v47 = vpop.f32.mrb[25].mxu1  ;;  %14096 = vmatpush3.bf16.msra.mxu0 %v15558_v57  ;;  %v15593_v57 = vld [vmem:[%s20084_s1 + $0xe60] sm:$0xff]  }
 0x1c2   : > { %v9780_v43 = vadd.f32 %v13799_v38, %v17677_v58  ;;  %v13802_v46 = vadd.f32 %v13801_v44, %v13800_v39  ;;  %v13821_v49 = vadd.f32 %v13820_v47, %v13819_v41  ;;  %v13822_v50 = vpop.f32.mrb[26].mxu1  ;;  %v15559_v58 = vld [vmem:[%s20084_s1 + $0xdd8] sm:$0xff]   ;;  %14097 = vmatprep.subr.bf16.mxu0 %v15561_v61  ;;  %v15585_v38 = vld [vmem:[%s20084_s1 + $0xe50] sm:$0xff]   ;;  %v15597_v61 = vld [vmem:[%s20084_s1 + $0xe68] sm:$0xff]  }
 0x1c3   : > { %v13823_v53 = vpop.f32.mrb[27].mxu1  ;;  %14117 = vmatprep.subr.bf16.mxu1 %v15559_v58  ;;  %v15586_v41 = vld [vmem:[%s20084_s1 + $0xe10] sm:$0xff]   ;;  %v15594_v58 = vld [vmem:[%s20084_s1 + $0xe20] sm:$0xff]  }
 0x1c4   : > { %v9783_v52 = vadd.f32 %v13802_v46, %v17685_v62  ;;  %v17790_v55 = vadd.f32 %v13821_v49, %v9780_v43  ;;  %v13824_v56 = vadd.f32 %v13823_v53, %v13822_v50  ;;  %14118 = vmatpush3.bf16.msra.mxu1 %v15560_v60  ;;  %v15562_v62 = vld [vmem:[%s20084_s1 + $0xd20] sm:$0xff]   ;;  %v15587_v44 = vld [vmem:[%s20084_s1 + $0xed0] sm:$0xff]   ;;  %v15589_v50 = vld [vmem:[%s20084_s1 + $0xe58] sm:$0xff]  }
 0x1c5   : > { %14098 = vmatpush3.bf16.msra.mxu0 %v15562_v62  ;;  %14119 = vmatprep.subr.bf16.mxu1 %v15563_v63  ;;  %v15588_v47 = vld [vmem:[%s20084_s1 + $0xe90] sm:$0xff]   ;;  %v15590_v53 = vld [vmem:[%s20084_s1 + $0xe18] sm:$0xff]   ;;  %v15596_v60 = vld [vmem:[%s20084_s1 + $0xea0] sm:$0xff]  }
 0x1c6   : > { %v17798_v59 = vadd.f32 %v13824_v56, %v9783_v52  ;;  %14099 = vmatprep.subr.bf16.mxu0 %v15565_v1  ;;  %v15592_v56 = vld [vmem:[%s20084_s1 + $0xe98] sm:$0xff]   ;;  %v15598_v62 = vld [vmem:[%s20084_s1 + $0xe28] sm:$0xff]   ;;  %v15601_v1 = vld [vmem:[%s20084_s1 + $0xe70] sm:$0xff]  }
 0x1c7   : > { %v15599_v63 = vld [vmem:[%s20084_s1 + $0xee8] sm:$0xff]  }
 0x1c8   : > { %14120 = vmatpush3.bf16.msra.mxu1 %v15564_v0  ;;  %v15600_v0 = vld [vmem:[%s20084_s1 + $0xea8] sm:$0xff]  }
 0x1c9   : > { %14100 = vmatpush3.bf16.msra.mxu0 %v15566_v2  ;;  %14121 = vmatprep.subr.bf16.mxu1 %v15567_v3  ;;  %v15602_v2 = vld [vmem:[%s20084_s1 + $0xe30] sm:$0xff]  }
 0x1ca   : > { %14101 = vmatprep.subr.bf16.mxu0 %v15569_v5  ;;  %v15603_v3 = vld [vmem:[%s20084_s1 + $0xef0] sm:$0xff]   ;;  %v15605_v5 = vld [vmem:[%s20084_s1 + $0xe78] sm:$0xff]  }
 0x1cc   : > { %14122 = vmatpush3.bf16.msra.mxu1 %v15568_v4  ;;  %v15604_v4 = vld [vmem:[%s20084_s1 + $0xeb0] sm:$0xff]  }
 0x1cd   : > { %14102 = vmatpush3.bf16.msra.mxu0 %v15570_v6  ;;  %14123 = vmatprep.subr.bf16.mxu1 %v15571_v7  ;;  %v15606_v6 = vld [vmem:[%s20084_s1 + $0xe38] sm:$0xff]  }
 0x1ce   : > { %14103 = vmatprep.subr.bf16.mxu0 %v15573_v9  ;;  %v15607_v7 = vld [vmem:[%s20084_s1 + $0xef8] sm:$0xff]  }
 0x1cf   : > { %v500_v9 = vld [vmem:[%s16448_s26 + $0x5f8] sm:$0xff] }
 0x1d0   : > { %14124 = vmatpush3.bf16.msra.mxu1 %v15572_v8  ;;  %v366_v8 = vld [vmem:[%s16448_s26 + $0x1c8] sm:$0xff] }
 0x1d1   : > { %14104 = vmatpush3.bf16.msra.mxu0 %v15574_v10  ;;  %14125 = vmatprep.subr.bf16.mxu1 %v15575_v11  ;;  %v634_v10 = vpack.c.bf16 %v500_v9, %v366_v8  ;;  %v15608_v11 = vld [vmem:[%s20084_s1 + $0xeb8] sm:$0xff]   ;;  %v369_v8 = vld [vmem:[%s16448_s26 + $0x1e0] sm:$0xff]  ;;  %v503_v9 = vld [vmem:[%s16448_s26 + $0x610] sm:$0xff] }
 0x1d2   : > { %14133 = vmatprep.subr.bf16.mxu0 %v15577_v19  ;;  %v15610_v19 = vld [vmem:[%s20084_s1 + $0xf00] sm:$0xff]  }
 0x1d4   : > { %14126 = vmatpush3.bf16.msra.mxu1 %v15576_v15  ;;  %10352 = vmatmul.mubr.bf16.vlgmr.msra.gmra.mrb[52].mxu0 %v629_v18  ;;  %v15609_v15 = vld [vmem:[%s20084_s1 + $0xf40] sm:$0xff]   ;;  %v636_v18 = vpack.c.bf16 %v502_v17, %v368_v16  ;;  %v371_v16 = vld [vmem:[%s16448_s26 + $0x1f0] sm:$0xff] }
 0x1d5   : > { %14134 = vmatpush3.bf16.msra.mxu0 %v15578_v23  ;;  %14155 = vmatprep.subr.bf16.mxu1 %v15579_v27  ;;  %v15611_v23 = vld [vmem:[%s20084_s1 + $0xfc0] sm:$0xff]  }
 0x1d6   : > { %14135 = vmatprep.subr.bf16.mxu0 %v15581_v29  ;;  %10433 = vmatprep.mubr.bf16.mxu0 %v634_v10  ;;  %v637_v10 = vpack.c.bf16 %v503_v9, %v369_v8  ;;  %v505_v17 = vld [vmem:[%s16448_s26 + $0x620] sm:$0xff]  ;;  %v376_v8 = vld [vmem:[%s16448_s26 + $0x218] sm:$0xff]  ;;  %v510_v9 = vld [vmem:[%s16448_s26 + $0x648] sm:$0xff] }
 0x1d7   : > { %10393 = vmatmul.mubr.bf16.vlgmr.msra.gmra.mrb[52].mxu1 %v631_v26  ;;  %v15613_v26 = vld [vmem:[%s20084_s1 + $0xf48] sm:$0xff]  }
 0x1d8   : > { %14156 = vmatpush3.bf16.msra.mxu1 %v15580_v28  ;;  %10474 = vmatprep.mubr.bf16.mxu1 %v636_v18  ;;  %v15614_v28 = vld [vmem:[%s20084_s1 + $0xf08] sm:$0xff]   ;;  %v639_v18 = vpack.c.bf16 %v505_v17, %v371_v16  ;;  %v15676_v16 = vld [vmem:[%s20084_s1 + $0x1180] sm:$0xff]  }
 0x1d9   : > { %14136 = vmatpush3.bf16.msra.mxu0 %v15582_v31  ;;  %14157 = vmatprep.subr.bf16.mxu1 %v15583_v33  ;;  %v15615_v31 = vld [vmem:[%s20084_s1 + $0xfc8] sm:$0xff]  }
 0x1da   : > { %14137 = vmatprep.subr.bf16.mxu0 %v15585_v38  ;;  %v15616_v33 = vld [vmem:[%s20084_s1 + $0xf88] sm:$0xff]  }
 0x1db   : > { %v15677_v17 = vld [vmem:[%s20084_s1 + $0x1148] sm:$0xff]  }
 0x1dc   : > { %14158 = vmatpush3.bf16.msra.mxu1 %v15584_v36 }
 0x1dd   : > { %14138 = vmatpush3.bf16.msra.mxu0 %v15586_v41  ;;  %14159 = vmatprep.subr.bf16.mxu1 %v15587_v44 }
 0x1de   : > { %v13841_v30 = vpop.f32.mrb[28].mxu0  ;;  %14139 = vmatprep.subr.bf16.mxu0 %v15589_v50 }
 0x1df   : > { %v13842_v32 = vpop.f32.mrb[29].mxu0 }
 0x1e0   : > { %v13843_v34 = vadd.f32 %v13842_v32, %v13841_v30  ;;  %v13844_v35 = vpop.f32.mrb[30].mxu0  ;;  %v13863_v37 = vpop.f32.mrb[28].mxu1  ;;  %14160 = vmatpush3.bf16.msra.mxu1 %v15588_v47 }
 0x1e1   : > { %v13845_v40 = vpop.f32.mrb[31].mxu0  ;;  %v13864_v43 = vpop.f32.mrb[29].mxu1  ;;  %14140 = vmatpush3.bf16.msra.mxu0 %v15590_v53  ;;  %14161 = vmatprep.subr.bf16.mxu1 %v15591_v54  ;;  %v15625_v53 = vld [vmem:[%s20084_s1 + $0xf60] sm:$0xff]  }
 0x1e2   : > { %v9862_v39 = vadd.f32 %v13843_v34, %v17790_v55  ;;  %v13846_v42 = vadd.f32 %v13845_v40, %v13844_v35  ;;  %v13865_v45 = vadd.f32 %v13864_v43, %v13863_v37  ;;  %v13866_v46 = vpop.f32.mrb[30].mxu1  ;;  %14141 = vmatprep.subr.bf16.mxu0 %v15593_v57  ;;  %v15617_v37 = vld [vmem:[%s20084_s1 + $0xf50] sm:$0xff]   ;;  %v15626_v54 = vld [vmem:[%s20084_s1 + $0xf20] sm:$0xff]   ;;  %v15629_v57 = vld [vmem:[%s20084_s1 + $0xf68] sm:$0xff]  }
 0x1e3   : > { %v13867_v49 = vpop.f32.mrb[31].mxu1  ;;  %v15619_v43 = vld [vmem:[%s20084_s1 + $0xfd0] sm:$0xff]  }
 0x1e4   : > { %v9865_v48 = vadd.f32 %v13846_v42, %v17798_v59  ;;  %v17900_v51 = vadd.f32 %v13865_v45, %v9862_v39  ;;  %v13868_v52 = vadd.f32 %v13867_v49, %v13866_v46  ;;  %14162 = vmatpush3.bf16.msra.mxu1 %v15592_v56  ;;  %v15595_v59 = vld [vmem:[%s20084_s1 + $0xee0] sm:$0xff]   ;;  %v15618_v39 = vld [vmem:[%s20084_s1 + $0xf10] sm:$0xff]   ;;  %v15622_v49 = vld [vmem:[%s20084_s1 + $0xf18] sm:$0xff]  }
 0x1e5   : > { %14142 = vmatpush3.bf16.msra.mxu0 %v15594_v58  ;;  %14163 = vmatprep.subr.bf16.mxu1 %v15595_v59  ;;  %v15620_v45 = vld [vmem:[%s20084_s1 + $0xf90] sm:$0xff]   ;;  %v15628_v56 = vld [vmem:[%s20084_s1 + $0xfa0] sm:$0xff]   ;;  %v15630_v58 = vld [vmem:[%s20084_s1 + $0xf28] sm:$0xff]  }
 0x1e6   : > { %v17908_v55 = vadd.f32 %v13868_v52, %v9865_v48  ;;  %14143 = vmatprep.subr.bf16.mxu0 %v15597_v61  ;;  %v15621_v48 = vld [vmem:[%s20084_s1 + $0xf58] sm:$0xff]   ;;  %v15631_v59 = vld [vmem:[%s20084_s1 + $0xfe8] sm:$0xff]   ;;  %v15633_v61 = vld [vmem:[%s20084_s1 + $0xf70] sm:$0xff]  }
 0x1e7   : > { %v15624_v52 = vld [vmem:[%s20084_s1 + $0xf98] sm:$0xff]  }
 0x1e8   : > { %14164 = vmatpush3.bf16.msra.mxu1 %v15596_v60  ;;  %v15632_v60 = vld [vmem:[%s20084_s1 + $0xfa8] sm:$0xff]  }
 0x1e9   : > { %14144 = vmatpush3.bf16.msra.mxu0 %v15598_v62  ;;  %14165 = vmatprep.subr.bf16.mxu1 %v15599_v63  ;;  %v15634_v62 = vld [vmem:[%s20084_s1 + $0xf30] sm:$0xff]  }
 0x1ea   : > { %14145 = vmatprep.subr.bf16.mxu0 %v15601_v1  ;;  %v15635_v63 = vld [vmem:[%s20084_s1 + $0xff0] sm:$0xff]   ;;  %v15637_v1 = vld [vmem:[%s20084_s1 + $0xf78] sm:$0xff]  }
 0x1ec   : > { %14166 = vmatpush3.bf16.msra.mxu1 %v15600_v0  ;;  %v15636_v0 = vld [vmem:[%s20084_s1 + $0xfb0] sm:$0xff]  }
 0x1ed   : > { %14146 = vmatpush3.bf16.msra.mxu0 %v15602_v2  ;;  %14167 = vmatprep.subr.bf16.mxu1 %v15603_v3  ;;  %v15638_v2 = vld [vmem:[%s20084_s1 + $0xf38] sm:$0xff]  }
 0x1ee   : > { %14147 = vmatprep.subr.bf16.mxu0 %v15605_v5  ;;  %v15639_v3 = vld [vmem:[%s20084_s1 + $0xff8] sm:$0xff]  }
 0x1ef   : > { %v504_v5 = vld [vmem:[%s16448_s26 + $0x618] sm:$0xff] }
 0x1f0   : > { %14168 = vmatpush3.bf16.msra.mxu1 %v15604_v4  ;;  %v370_v4 = vld [vmem:[%s16448_s26 + $0x1e8] sm:$0xff] }
 0x1f1   : > { %14148 = vmatpush3.bf16.msra.mxu0 %v15606_v6  ;;  %14169 = vmatprep.subr.bf16.mxu1 %v15607_v7  ;;  %v638_v6 = vpack.c.bf16 %v504_v5, %v370_v4  ;;  %v15640_v7 = vld [vmem:[%s20084_s1 + $0xfb8] sm:$0xff]   ;;  %v373_v4 = vld [vmem:[%s16448_s26 + $0x200] sm:$0xff]  ;;  %v507_v5 = vld [vmem:[%s16448_s26 + $0x630] sm:$0xff] }
 0x1f2   : > { %14177 = vmatprep.subr.bf16.mxu0 %v15609_v15  ;;  %v15642_v15 = vld [vmem:[%s20084_s1 + $0x1000] sm:$0xff]  }
 0x1f4   : > { %14170 = vmatpush3.bf16.msra.mxu1 %v15608_v11  ;;  %10434 = vmatmul.mubr.bf16.vlgmr.msra.gmra.mrb[56].mxu0 %v633_v14  ;;  %v15641_v11 = vld [vmem:[%s20084_s1 + $0x1040] sm:$0xff]   ;;  %v640_v14 = vpack.c.bf16 %v506_v13, %v372_v12  ;;  %v375_v12 = vld [vmem:[%s16448_s26 + $0x210] sm:$0xff] }
 0x1f5   : > { %14178 = vmatpush3.bf16.msra.mxu0 %v15610_v19  ;;  %14199 = vmatprep.subr.bf16.mxu1 %v15611_v23  ;;  %v15643_v19 = vld [vmem:[%s20084_s1 + $0x10c0] sm:$0xff]   ;;  %v15646_v23 = vld [vmem:[%s20084_s1 + $0x1008] sm:$0xff]  }
 0x1f6   : > { %14179 = vmatprep.subr.bf16.mxu0 %v15613_v26  ;;  %10515 = vmatprep.mubr.bf16.mxu0 %v638_v6  ;;  %v641_v6 = vpack.c.bf16 %v507_v5, %v373_v4  ;;  %v509_v13 = vld [vmem:[%s16448_s26 + $0x640] sm:$0xff]  ;;  %v380_v4 = vld [vmem:[%s16448_s26 + $0x238] sm:$0xff]  ;;  %v514_v5 = vld [vmem:[%s16448_s26 + $0x668] sm:$0xff] }
 0x1f7   : > { %10475 = vmatmul.mubr.bf16.vlgmr.msra.gmra.mrb[56].mxu1 %v635_v22 }
 0x1f8   : > { %14200 = vmatpush3.bf16.msra.mxu1 %v15612_v24  ;;  %10556 = vmatprep.mubr.bf16.mxu1 %v640_v14  ;;  %v643_v14 = vpack.c.bf16 %v509_v13, %v375_v12  ;;  %v15708_v12 = vld [vmem:[%s20084_s1 + $0x1280] sm:$0xff]  }
 0x1f9   : > { %14180 = vmatpush3.bf16.msra.mxu0 %v15614_v28  ;;  %14201 = vmatprep.subr.bf16.mxu1 %v15615_v31  ;;  %v15648_v28 = vld [vmem:[%s20084_s1 + $0x1088] sm:$0xff]  }
 0x1fa   : > { %14181 = vmatprep.subr.bf16.mxu0 %v15617_v37 }
 0x1fc   : > { %14202 = vmatpush3.bf16.msra.mxu1 %v15616_v33  ;;  %v15650_v33 = vld [vmem:[%s20084_s1 + $0x1010] sm:$0xff]  }
 0x1fd   : > { %14182 = vmatpush3.bf16.msra.mxu0 %v15618_v39  ;;  %14203 = vmatprep.subr.bf16.mxu1 %v15619_v43  ;;  %v15652_v39 = vld [vmem:[%s20084_s1 + $0x1090] sm:$0xff]  }
 0x1fe   : > { %v13885_v25 = vpop.f32.mrb[32].mxu0  ;;  %14183 = vmatprep.subr.bf16.mxu0 %v15621_v48  ;;  %v15656_v48 = vld [vmem:[%s20084_s1 + $0x1098] sm:$0xff]  }
 0x1ff   : > { %v13886_v27 = vpop.f32.mrb[33].mxu0 }
 0x200   : > { %v13887_v29 = vadd.f32 %v13886_v27, %v13885_v25  ;;  %v13888_v30 = vpop.f32.mrb[34].mxu0  ;;  %v13907_v35 = vpop.f32.mrb[32].mxu1  ;;  %14204 = vmatpush3.bf16.msra.mxu1 %v15620_v45  ;;  %v15647_v25 = vld [vmem:[%s20084_s1 + $0x10c8] sm:$0xff]   ;;  %v15654_v45 = vld [vmem:[%s20084_s1 + $0x1018] sm:$0xff]  }
 0x201   : > { %v13889_v32 = vpop.f32.mrb[35].mxu0  ;;  %v13908_v38 = vpop.f32.mrb[33].mxu1  ;;  %14184 = vmatpush3.bf16.msra.mxu0 %v15622_v49  ;;  %v15657_v49 = vld [vmem:[%s20084_s1 + $0x1060] sm:$0xff]  }
 0x202   : > { %v9944_v34 = vadd.f32 %v13887_v29, %v17900_v51  ;;  %v13890_v36 = vadd.f32 %v13889_v32, %v13888_v30  ;;  %v13909_v41 = vadd.f32 %v13908_v38, %v13907_v35  ;;  %v13910_v42 = vpop.f32.mrb[34].mxu1  ;;  %v15623_v51 = vld [vmem:[%s20084_s1 + $0xfd8] sm:$0xff]   ;;  %14185 = vmatprep.subr.bf16.mxu0 %v15625_v53  ;;  %v15649_v30 = vld [vmem:[%s20084_s1 + $0x1050] sm:$0xff]   ;;  %v15661_v53 = vld [vmem:[%s20084_s1 + $0x1068] sm:$0xff]  }
 0x203   : > { %v13911_v44 = vpop.f32.mrb[35].mxu1  ;;  %14205 = vmatprep.subr.bf16.mxu1 %v15623_v51  ;;  %v15659_v51 = vld [vmem:[%s20084_s1 + $0x10e0] sm:$0xff]  }
 0x204   : > { %v9947_v40 = vadd.f32 %v13890_v36, %v17908_v55  ;;  %v18007_v46 = vadd.f32 %v13909_v41, %v9944_v34  ;;  %v13912_v47 = vadd.f32 %v13911_v44, %v13910_v42  ;;  %14206 = vmatpush3.bf16.msra.mxu1 %v15624_v52  ;;  %v15627_v55 = vld [vmem:[%s20084_s1 + $0xfe0] sm:$0xff]   ;;  %v15651_v36 = vld [vmem:[%s20084_s1 + $0x10d0] sm:$0xff]   ;;  %v15653_v42 = vld [vmem:[%s20084_s1 + $0x1058] sm:$0xff]  }
 0x205   : > { %14186 = vmatpush3.bf16.msra.mxu0 %v15626_v54  ;;  %14207 = vmatprep.subr.bf16.mxu1 %v15627_v55  ;;  %v15660_v52 = vld [vmem:[%s20084_s1 + $0x10a0] sm:$0xff]   ;;  %v15662_v54 = vld [vmem:[%s20084_s1 + $0x1028] sm:$0xff]  }
 0x206   : > { %v18015_v50 = vadd.f32 %v13912_v47, %v9947_v40  ;;  %14187 = vmatprep.subr.bf16.mxu0 %v15629_v57  ;;  %v15663_v55 = vld [vmem:[%s20084_s1 + $0x10e8] sm:$0xff]   ;;  %v15665_v57 = vld [vmem:[%s20084_s1 + $0x1070] sm:$0xff]  }
 0x208   : > { %14208 = vmatpush3.bf16.msra.mxu1 %v15628_v56  ;;  %v15664_v56 = vld [vmem:[%s20084_s1 + $0x10a8] sm:$0xff]  }
 0x209   : > { %14188 = vmatpush3.bf16.msra.mxu0 %v15630_v58  ;;  %14209 = vmatprep.subr.bf16.mxu1 %v15631_v59  ;;  %v15666_v58 = vld [vmem:[%s20084_s1 + $0x1030] sm:$0xff]  }
 0x20a   : > { %14189 = vmatprep.subr.bf16.mxu0 %v15633_v61  ;;  %v15667_v59 = vld [vmem:[%s20084_s1 + $0x10f0] sm:$0xff]   ;;  %v15669_v61 = vld [vmem:[%s20084_s1 + $0x1078] sm:$0xff]  }
 0x20c   : > { %14210 = vmatpush3.bf16.msra.mxu1 %v15632_v60  ;;  %v15668_v60 = vld [vmem:[%s20084_s1 + $0x10b0] sm:$0xff]  }
 0x20d   : > { %14190 = vmatpush3.bf16.msra.mxu0 %v15634_v62  ;;  %14211 = vmatprep.subr.bf16.mxu1 %v15635_v63  ;;  %v15670_v62 = vld [vmem:[%s20084_s1 + $0x1038] sm:$0xff]  }
 0x20e   : > { %14191 = vmatprep.subr.bf16.mxu0 %v15637_v1  ;;  %v15671_v63 = vld [vmem:[%s20084_s1 + $0x10f8] sm:$0xff]  }
 0x20f   : > { %v508_v1 = vld [vmem:[%s16448_s26 + $0x638] sm:$0xff] }
 0x210   : > { %14212 = vmatpush3.bf16.msra.mxu1 %v15636_v0  ;;  %v374_v0 = vld [vmem:[%s16448_s26 + $0x208] sm:$0xff] }
 0x211   : > { %14192 = vmatpush3.bf16.msra.mxu0 %v15638_v2  ;;  %14213 = vmatprep.subr.bf16.mxu1 %v15639_v3  ;;  %v642_v2 = vpack.c.bf16 %v508_v1, %v374_v0  ;;  %v15672_v3 = vld [vmem:[%s20084_s1 + $0x10b8] sm:$0xff]   ;;  %v377_v0 = vld [vmem:[%s16448_s26 + $0x220] sm:$0xff]  ;;  %v511_v1 = vld [vmem:[%s16448_s26 + $0x650] sm:$0xff] }
 0x212   : > { %14221 = vmatprep.subr.bf16.mxu0 %v15641_v11  ;;  %v15674_v11 = vld [vmem:[%s20084_s1 + $0x1100] sm:$0xff]  }
 0x214   : > { %14214 = vmatpush3.bf16.msra.mxu1 %v15640_v7  ;;  %10516 = vmatmul.mubr.bf16.vlgmr.msra.gmra.mrb[60].mxu0 %v637_v10  ;;  %v15673_v7 = vld [vmem:[%s20084_s1 + $0x1140] sm:$0xff]   ;;  %v644_v10 = vpack.c.bf16 %v510_v9, %v376_v8  ;;  %v379_v8 = vld [vmem:[%s16448_s26 + $0x230] sm:$0xff] }
 0x215   : > { %14222 = vmatpush3.bf16.msra.mxu0 %v15642_v15  ;;  %14243 = vmatprep.subr.bf16.mxu1 %v15643_v19  ;;  %v15675_v15 = vld [vmem:[%s20084_s1 + $0x11c0] sm:$0xff]   ;;  %v15678_v19 = vld [vmem:[%s20084_s1 + $0x1108] sm:$0xff]  }
 0x216   : > { %14223 = vmatprep.subr.bf16.mxu0 %v15645_v21  ;;  %10597 = vmatprep.mubr.bf16.mxu0 %v642_v2  ;;  %v15679_v21 = vld [vmem:[%s20084_s1 + $0x11c8] sm:$0xff]   ;;  %v645_v2 = vpack.c.bf16 %v511_v1, %v377_v0  ;;  %v513_v9 = vld [vmem:[%s16448_s26 + $0x660] sm:$0xff]  ;;  %v384_v0 = vld [vmem:[%s16448_s26 + $0x258] sm:$0xff] }
 0x217   : > { %10557 = vmatmul.mubr.bf16.vlgmr.msra.gmra.mrb[60].mxu1 %v639_v18  ;;  %v518_v1 = vld [vmem:[%s16448_s26 + $0x688] sm:$0xff] }
 0x218   : > { %14244 = vmatpush3.bf16.msra.mxu1 %v15644_v20  ;;  %10638 = vmatprep.mubr.bf16.mxu1 %v644_v10  ;;  %v647_v10 = vpack.c.bf16 %v513_v9, %v379_v8  ;;  %v15740_v8 = vld [vmem:[%s20084_s1 + $0x1380] sm:$0xff]   ;;  %v15741_v9 = vld [vmem:[%s20084_s1 + $0x1348] sm:$0xff]  }
 0x219   : > { %14224 = vmatpush3.bf16.msra.mxu0 %v15646_v23  ;;  %14245 = vmatprep.subr.bf16.mxu1 %v15647_v25 }
 0x21a   : > { %14225 = vmatprep.subr.bf16.mxu0 %v15649_v30 }
 0x21c   : > { %14246 = vmatpush3.bf16.msra.mxu1 %v15648_v28 }
 0x21d   : > { %14226 = vmatpush3.bf16.msra.mxu0 %v15650_v33  ;;  %14247 = vmatprep.subr.bf16.mxu1 %v15651_v36 }
 0x21e   : > { %14227 = vmatprep.subr.bf16.mxu0 %v15653_v42  ;;  %v15687_v42 = vld [vmem:[%s20084_s1 + $0x11d8] sm:$0xff]  }
 0x220   : > { %v13951_v29 = vpop.f32.mrb[36].mxu1  ;;  %14248 = vmatpush3.bf16.msra.mxu1 %v15652_v39 }
 0x221   : > { %v13952_v35 = vpop.f32.mrb[37].mxu1  ;;  %14228 = vmatpush3.bf16.msra.mxu0 %v15654_v45  ;;  %v15689_v45 = vld [vmem:[%s20084_s1 + $0x1160] sm:$0xff]  }
 0x222   : > { %v13953_v37 = vadd.f32 %v13952_v35, %v13951_v29  ;;  %v13954_v38 = vpop.f32.mrb[38].mxu1  ;;  %14229 = vmatprep.subr.bf16.mxu0 %v15657_v49  ;;  %v15682_v29 = vld [vmem:[%s20084_s1 + $0x1110] sm:$0xff]   ;;  %v15693_v49 = vld [vmem:[%s20084_s1 + $0x1168] sm:$0xff]  }
 0x223   : > { %v13955_v41 = vpop.f32.mrb[39].mxu1  ;;  %v15684_v35 = vld [vmem:[%s20084_s1 + $0x1190] sm:$0xff]  }
 0x224   : > { %v13956_v44 = vadd.f32 %v13955_v41, %v13954_v38  ;;  %v15685_v38 = vld [vmem:[%s20084_s1 + $0x1158] sm:$0xff]  }
 0x225   : > { %v15686_v41 = vld [vmem:[%s20084_s1 + $0x1118] sm:$0xff]  }
 0x227   : > { %v13929_v22 = vpop.f32.mrb[36].mxu0 }
 0x228   : > { %v13930_v24 = vpop.f32.mrb[37].mxu0 }
 0x229   : > { %v13931_v26 = vadd.f32 %v13930_v24, %v13929_v22  ;;  %v13932_v27 = vpop.f32.mrb[38].mxu0  ;;  %v15680_v24 = vld [vmem:[%s20084_s1 + $0x1188] sm:$0xff]  }
 0x22a   : > { %v13933_v32 = vpop.f32.mrb[39].mxu0 }
 0x22b   : > { %v10026_v31 = vadd.f32 %v13931_v26, %v18007_v46  ;;  %v13934_v34 = vadd.f32 %v13933_v32, %v13932_v27  ;;  %v15655_v46 = vld [vmem:[%s20084_s1 + $0x10d8] sm:$0xff]   ;;  %v15681_v26 = vld [vmem:[%s20084_s1 + $0x1150] sm:$0xff]  }
 0x22c   : > { %14249 = vmatprep.subr.bf16.mxu1 %v15655_v46  ;;  %v15683_v32 = vld [vmem:[%s20084_s1 + $0x11d0] sm:$0xff]   ;;  %v15690_v46 = vld [vmem:[%s20084_s1 + $0x1120] sm:$0xff]  }
 0x22d   : > { %v10029_v40 = vadd.f32 %v13934_v34, %v18015_v50  ;;  %v18120_v43 = vadd.f32 %v13953_v37, %v10026_v31  ;;  %14250 = vmatpush3.bf16.msra.mxu1 %v15656_v48  ;;  %v15658_v50 = vld [vmem:[%s20084_s1 + $0x1020] sm:$0xff]  }
 0x22e   : > { %14230 = vmatpush3.bf16.msra.mxu0 %v15658_v50  ;;  %14251 = vmatprep.subr.bf16.mxu1 %v15659_v51  ;;  %v15692_v48 = vld [vmem:[%s20084_s1 + $0x11a0] sm:$0xff]   ;;  %v15694_v50 = vld [vmem:[%s20084_s1 + $0x1128] sm:$0xff]  }
 0x22f   : > { %v18128_v47 = vadd.f32 %v13956_v44, %v10029_v40  ;;  %14231 = vmatprep.subr.bf16.mxu0 %v15661_v53  ;;  %v15688_v44 = vld [vmem:[%s20084_s1 + $0x1198] sm:$0xff]   ;;  %v15695_v51 = vld [vmem:[%s20084_s1 + $0x11e8] sm:$0xff]   ;;  %v15697_v53 = vld [vmem:[%s20084_s1 + $0x1170] sm:$0xff]  }
 0x231   : > { %14252 = vmatpush3.bf16.msra.mxu1 %v15660_v52  ;;  %v15696_v52 = vld [vmem:[%s20084_s1 + $0x11a8] sm:$0xff]  }
 0x232   : > { %14232 = vmatpush3.bf16.msra.mxu0 %v15662_v54  ;;  %14253 = vmatprep.subr.bf16.mxu1 %v15663_v55  ;;  %v15698_v54 = vld [vmem:[%s20084_s1 + $0x1130] sm:$0xff]  }
 0x233   : > { %14233 = vmatprep.subr.bf16.mxu0 %v15665_v57  ;;  %v15699_v55 = vld [vmem:[%s20084_s1 + $0x11f0] sm:$0xff]   ;;  %v15701_v57 = vld [vmem:[%s20084_s1 + $0x1178] sm:$0xff]  }
 0x235   : > { %14254 = vmatpush3.bf16.msra.mxu1 %v15664_v56  ;;  %v15700_v56 = vld [vmem:[%s20084_s1 + $0x11b0] sm:$0xff]  }
 0x236   : > { %14234 = vmatpush3.bf16.msra.mxu0 %v15666_v58  ;;  %14255 = vmatprep.subr.bf16.mxu1 %v15667_v59  ;;  %v15702_v58 = vld [vmem:[%s20084_s1 + $0x1138] sm:$0xff]  }
 0x237   : > { %14235 = vmatprep.subr.bf16.mxu0 %v15669_v61  ;;  %v15703_v59 = vld [vmem:[%s20084_s1 + $0x11f8] sm:$0xff]  }
 0x238   : > { %v512_v61 = vld [vmem:[%s16448_s26 + $0x658] sm:$0xff] }
 0x239   : > { %14256 = vmatpush3.bf16.msra.mxu1 %v15668_v60  ;;  %v378_v60 = vld [vmem:[%s16448_s26 + $0x228] sm:$0xff] }
 0x23a   : > { %14236 = vmatpush3.bf16.msra.mxu0 %v15670_v62  ;;  %14257 = vmatprep.subr.bf16.mxu1 %v15671_v63  ;;  %v646_v62 = vpack.c.bf16 %v512_v61, %v378_v60  ;;  %v15704_v63 = vld [vmem:[%s20084_s1 + $0x11b8] sm:$0xff]   ;;  %v381_v60 = vld [vmem:[%s16448_s26 + $0x240] sm:$0xff]  ;;  %v515_v61 = vld [vmem:[%s16448_s26 + $0x670] sm:$0xff] }
 0x23b   : > { %14265 = vmatprep.subr.bf16.mxu0 %v15673_v7  ;;  %v15706_v7 = vld [vmem:[%s20084_s1 + $0x1200] sm:$0xff]  }
 0x23d   : > { %14258 = vmatpush3.bf16.msra.mxu1 %v15672_v3  ;;  %10598 = vmatmul.mubr.bf16.vlgmr.msra.gmra.mrb[64].mxu0 %v641_v6  ;;  %v15705_v3 = vld [vmem:[%s20084_s1 + $0x1240] sm:$0xff]   ;;  %v648_v6 = vpack.c.bf16 %v514_v5, %v380_v4  ;;  %v383_v4 = vld [vmem:[%s16448_s26 + $0x250] sm:$0xff] }
 0x23e   : > { %14266 = vmatpush3.bf16.msra.mxu0 %v15674_v11  ;;  %14287 = vmatprep.subr.bf16.mxu1 %v15675_v15  ;;  %v15707_v11 = vld [vmem:[%s20084_s1 + $0x12c0] sm:$0xff]  }
 0x23f   : > { %14267 = vmatprep.subr.bf16.mxu0 %v15677_v17  ;;  %10679 = vmatprep.mubr.bf16.mxu0 %v646_v62  ;;  %v649_v62 = vpack.c.bf16 %v515_v61, %v381_v60  ;;  %v517_v5 = vld [vmem:[%s16448_s26 + $0x680] sm:$0xff]  ;;  %v388_v60 = vld [vmem:[%s16448_s26 + $0x278] sm:$0xff]  ;;  %v522_v61 = vld [vmem:[%s16448_s26 + $0x6a8] sm:$0xff] }
 0x240   : > { %10639 = vmatmul.mubr.bf16.vlgmr.msra.gmra.mrb[64].mxu1 %v643_v14  ;;  %v15709_v14 = vld [vmem:[%s20084_s1 + $0x1248] sm:$0xff]  }
 0x241   : > { %14288 = vmatpush3.bf16.msra.mxu1 %v15676_v16  ;;  %10720 = vmatprep.mubr.bf16.mxu1 %v648_v6  ;;  %v15710_v16 = vld [vmem:[%s20084_s1 + $0x1208] sm:$0xff]   ;;  %v651_v6 = vpack.c.bf16 %v517_v5, %v383_v4  ;;  %v15772_v4 = vld [vmem:[%s20084_s1 + $0x1480] sm:$0xff]  }
 0x242   : > { %14268 = vmatpush3.bf16.msra.mxu0 %v15678_v19  ;;  %14289 = vmatprep.subr.bf16.mxu1 %v15679_v21  ;;  %v15711_v19 = vld [vmem:[%s20084_s1 + $0x12c8] sm:$0xff]  }
 0x243   : > { %14269 = vmatprep.subr.bf16.mxu0 %v15681_v26  ;;  %v15712_v21 = vld [vmem:[%s20084_s1 + $0x1288] sm:$0xff]  }
 0x244   : > { %v15773_v5 = vld [vmem:[%s20084_s1 + $0x1448] sm:$0xff]  }
 0x245   : > { %14290 = vmatpush3.bf16.msra.mxu1 %v15680_v24 }
 0x246   : > { %14270 = vmatpush3.bf16.msra.mxu0 %v15682_v29  ;;  %14291 = vmatprep.subr.bf16.mxu1 %v15683_v32 }
 0x247   : > { %v13973_v18 = vpop.f32.mrb[40].mxu0  ;;  %14271 = vmatprep.subr.bf16.mxu0 %v15685_v38 }
 0x248   : > { %v13974_v20 = vpop.f32.mrb[41].mxu0 }
 0x249   : > { %v13975_v22 = vadd.f32 %v13974_v20, %v13973_v18  ;;  %v13976_v23 = vpop.f32.mrb[42].mxu0  ;;  %14292 = vmatpush3.bf16.msra.mxu1 %v15684_v35 }
 0x24a   : > { %v13995_v25 = vpop.f32.mrb[40].mxu1  ;;  %v13977_v28 = vpop.f32.mrb[43].mxu0  ;;  %14272 = vmatpush3.bf16.msra.mxu0 %v15686_v41  ;;  %14293 = vmatprep.subr.bf16.mxu1 %v15687_v42  ;;  %v15721_v41 = vld [vmem:[%s20084_s1 + $0x1260] sm:$0xff]  }
 0x24b   : > { %v10108_v27 = vadd.f32 %v13975_v22, %v18120_v43  ;;  %v13978_v30 = vadd.f32 %v13977_v28, %v13976_v23  ;;  %v13996_v31 = vpop.f32.mrb[41].mxu1  ;;  %14273 = vmatprep.subr.bf16.mxu0 %v15689_v45  ;;  %v15722_v42 = vld [vmem:[%s20084_s1 + $0x1220] sm:$0xff]   ;;  %v15725_v45 = vld [vmem:[%s20084_s1 + $0x1268] sm:$0xff]  }
 0x24c   : > { %v13997_v33 = vadd.f32 %v13996_v31, %v13995_v25  ;;  %v13998_v34 = vpop.f32.mrb[42].mxu1  ;;  %v15713_v25 = vld [vmem:[%s20084_s1 + $0x1250] sm:$0xff]  }
 0x24d   : > { %v10111_v36 = vadd.f32 %v13978_v30, %v18128_v47  ;;  %v13999_v37 = vpop.f32.mrb[43].mxu1  ;;  %14294 = vmatpush3.bf16.msra.mxu1 %v15688_v44  ;;  %v15691_v47 = vld [vmem:[%s20084_s1 + $0x11e0] sm:$0xff]   ;;  %v15715_v31 = vld [vmem:[%s20084_s1 + $0x12d0] sm:$0xff]  }
 0x24e   : > { %v18230_v39 = vadd.f32 %v13997_v33, %v10108_v27  ;;  %v14000_v40 = vadd.f32 %v13999_v37, %v13998_v34  ;;  %14274 = vmatpush3.bf16.msra.mxu0 %v15690_v46  ;;  %14295 = vmatprep.subr.bf16.mxu1 %v15691_v47  ;;  %v15714_v27 = vld [vmem:[%s20084_s1 + $0x1210] sm:$0xff]   ;;  %v15718_v37 = vld [vmem:[%s20084_s1 + $0x1218] sm:$0xff]   ;;  %v15724_v44 = vld [vmem:[%s20084_s1 + $0x12a0] sm:$0xff]  }
 0x24f   : > { %14275 = vmatprep.subr.bf16.mxu0 %v15693_v49  ;;  %v15716_v33 = vld [vmem:[%s20084_s1 + $0x1290] sm:$0xff]   ;;  %v15726_v46 = vld [vmem:[%s20084_s1 + $0x1228] sm:$0xff]  }
 0x250   : > { %v18238_v43 = vadd.f32 %v14000_v40, %v10111_v36  ;;  %v15717_v36 = vld [vmem:[%s20084_s1 + $0x1258] sm:$0xff]   ;;  %v15727_v47 = vld [vmem:[%s20084_s1 + $0x12e8] sm:$0xff]   ;;  %v15729_v49 = vld [vmem:[%s20084_s1 + $0x1270] sm:$0xff]  }
 0x251   : > { %14296 = vmatpush3.bf16.msra.mxu1 %v15692_v48  ;;  %v15720_v40 = vld [vmem:[%s20084_s1 + $0x1298] sm:$0xff]   ;;  %v15728_v48 = vld [vmem:[%s20084_s1 + $0x12a8] sm:$0xff]  }
 0x252   : > { %14276 = vmatpush3.bf16.msra.mxu0 %v15694_v50  ;;  %14297 = vmatprep.subr.bf16.mxu1 %v15695_v51  ;;  %v15730_v50 = vld [vmem:[%s20084_s1 + $0x1230] sm:$0xff]  }
 0x253   : > { %14277 = vmatprep.subr.bf16.mxu0 %v15697_v53  ;;  %v15731_v51 = vld [vmem:[%s20084_s1 + $0x12f0] sm:$0xff]   ;;  %v15733_v53 = vld [vmem:[%s20084_s1 + $0x1278] sm:$0xff]  }
 0x255   : > { %14298 = vmatpush3.bf16.msra.mxu1 %v15696_v52  ;;  %v15732_v52 = vld [vmem:[%s20084_s1 + $0x12b0] sm:$0xff]  }
 0x256   : > { %14278 = vmatpush3.bf16.msra.mxu0 %v15698_v54  ;;  %14299 = vmatprep.subr.bf16.mxu1 %v15699_v55  ;;  %v15734_v54 = vld [vmem:[%s20084_s1 + $0x1238] sm:$0xff]  }
 0x257   : > { %14279 = vmatprep.subr.bf16.mxu0 %v15701_v57  ;;  %v15735_v55 = vld [vmem:[%s20084_s1 + $0x12f8] sm:$0xff]  }
 0x258   : > { %v516_v57 = vld [vmem:[%s16448_s26 + $0x678] sm:$0xff] }
 0x259   : > { %14300 = vmatpush3.bf16.msra.mxu1 %v15700_v56  ;;  %v382_v56 = vld [vmem:[%s16448_s26 + $0x248] sm:$0xff] }
 0x25a   : > { %14280 = vmatpush3.bf16.msra.mxu0 %v15702_v58  ;;  %14301 = vmatprep.subr.bf16.mxu1 %v15703_v59  ;;  %v650_v58 = vpack.c.bf16 %v516_v57, %v382_v56  ;;  %v15736_v59 = vld [vmem:[%s20084_s1 + $0x12b8] sm:$0xff]   ;;  %v385_v56 = vld [vmem:[%s16448_s26 + $0x260] sm:$0xff]  ;;  %v519_v57 = vld [vmem:[%s16448_s26 + $0x690] sm:$0xff] }
 0x25b   : > { %14309 = vmatprep.subr.bf16.mxu0 %v15705_v3  ;;  %v15738_v3 = vld [vmem:[%s20084_s1 + $0x1300] sm:$0xff]  }
 0x25d   : > { %14302 = vmatpush3.bf16.msra.mxu1 %v15704_v63  ;;  %10680 = vmatmul.mubr.bf16.vlgmr.msra.gmra.mrb[68].mxu0 %v645_v2  ;;  %v15737_v63 = vld [vmem:[%s20084_s1 + $0x1340] sm:$0xff]   ;;  %v652_v2 = vpack.c.bf16 %v518_v1, %v384_v0  ;;  %v387_v0 = vld [vmem:[%s16448_s26 + $0x270] sm:$0xff] }
 0x25e   : > { %14310 = vmatpush3.bf16.msra.mxu0 %v15706_v7  ;;  %14331 = vmatprep.subr.bf16.mxu1 %v15707_v11  ;;  %v15739_v7 = vld [vmem:[%s20084_s1 + $0x13c0] sm:$0xff]   ;;  %v15742_v11 = vld [vmem:[%s20084_s1 + $0x1308] sm:$0xff]  }
 0x25f   : > { %14311 = vmatprep.subr.bf16.mxu0 %v15709_v14  ;;  %10761 = vmatprep.mubr.bf16.mxu0 %v650_v58  ;;  %v653_v58 = vpack.c.bf16 %v519_v57, %v385_v56  ;;  %v521_v1 = vld [vmem:[%s16448_s26 + $0x6a0] sm:$0xff]  ;;  %v392_v56 = vld [vmem:[%s16448_s26 + $0x298] sm:$0xff]  ;;  %v526_v57 = vld [vmem:[%s16448_s26 + $0x6c8] sm:$0xff] }
 0x260   : > { %10721 = vmatmul.mubr.bf16.vlgmr.msra.gmra.mrb[68].mxu1 %v647_v10 }
 0x261   : > { %14332 = vmatpush3.bf16.msra.mxu1 %v15708_v12  ;;  %10802 = vmatprep.mubr.bf16.mxu1 %v652_v2  ;;  %v655_v2 = vpack.c.bf16 %v521_v1, %v387_v0  ;;  %v15804_v0 = vld [vmem:[%s20084_s1 + $0x1580] sm:$0xff]  }
 0x262   : > { %14312 = vmatpush3.bf16.msra.mxu0 %v15710_v16  ;;  %14333 = vmatprep.subr.bf16.mxu1 %v15711_v19  ;;  %v15744_v16 = vld [vmem:[%s20084_s1 + $0x1388] sm:$0xff]  }
 0x263   : > { %14313 = vmatprep.subr.bf16.mxu0 %v15713_v25 }
 0x265   : > { %14334 = vmatpush3.bf16.msra.mxu1 %v15712_v21  ;;  %v15746_v21 = vld [vmem:[%s20084_s1 + $0x1310] sm:$0xff]  }
 0x266   : > { %14314 = vmatpush3.bf16.msra.mxu0 %v15714_v27  ;;  %14335 = vmatprep.subr.bf16.mxu1 %v15715_v31  ;;  %v15748_v27 = vld [vmem:[%s20084_s1 + $0x1390] sm:$0xff]  }
 0x267   : > { %v14017_v13 = vpop.f32.mrb[44].mxu0  ;;  %14315 = vmatprep.subr.bf16.mxu0 %v15717_v36  ;;  %v15752_v36 = vld [vmem:[%s20084_s1 + $0x1398] sm:$0xff]  }
 0x268   : > { %v14018_v15 = vpop.f32.mrb[45].mxu0 }
 0x269   : > { %v14019_v17 = vadd.f32 %v14018_v15, %v14017_v13  ;;  %v14020_v18 = vpop.f32.mrb[46].mxu0  ;;  %14336 = vmatpush3.bf16.msra.mxu1 %v15716_v33  ;;  %v15743_v13 = vld [vmem:[%s20084_s1 + $0x13c8] sm:$0xff]   ;;  %v15750_v33 = vld [vmem:[%s20084_s1 + $0x1318] sm:$0xff]  }
 0x26a   : > { %v14021_v20 = vpop.f32.mrb[47].mxu0  ;;  %v14039_v23 = vpop.f32.mrb[44].mxu1  ;;  %14316 = vmatpush3.bf16.msra.mxu0 %v15718_v37  ;;  %v15753_v37 = vld [vmem:[%s20084_s1 + $0x1360] sm:$0xff]  }
 0x26b   : > { %v10190_v22 = vadd.f32 %v14019_v17, %v18230_v39  ;;  %v14022_v24 = vadd.f32 %v14021_v20, %v14020_v18  ;;  %v14040_v26 = vpop.f32.mrb[45].mxu1  ;;  %v15719_v39 = vld [vmem:[%s20084_s1 + $0x12d8] sm:$0xff]   ;;  %14317 = vmatprep.subr.bf16.mxu0 %v15721_v41  ;;  %v15745_v18 = vld [vmem:[%s20084_s1 + $0x1350] sm:$0xff]   ;;  %v15757_v41 = vld [vmem:[%s20084_s1 + $0x1368] sm:$0xff]  }
 0x26c   : > { %v14041_v29 = vadd.f32 %v14040_v26, %v14039_v23  ;;  %v14042_v30 = vpop.f32.mrb[46].mxu1  ;;  %14337 = vmatprep.subr.bf16.mxu1 %v15719_v39  ;;  %v15755_v39 = vld [vmem:[%s20084_s1 + $0x13e0] sm:$0xff]  }
 0x26d   : > { %v10193_v28 = vadd.f32 %v14022_v24, %v18238_v43  ;;  %v14043_v32 = vpop.f32.mrb[47].mxu1  ;;  %14338 = vmatpush3.bf16.msra.mxu1 %v15720_v40  ;;  %v15723_v43 = vld [vmem:[%s20084_s1 + $0x12e0] sm:$0xff]   ;;  %v15747_v24 = vld [vmem:[%s20084_s1 + $0x13d0] sm:$0xff]  }
 0x26e   : > { %v18337_v34 = vadd.f32 %v14041_v29, %v10190_v22  ;;  %v14044_v35 = vadd.f32 %v14043_v32, %v14042_v30  ;;  %14318 = vmatpush3.bf16.msra.mxu0 %v15722_v42  ;;  %14339 = vmatprep.subr.bf16.mxu1 %v15723_v43  ;;  %v15749_v30 = vld [vmem:[%s20084_s1 + $0x1358] sm:$0xff]   ;;  %v15756_v40 = vld [vmem:[%s20084_s1 + $0x13a0] sm:$0xff]   ;;  %v15758_v42 = vld [vmem:[%s20084_s1 + $0x1328] sm:$0xff]  }
 0x26f   : > { %14319 = vmatprep.subr.bf16.mxu0 %v15725_v45  ;;  %v15759_v43 = vld [vmem:[%s20084_s1 + $0x13e8] sm:$0xff]   ;;  %v15761_v45 = vld [vmem:[%s20084_s1 + $0x1370] sm:$0xff]  }
 0x270   : > { %v18345_v38 = vadd.f32 %v14044_v35, %v10193_v28 }
 0x271   : > { %14340 = vmatpush3.bf16.msra.mxu1 %v15724_v44  ;;  %v15760_v44 = vld [vmem:[%s20084_s1 + $0x13a8] sm:$0xff]  }
 0x272   : > { %14320 = vmatpush3.bf16.msra.mxu0 %v15726_v46  ;;  %14341 = vmatprep.subr.bf16.mxu1 %v15727_v47  ;;  %v15762_v46 = vld [vmem:[%s20084_s1 + $0x1330] sm:$0xff]  }
 0x273   : > { %14321 = vmatprep.subr.bf16.mxu0 %v15729_v49  ;;  %v15763_v47 = vld [vmem:[%s20084_s1 + $0x13f0] sm:$0xff]   ;;  %v15765_v49 = vld [vmem:[%s20084_s1 + $0x1378] sm:$0xff]  }
 0x275   : > { %14342 = vmatpush3.bf16.msra.mxu1 %v15728_v48  ;;  %v15764_v48 = vld [vmem:[%s20084_s1 + $0x13b0] sm:$0xff]  }
 0x276   : > { %14322 = vmatpush3.bf16.msra.mxu0 %v15730_v50  ;;  %14343 = vmatprep.subr.bf16.mxu1 %v15731_v51  ;;  %v15766_v50 = vld [vmem:[%s20084_s1 + $0x1338] sm:$0xff]  }
 0x277   : > { %14323 = vmatprep.subr.bf16.mxu0 %v15733_v53  ;;  %v15767_v51 = vld [vmem:[%s20084_s1 + $0x13f8] sm:$0xff]  }
 0x278   : > { %v520_v53 = vld [vmem:[%s16448_s26 + $0x698] sm:$0xff] }
 0x279   : > { %14344 = vmatpush3.bf16.msra.mxu1 %v15732_v52  ;;  %v386_v52 = vld [vmem:[%s16448_s26 + $0x268] sm:$0xff] }
 0x27a   : > { %14324 = vmatpush3.bf16.msra.mxu0 %v15734_v54  ;;  %14345 = vmatprep.subr.bf16.mxu1 %v15735_v55  ;;  %v654_v54 = vpack.c.bf16 %v520_v53, %v386_v52  ;;  %v15768_v55 = vld [vmem:[%s20084_s1 + $0x13b8] sm:$0xff]   ;;  %v389_v52 = vld [vmem:[%s16448_s26 + $0x280] sm:$0xff]  ;;  %v523_v53 = vld [vmem:[%s16448_s26 + $0x6b0] sm:$0xff] }
 0x27b   : > { %14353 = vmatprep.subr.bf16.mxu0 %v15737_v63  ;;  %v15770_v63 = vld [vmem:[%s20084_s1 + $0x1400] sm:$0xff]  }
 0x27d   : > { %14346 = vmatpush3.bf16.msra.mxu1 %v15736_v59  ;;  %10762 = vmatmul.mubr.bf16.vlgmr.msra.gmra.mrb[72].mxu0 %v649_v62  ;;  %v15769_v59 = vld [vmem:[%s20084_s1 + $0x1440] sm:$0xff]   ;;  %v656_v62 = vpack.c.bf16 %v522_v61, %v388_v60  ;;  %v391_v60 = vld [vmem:[%s16448_s26 + $0x290] sm:$0xff] }
 0x27e   : > { %14354 = vmatpush3.bf16.msra.mxu0 %v15738_v3  ;;  %14375 = vmatprep.subr.bf16.mxu1 %v15739_v7  ;;  %v15771_v3 = vld [vmem:[%s20084_s1 + $0x14c0] sm:$0xff]   ;;  %v15774_v7 = vld [vmem:[%s20084_s1 + $0x1408] sm:$0xff]  }
 0x27f   : > { %14355 = vmatprep.subr.bf16.mxu0 %v15741_v9  ;;  %10843 = vmatprep.mubr.bf16.mxu0 %v654_v54  ;;  %v15775_v9 = vld [vmem:[%s20084_s1 + $0x14c8] sm:$0xff]   ;;  %v657_v54 = vpack.c.bf16 %v523_v53, %v389_v52  ;;  %v525_v61 = vld [vmem:[%s16448_s26 + $0x6c0] sm:$0xff]  ;;  %v396_v52 = vld [vmem:[%s16448_s26 + $0x2b8] sm:$0xff] }
 0x280   : > { %10803 = vmatmul.mubr.bf16.vlgmr.msra.gmra.mrb[72].mxu1 %v651_v6  ;;  %v530_v53 = vld [vmem:[%s16448_s26 + $0x6e8] sm:$0xff] }
 0x281   : > { %14376 = vmatpush3.bf16.msra.mxu1 %v15740_v8  ;;  %10884 = vmatprep.mubr.bf16.mxu1 %v656_v62  ;;  %v659_v62 = vpack.c.bf16 %v525_v61, %v391_v60  ;;  %v15836_v60 = vld [vmem:[%s20084_s1 + $0x1680] sm:$0xff]   ;;  %v15837_v61 = vld [vmem:[%s20084_s1 + $0x1648] sm:$0xff]  }
 0x282   : > { %14356 = vmatpush3.bf16.msra.mxu0 %v15742_v11  ;;  %14377 = vmatprep.subr.bf16.mxu1 %v15743_v13 }
 0x283   : > { %14357 = vmatprep.subr.bf16.mxu0 %v15745_v18 }
 0x285   : > { %14378 = vmatpush3.bf16.msra.mxu1 %v15744_v16 }
 0x286   : > { %14358 = vmatpush3.bf16.msra.mxu0 %v15746_v21  ;;  %14379 = vmatprep.subr.bf16.mxu1 %v15747_v24 }
 0x287   : > { %v14061_v10 = vpop.f32.mrb[48].mxu0  ;;  %14359 = vmatprep.subr.bf16.mxu0 %v15749_v30  ;;  %v15783_v30 = vld [vmem:[%s20084_s1 + $0x14d8] sm:$0xff]  }
 0x288   : > { %v14062_v12 = vpop.f32.mrb[49].mxu0 }
 0x289   : > { %v14063_v14 = vadd.f32 %v14062_v12, %v14061_v10  ;;  %v14064_v15 = vpop.f32.mrb[50].mxu0  ;;  %14380 = vmatpush3.bf16.msra.mxu1 %v15748_v27  ;;  %v15776_v12 = vld [vmem:[%s20084_s1 + $0x1488] sm:$0xff]  }
 0x28a   : > { %v14083_v17 = vpop.f32.mrb[48].mxu1  ;;  %v14065_v20 = vpop.f32.mrb[51].mxu0  ;;  %14360 = vmatpush3.bf16.msra.mxu0 %v15750_v33  ;;  %v15785_v33 = vld [vmem:[%s20084_s1 + $0x1460] sm:$0xff]  }
 0x28b   : > { %v10272_v19 = vadd.f32 %v14063_v14, %v18337_v34  ;;  %v14066_v22 = vadd.f32 %v14065_v20, %v14064_v15  ;;  %v14084_v23 = vpop.f32.mrb[49].mxu1  ;;  %v15751_v34 = vld [vmem:[%s20084_s1 + $0x13d8] sm:$0xff]   ;;  %14361 = vmatprep.subr.bf16.mxu0 %v15753_v37  ;;  %v15777_v14 = vld [vmem:[%s20084_s1 + $0x1450] sm:$0xff]   ;;  %v15789_v37 = vld [vmem:[%s20084_s1 + $0x1468] sm:$0xff]  }
 0x28c   : > { %v14085_v25 = vadd.f32 %v14084_v23, %v14083_v17  ;;  %v14086_v26 = vpop.f32.mrb[50].mxu1  ;;  %14381 = vmatprep.subr.bf16.mxu1 %v15751_v34  ;;  %v15778_v17 = vld [vmem:[%s20084_s1 + $0x1410] sm:$0xff]   ;;  %v15786_v34 = vld [vmem:[%s20084_s1 + $0x1420] sm:$0xff]  }
 0x28d   : > { %v10275_v28 = vadd.f32 %v14066_v22, %v18345_v38  ;;  %v14087_v29 = vpop.f32.mrb[51].mxu1  ;;  %14382 = vmatpush3.bf16.msra.mxu1 %v15752_v36  ;;  %v15754_v38 = vld [vmem:[%s20084_s1 + $0x1320] sm:$0xff]   ;;  %v15779_v20 = vld [vmem:[%s20084_s1 + $0x14d0] sm:$0xff]  }
 0x28e   : > { %v18450_v31 = vadd.f32 %v14085_v25, %v10272_v19  ;;  %v14088_v32 = vadd.f32 %v14087_v29, %v14086_v26  ;;  %14362 = vmatpush3.bf16.msra.mxu0 %v15754_v38  ;;  %14383 = vmatprep.subr.bf16.mxu1 %v15755_v39  ;;  %v15780_v23 = vld [vmem:[%s20084_s1 + $0x1490] sm:$0xff]   ;;  %v15781_v26 = vld [vmem:[%s20084_s1 + $0x1458] sm:$0xff]   ;;  %v15788_v36 = vld [vmem:[%s20084_s1 + $0x14a0] sm:$0xff]  }
 0x28f   : > { %14363 = vmatprep.subr.bf16.mxu0 %v15757_v41  ;;  %v15782_v29 = vld [vmem:[%s20084_s1 + $0x1418] sm:$0xff]   ;;  %v15790_v38 = vld [vmem:[%s20084_s1 + $0x1428] sm:$0xff]   ;;  %v15793_v41 = vld [vmem:[%s20084_s1 + $0x1470] sm:$0xff]  }
 0x290   : > { %v18458_v35 = vadd.f32 %v14088_v32, %v10275_v28  ;;  %v15784_v32 = vld [vmem:[%s20084_s1 + $0x1498] sm:$0xff]   ;;  %v15791_v39 = vld [vmem:[%s20084_s1 + $0x14e8] sm:$0xff]  }
 0x291   : > { %14384 = vmatpush3.bf16.msra.mxu1 %v15756_v40  ;;  %v15792_v40 = vld [vmem:[%s20084_s1 + $0x14a8] sm:$0xff]  }
 0x292   : > { %14364 = vmatpush3.bf16.msra.mxu0 %v15758_v42  ;;  %14385 = vmatprep.subr.bf16.mxu1 %v15759_v43  ;;  %v15794_v42 = vld [vmem:[%s20084_s1 + $0x1430] sm:$0xff]  }
 0x293   : > { %14365 = vmatprep.subr.bf16.mxu0 %v15761_v45  ;;  %v15795_v43 = vld [vmem:[%s20084_s1 + $0x14f0] sm:$0xff]   ;;  %v15797_v45 = vld [vmem:[%s20084_s1 + $0x1478] sm:$0xff]  }
 0x295   : > { %14386 = vmatpush3.bf16.msra.mxu1 %v15760_v44  ;;  %v15796_v44 = vld [vmem:[%s20084_s1 + $0x14b0] sm:$0xff]  }
 0x296   : > { %14366 = vmatpush3.bf16.msra.mxu0 %v15762_v46  ;;  %14387 = vmatprep.subr.bf16.mxu1 %v15763_v47  ;;  %v15798_v46 = vld [vmem:[%s20084_s1 + $0x1438] sm:$0xff]  }
 0x297   : > { %14367 = vmatprep.subr.bf16.mxu0 %v15765_v49  ;;  %v15799_v47 = vld [vmem:[%s20084_s1 + $0x14f8] sm:$0xff]  }
 0x298   : > { %v524_v49 = vld [vmem:[%s16448_s26 + $0x6b8] sm:$0xff] }
 0x299   : > { %14388 = vmatpush3.bf16.msra.mxu1 %v15764_v48  ;;  %v390_v48 = vld [vmem:[%s16448_s26 + $0x288] sm:$0xff] }
 0x29a   : > { %14368 = vmatpush3.bf16.msra.mxu0 %v15766_v50  ;;  %14389 = vmatprep.subr.bf16.mxu1 %v15767_v51  ;;  %v658_v50 = vpack.c.bf16 %v524_v49, %v390_v48  ;;  %v15800_v51 = vld [vmem:[%s20084_s1 + $0x14b8] sm:$0xff]   ;;  %v393_v48 = vld [vmem:[%s16448_s26 + $0x2a0] sm:$0xff]  ;;  %v527_v49 = vld [vmem:[%s16448_s26 + $0x6d0] sm:$0xff] }
 0x29b   : > { %14397 = vmatprep.subr.bf16.mxu0 %v15769_v59  ;;  %v15802_v59 = vld [vmem:[%s20084_s1 + $0x1500] sm:$0xff]  }
 0x29d   : > { %14390 = vmatpush3.bf16.msra.mxu1 %v15768_v55  ;;  %10844 = vmatmul.mubr.bf16.vlgmr.msra.gmra.mrb[76].mxu0 %v653_v58  ;;  %v15801_v55 = vld [vmem:[%s20084_s1 + $0x1540] sm:$0xff]   ;;  %v660_v58 = vpack.c.bf16 %v526_v57, %v392_v56  ;;  %v395_v56 = vld [vmem:[%s16448_s26 + $0x2b0] sm:$0xff] }
 0x29e   : > { %14398 = vmatpush3.bf16.msra.mxu0 %v15770_v63  ;;  %14419 = vmatprep.subr.bf16.mxu1 %v15771_v3  ;;  %v15803_v63 = vld [vmem:[%s20084_s1 + $0x15c0] sm:$0xff]  }
 0x29f   : > { %14399 = vmatprep.subr.bf16.mxu0 %v15773_v5  ;;  %10925 = vmatprep.mubr.bf16.mxu0 %v658_v50  ;;  %v661_v50 = vpack.c.bf16 %v527_v49, %v393_v48  ;;  %v529_v57 = vld [vmem:[%s16448_s26 + $0x6e0] sm:$0xff]  ;;  %v400_v48 = vld [vmem:[%s16448_s26 + $0x2d8] sm:$0xff]  ;;  %v534_v49 = vld [vmem:[%s16448_s26 + $0x708] sm:$0xff] }
 0x2a0   : > { %10885 = vmatmul.mubr.bf16.vlgmr.msra.gmra.mrb[76].mxu1 %v655_v2  ;;  %v15805_v2 = vld [vmem:[%s20084_s1 + $0x1548] sm:$0xff]  }
 0x2a1   : > { %14420 = vmatpush3.bf16.msra.mxu1 %v15772_v4  ;;  %10966 = vmatprep.mubr.bf16.mxu1 %v660_v58  ;;  %v15806_v4 = vld [vmem:[%s20084_s1 + $0x1508] sm:$0xff]   ;;  %v663_v58 = vpack.c.bf16 %v529_v57, %v395_v56  ;;  %v15868_v56 = vld [vmem:[%s20084_s1 + $0x1780] sm:$0xff]  }
 0x2a2   : > { %14400 = vmatpush3.bf16.msra.mxu0 %v15774_v7  ;;  %14421 = vmatprep.subr.bf16.mxu1 %v15775_v9  ;;  %v15807_v7 = vld [vmem:[%s20084_s1 + $0x15c8] sm:$0xff]  }
 0x2a3   : > { %14401 = vmatprep.subr.bf16.mxu0 %v15777_v14  ;;  %v15808_v9 = vld [vmem:[%s20084_s1 + $0x1588] sm:$0xff]  }
 0x2a4   : > { %v15869_v57 = vld [vmem:[%s20084_s1 + $0x1748] sm:$0xff]  }
 0x2a5   : > { %14422 = vmatpush3.bf16.msra.mxu1 %v15776_v12 }
 0x2a6   : > { %14402 = vmatpush3.bf16.msra.mxu0 %v15778_v17  ;;  %14423 = vmatprep.subr.bf16.mxu1 %v15779_v20 }
 0x2a7   : > { %v14105_v6 = vpop.f32.mrb[52].mxu0  ;;  %14403 = vmatprep.subr.bf16.mxu0 %v15781_v26 }
 0x2a8   : > { %v14106_v8 = vpop.f32.mrb[53].mxu0 }
 0x2a9   : > { %v14107_v10 = vadd.f32 %v14106_v8, %v14105_v6  ;;  %v14108_v11 = vpop.f32.mrb[54].mxu0  ;;  %14424 = vmatpush3.bf16.msra.mxu1 %v15780_v23 }
 0x2aa   : > { %v14127_v13 = vpop.f32.mrb[52].mxu1  ;;  %v14109_v16 = vpop.f32.mrb[55].mxu0  ;;  %14404 = vmatpush3.bf16.msra.mxu0 %v15782_v29  ;;  %14425 = vmatprep.subr.bf16.mxu1 %v15783_v30  ;;  %v15817_v29 = vld [vmem:[%s20084_s1 + $0x1560] sm:$0xff]  }
 0x2ab   : > { %v10354_v15 = vadd.f32 %v14107_v10, %v18450_v31  ;;  %v14110_v18 = vadd.f32 %v14109_v16, %v14108_v11  ;;  %v14128_v19 = vpop.f32.mrb[53].mxu1  ;;  %14405 = vmatprep.subr.bf16.mxu0 %v15785_v33  ;;  %v15818_v30 = vld [vmem:[%s20084_s1 + $0x1520] sm:$0xff]   ;;  %v15821_v33 = vld [vmem:[%s20084_s1 + $0x1568] sm:$0xff]  }
 0x2ac   : > { %v14129_v21 = vadd.f32 %v14128_v19, %v14127_v13  ;;  %v14130_v22 = vpop.f32.mrb[54].mxu1  ;;  %v15809_v13 = vld [vmem:[%s20084_s1 + $0x1550] sm:$0xff]  }
 0x2ad   : > { %v10357_v24 = vadd.f32 %v14110_v18, %v18458_v35  ;;  %v14131_v25 = vpop.f32.mrb[55].mxu1  ;;  %14426 = vmatpush3.bf16.msra.mxu1 %v15784_v32  ;;  %v15787_v35 = vld [vmem:[%s20084_s1 + $0x14e0] sm:$0xff]   ;;  %v15811_v19 = vld [vmem:[%s20084_s1 + $0x15d0] sm:$0xff]  }
 0x2ae   : > { %v18560_v27 = vadd.f32 %v14129_v21, %v10354_v15  ;;  %v14132_v28 = vadd.f32 %v14131_v25, %v14130_v22  ;;  %14406 = vmatpush3.bf16.msra.mxu0 %v15786_v34  ;;  %14427 = vmatprep.subr.bf16.mxu1 %v15787_v35  ;;  %v15810_v15 = vld [vmem:[%s20084_s1 + $0x1510] sm:$0xff]   ;;  %v15814_v25 = vld [vmem:[%s20084_s1 + $0x1518] sm:$0xff]   ;;  %v15820_v32 = vld [vmem:[%s20084_s1 + $0x15a0] sm:$0xff]  }
 0x2af   : > { %14407 = vmatprep.subr.bf16.mxu0 %v15789_v37  ;;  %v15812_v21 = vld [vmem:[%s20084_s1 + $0x1590] sm:$0xff]   ;;  %v15822_v34 = vld [vmem:[%s20084_s1 + $0x1528] sm:$0xff]  }
 0x2b0   : > { %v18568_v31 = vadd.f32 %v14132_v28, %v10357_v24  ;;  %v15813_v24 = vld [vmem:[%s20084_s1 + $0x1558] sm:$0xff]   ;;  %v15823_v35 = vld [vmem:[%s20084_s1 + $0x15e8] sm:$0xff]   ;;  %v15825_v37 = vld [vmem:[%s20084_s1 + $0x1570] sm:$0xff]  }
 0x2b1   : > { %14428 = vmatpush3.bf16.msra.mxu1 %v15788_v36  ;;  %v15816_v28 = vld [vmem:[%s20084_s1 + $0x1598] sm:$0xff]   ;;  %v15824_v36 = vld [vmem:[%s20084_s1 + $0x15a8] sm:$0xff]  }
 0x2b2   : > { %14408 = vmatpush3.bf16.msra.mxu0 %v15790_v38  ;;  %14429 = vmatprep.subr.bf16.mxu1 %v15791_v39  ;;  %v15826_v38 = vld [vmem:[%s20084_s1 + $0x1530] sm:$0xff]  }
 0x2b3   : > { %14409 = vmatprep.subr.bf16.mxu0 %v15793_v41  ;;  %v15827_v39 = vld [vmem:[%s20084_s1 + $0x15f0] sm:$0xff]   ;;  %v15829_v41 = vld [vmem:[%s20084_s1 + $0x1578] sm:$0xff]  }
 0x2b5   : > { %14430 = vmatpush3.bf16.msra.mxu1 %v15792_v40  ;;  %v15828_v40 = vld [vmem:[%s20084_s1 + $0x15b0] sm:$0xff]  }
 0x2b6   : > { %14410 = vmatpush3.bf16.msra.mxu0 %v15794_v42  ;;  %14431 = vmatprep.subr.bf16.mxu1 %v15795_v43  ;;  %v15830_v42 = vld [vmem:[%s20084_s1 + $0x1538] sm:$0xff]  }
 0x2b7   : > { %14411 = vmatprep.subr.bf16.mxu0 %v15797_v45  ;;  %v15831_v43 = vld [vmem:[%s20084_s1 + $0x15f8] sm:$0xff]  }
 0x2b8   : > { %v528_v45 = vld [vmem:[%s16448_s26 + $0x6d8] sm:$0xff] }
 0x2b9   : > { %14432 = vmatpush3.bf16.msra.mxu1 %v15796_v44  ;;  %v394_v44 = vld [vmem:[%s16448_s26 + $0x2a8] sm:$0xff] }
 0x2ba   : > { %14412 = vmatpush3.bf16.msra.mxu0 %v15798_v46  ;;  %14433 = vmatprep.subr.bf16.mxu1 %v15799_v47  ;;  %v662_v46 = vpack.c.bf16 %v528_v45, %v394_v44  ;;  %v15832_v47 = vld [vmem:[%s20084_s1 + $0x15b8] sm:$0xff]   ;;  %v397_v44 = vld [vmem:[%s16448_s26 + $0x2c0] sm:$0xff]  ;;  %v531_v45 = vld [vmem:[%s16448_s26 + $0x6f0] sm:$0xff] }
 0x2bb   : > { %14441 = vmatprep.subr.bf16.mxu0 %v15801_v55  ;;  %v15834_v55 = vld [vmem:[%s20084_s1 + $0x1600] sm:$0xff]  }
 0x2bd   : > { %14434 = vmatpush3.bf16.msra.mxu1 %v15800_v51  ;;  %10926 = vmatmul.mubr.bf16.vlgmr.msra.gmra.mrb[80].mxu0 %v657_v54  ;;  %v15833_v51 = vld [vmem:[%s20084_s1 + $0x1640] sm:$0xff]   ;;  %v664_v54 = vpack.c.bf16 %v530_v53, %v396_v52  ;;  %v399_v52 = vld [vmem:[%s16448_s26 + $0x2d0] sm:$0xff] }
 0x2be   : > { %14442 = vmatpush3.bf16.msra.mxu0 %v15802_v59  ;;  %14463 = vmatprep.subr.bf16.mxu1 %v15803_v63  ;;  %v15835_v59 = vld [vmem:[%s20084_s1 + $0x16c0] sm:$0xff]   ;;  %v15838_v63 = vld [vmem:[%s20084_s1 + $0x1608] sm:$0xff]  }
 0x2bf   : > { %14443 = vmatprep.subr.bf16.mxu0 %v15805_v2  ;;  %11007 = vmatprep.mubr.bf16.mxu0 %v662_v46  ;;  %v665_v46 = vpack.c.bf16 %v531_v45, %v397_v44  ;;  %v533_v53 = vld [vmem:[%s16448_s26 + $0x700] sm:$0xff]  ;;  %v404_v44 = vld [vmem:[%s16448_s26 + $0x2f8] sm:$0xff]  ;;  %v538_v45 = vld [vmem:[%s16448_s26 + $0x728] sm:$0xff] }
 0x2c0   : > { %10967 = vmatmul.mubr.bf16.vlgmr.msra.gmra.mrb[80].mxu1 %v659_v62 }
 0x2c1   : > { %14464 = vmatpush3.bf16.msra.mxu1 %v15804_v0  ;;  %11048 = vmatprep.mubr.bf16.mxu1 %v664_v54  ;;  %v667_v54 = vpack.c.bf16 %v533_v53, %v399_v52  ;;  %v15900_v52 = vld [vmem:[%s20084_s1 + $0x1880] sm:$0xff]  }
 0x2c2   : > { %14444 = vmatpush3.bf16.msra.mxu0 %v15806_v4  ;;  %14465 = vmatprep.subr.bf16.mxu1 %v15807_v7  ;;  %v15840_v4 = vld [vmem:[%s20084_s1 + $0x1688] sm:$0xff]  }
 0x2c3   : > { %14445 = vmatprep.subr.bf16.mxu0 %v15809_v13 }
 0x2c5   : > { %14466 = vmatpush3.bf16.msra.mxu1 %v15808_v9  ;;  %v15842_v9 = vld [vmem:[%s20084_s1 + $0x1610] sm:$0xff]  }
 0x2c6   : > { %14446 = vmatpush3.bf16.msra.mxu0 %v15810_v15  ;;  %14467 = vmatprep.subr.bf16.mxu1 %v15811_v19  ;;  %v15844_v15 = vld [vmem:[%s20084_s1 + $0x1690] sm:$0xff]  }
 0x2c7   : > { %v14149_v1 = vpop.f32.mrb[56].mxu0  ;;  %14447 = vmatprep.subr.bf16.mxu0 %v15813_v24  ;;  %v15848_v24 = vld [vmem:[%s20084_s1 + $0x1698] sm:$0xff]  }
 0x2c8   : > { %v14150_v3 = vpop.f32.mrb[57].mxu0 }
 0x2c9   : > { %v14151_v5 = vadd.f32 %v14150_v3, %v14149_v1  ;;  %v14152_v6 = vpop.f32.mrb[58].mxu0  ;;  %14468 = vmatpush3.bf16.msra.mxu1 %v15812_v21  ;;  %v15839_v1 = vld [vmem:[%s20084_s1 + $0x16c8] sm:$0xff]   ;;  %v15846_v21 = vld [vmem:[%s20084_s1 + $0x1618] sm:$0xff]  }
 0x2ca   : > { %v14153_v8 = vpop.f32.mrb[59].mxu0  ;;  %v14171_v11 = vpop.f32.mrb[56].mxu1  ;;  %14448 = vmatpush3.bf16.msra.mxu0 %v15814_v25  ;;  %v15849_v25 = vld [vmem:[%s20084_s1 + $0x1660] sm:$0xff]  }
 0x2cb   : > { %v10436_v10 = vadd.f32 %v14151_v5, %v18560_v27  ;;  %v14154_v12 = vadd.f32 %v14153_v8, %v14152_v6  ;;  %v14172_v14 = vpop.f32.mrb[57].mxu1  ;;  %v15815_v27 = vld [vmem:[%s20084_s1 + $0x15d8] sm:$0xff]   ;;  %14449 = vmatprep.subr.bf16.mxu0 %v15817_v29  ;;  %v15841_v6 = vld [vmem:[%s20084_s1 + $0x1650] sm:$0xff]   ;;  %v15853_v29 = vld [vmem:[%s20084_s1 + $0x1668] sm:$0xff]  }
 0x2cc   : > { %v14173_v17 = vadd.f32 %v14172_v14, %v14171_v11  ;;  %v14174_v18 = vpop.f32.mrb[58].mxu1  ;;  %14469 = vmatprep.subr.bf16.mxu1 %v15815_v27  ;;  %v15851_v27 = vld [vmem:[%s20084_s1 + $0x16e0] sm:$0xff]  }
 0x2cd   : > { %v10439_v16 = vadd.f32 %v14154_v12, %v18568_v31  ;;  %v14175_v20 = vpop.f32.mrb[59].mxu1  ;;  %14470 = vmatpush3.bf16.msra.mxu1 %v15816_v28  ;;  %v15819_v31 = vld [vmem:[%s20084_s1 + $0x15e0] sm:$0xff]   ;;  %v15843_v12 = vld [vmem:[%s20084_s1 + $0x16d0] sm:$0xff]  }
 0x2ce   : > { %v18667_v22 = vadd.f32 %v14173_v17, %v10436_v10  ;;  %v14176_v23 = vadd.f32 %v14175_v20, %v14174_v18  ;;  %14450 = vmatpush3.bf16.msra.mxu0 %v15818_v30  ;;  %14471 = vmatprep.subr.bf16.mxu1 %v15819_v31  ;;  %v15845_v18 = vld [vmem:[%s20084_s1 + $0x1658] sm:$0xff]   ;;  %v15852_v28 = vld [vmem:[%s20084_s1 + $0x16a0] sm:$0xff]   ;;  %v15854_v30 = vld [vmem:[%s20084_s1 + $0x1628] sm:$0xff]  }
 0x2cf   : > { %14451 = vmatprep.subr.bf16.mxu0 %v15821_v33  ;;  %v15855_v31 = vld [vmem:[%s20084_s1 + $0x16e8] sm:$0xff]   ;;  %v15857_v33 = vld [vmem:[%s20084_s1 + $0x1670] sm:$0xff]  }
 0x2d0   : > { %v18675_v26 = vadd.f32 %v14176_v23, %v10439_v16 }
 0x2d1   : > { %14472 = vmatpush3.bf16.msra.mxu1 %v15820_v32  ;;  %v15856_v32 = vld [vmem:[%s20084_s1 + $0x16a8] sm:$0xff]  }
 0x2d2   : > { %14452 = vmatpush3.bf16.msra.mxu0 %v15822_v34  ;;  %14473 = vmatprep.subr.bf16.mxu1 %v15823_v35  ;;  %v15858_v34 = vld [vmem:[%s20084_s1 + $0x1630] sm:$0xff]  }
 0x2d3   : > { %14453 = vmatprep.subr.bf16.mxu0 %v15825_v37  ;;  %v15859_v35 = vld [vmem:[%s20084_s1 + $0x16f0] sm:$0xff]   ;;  %v15861_v37 = vld [vmem:[%s20084_s1 + $0x1678] sm:$0xff]  }
 0x2d5   : > { %14474 = vmatpush3.bf16.msra.mxu1 %v15824_v36  ;;  %v15860_v36 = vld [vmem:[%s20084_s1 + $0x16b0] sm:$0xff]  }
 0x2d6   : > { %14454 = vmatpush3.bf16.msra.mxu0 %v15826_v38  ;;  %14475 = vmatprep.subr.bf16.mxu1 %v15827_v39  ;;  %v15862_v38 = vld [vmem:[%s20084_s1 + $0x1638] sm:$0xff]  }
 0x2d7   : > { %14455 = vmatprep.subr.bf16.mxu0 %v15829_v41  ;;  %v15863_v39 = vld [vmem:[%s20084_s1 + $0x16f8] sm:$0xff]  }
 0x2d8   : > { %v532_v41 = vld [vmem:[%s16448_s26 + $0x6f8] sm:$0xff] }
 0x2d9   : > { %14476 = vmatpush3.bf16.msra.mxu1 %v15828_v40  ;;  %v398_v40 = vld [vmem:[%s16448_s26 + $0x2c8] sm:$0xff] }
 0x2da   : > { %14456 = vmatpush3.bf16.msra.mxu0 %v15830_v42  ;;  %14477 = vmatprep.subr.bf16.mxu1 %v15831_v43  ;;  %v666_v42 = vpack.c.bf16 %v532_v41, %v398_v40  ;;  %v15864_v43 = vld [vmem:[%s20084_s1 + $0x16b8] sm:$0xff]   ;;  %v401_v40 = vld [vmem:[%s16448_s26 + $0x2e0] sm:$0xff]  ;;  %v535_v41 = vld [vmem:[%s16448_s26 + $0x710] sm:$0xff] }
 0x2db   : > { %14485 = vmatprep.subr.bf16.mxu0 %v15833_v51  ;;  %v15866_v51 = vld [vmem:[%s20084_s1 + $0x1700] sm:$0xff]  }
 0x2dd   : > { %14478 = vmatpush3.bf16.msra.mxu1 %v15832_v47  ;;  %11008 = vmatmul.mubr.bf16.vlgmr.msra.gmra.mrb[84].mxu0 %v661_v50  ;;  %v15865_v47 = vld [vmem:[%s20084_s1 + $0x1740] sm:$0xff]   ;;  %v668_v50 = vpack.c.bf16 %v534_v49, %v400_v48  ;;  %v403_v48 = vld [vmem:[%s16448_s26 + $0x2f0] sm:$0xff] }
 0x2de   : > { %14486 = vmatpush3.bf16.msra.mxu0 %v15834_v55  ;;  %14507 = vmatprep.subr.bf16.mxu1 %v15835_v59  ;;  %v15867_v55 = vld [vmem:[%s20084_s1 + $0x17c0] sm:$0xff]   ;;  %v15870_v59 = vld [vmem:[%s20084_s1 + $0x1708] sm:$0xff]  }
 0x2df   : > { %14487 = vmatprep.subr.bf16.mxu0 %v15837_v61  ;;  %11089 = vmatprep.mubr.bf16.mxu0 %v666_v42  ;;  %v15871_v61 = vld [vmem:[%s20084_s1 + $0x17c8] sm:$0xff]   ;;  %v669_v42 = vpack.c.bf16 %v535_v41, %v401_v40  ;;  %v537_v49 = vld [vmem:[%s16448_s26 + $0x720] sm:$0xff]  ;;  %v408_v40 = vld [vmem:[%s16448_s26 + $0x318] sm:$0xff] }
 0x2e0   : > { %11049 = vmatmul.mubr.bf16.vlgmr.msra.gmra.mrb[84].mxu1 %v663_v58  ;;  %v542_v41 = vld [vmem:[%s16448_s26 + $0x748] sm:$0xff] }
 0x2e1   : > { %14508 = vmatpush3.bf16.msra.mxu1 %v15836_v60  ;;  %11130 = vmatprep.mubr.bf16.mxu1 %v668_v50  ;;  %v671_v50 = vpack.c.bf16 %v537_v49, %v403_v48  ;;  %v15932_v48 = vld [vmem:[%s20084_s1 + $0x1980] sm:$0xff]   ;;  %v15933_v49 = vld [vmem:[%s20084_s1 + $0x1948] sm:$0xff]  }
 0x2e2   : > { %14488 = vmatpush3.bf16.msra.mxu0 %v15838_v63  ;;  %14509 = vmatprep.subr.bf16.mxu1 %v15839_v1 }
 0x2e3   : > { %14489 = vmatprep.subr.bf16.mxu0 %v15841_v6 }
 0x2e5   : > { %14510 = vmatpush3.bf16.msra.mxu1 %v15840_v4 }
 0x2e6   : > { %14490 = vmatpush3.bf16.msra.mxu0 %v15842_v9  ;;  %14511 = vmatprep.subr.bf16.mxu1 %v15843_v12 }
 0x2e7   : > { %v14193_v62 = vpop.f32.mrb[60].mxu0  ;;  %14491 = vmatprep.subr.bf16.mxu0 %v15845_v18  ;;  %v15879_v18 = vld [vmem:[%s20084_s1 + $0x17d8] sm:$0xff]  }
 0x2e8   : > { %v14194_v0 = vpop.f32.mrb[61].mxu0 }
 0x2e9   : > { %v14195_v2 = vadd.f32 %v14194_v0, %v14193_v62  ;;  %v14196_v3 = vpop.f32.mrb[62].mxu0  ;;  %14512 = vmatpush3.bf16.msra.mxu1 %v15844_v15  ;;  %v15872_v0 = vld [vmem:[%s20084_s1 + $0x1788] sm:$0xff]  }
 0x2ea   : > { %v14215_v5 = vpop.f32.mrb[60].mxu1  ;;  %v14197_v8 = vpop.f32.mrb[63].mxu0  ;;  %14492 = vmatpush3.bf16.msra.mxu0 %v15846_v21  ;;  %v15881_v21 = vld [vmem:[%s20084_s1 + $0x1760] sm:$0xff]  }
 0x2eb   : > { %v10518_v7 = vadd.f32 %v14195_v2, %v18667_v22  ;;  %v14198_v10 = vadd.f32 %v14197_v8, %v14196_v3  ;;  %v14216_v11 = vpop.f32.mrb[61].mxu1  ;;  %v15847_v22 = vld [vmem:[%s20084_s1 + $0x16d8] sm:$0xff]   ;;  %14493 = vmatprep.subr.bf16.mxu0 %v15849_v25  ;;  %v15873_v2 = vld [vmem:[%s20084_s1 + $0x1750] sm:$0xff]   ;;  %v15885_v25 = vld [vmem:[%s20084_s1 + $0x1768] sm:$0xff]  }
 0x2ec   : > { %v14217_v13 = vadd.f32 %v14216_v11, %v14215_v5  ;;  %v14218_v14 = vpop.f32.mrb[62].mxu1  ;;  %14513 = vmatprep.subr.bf16.mxu1 %v15847_v22  ;;  %v15874_v5 = vld [vmem:[%s20084_s1 + $0x1710] sm:$0xff]   ;;  %v15882_v22 = vld [vmem:[%s20084_s1 + $0x1720] sm:$0xff]  }
 0x2ed   : > { %v10521_v16 = vadd.f32 %v14198_v10, %v18675_v26  ;;  %v14219_v17 = vpop.f32.mrb[63].mxu1  ;;  %14514 = vmatpush3.bf16.msra.mxu1 %v15848_v24  ;;  %v15850_v26 = vld [vmem:[%s20084_s1 + $0x1620] sm:$0xff]   ;;  %v15875_v8 = vld [vmem:[%s20084_s1 + $0x17d0] sm:$0xff]  }
 0x2ee   : > { %v18780_v19 = vadd.f32 %v14217_v13, %v10518_v7  ;;  %v14220_v20 = vadd.f32 %v14219_v17, %v14218_v14  ;;  %14494 = vmatpush3.bf16.msra.mxu0 %v15850_v26  ;;  %14515 = vmatprep.subr.bf16.mxu1 %v15851_v27  ;;  %v15876_v11 = vld [vmem:[%s20084_s1 + $0x1790] sm:$0xff]   ;;  %v15877_v14 = vld [vmem:[%s20084_s1 + $0x1758] sm:$0xff]   ;;  %v15884_v24 = vld [vmem:[%s20084_s1 + $0x17a0] sm:$0xff]  }
 0x2ef   : > { %14495 = vmatprep.subr.bf16.mxu0 %v15853_v29  ;;  %v15878_v17 = vld [vmem:[%s20084_s1 + $0x1718] sm:$0xff]   ;;  %v15886_v26 = vld [vmem:[%s20084_s1 + $0x1728] sm:$0xff]   ;;  %v15889_v29 = vld [vmem:[%s20084_s1 + $0x1770] sm:$0xff]  }
 0x2f0   : > { %v18788_v23 = vadd.f32 %v14220_v20, %v10521_v16  ;;  %v15880_v20 = vld [vmem:[%s20084_s1 + $0x1798] sm:$0xff]   ;;  %v15887_v27 = vld [vmem:[%s20084_s1 + $0x17e8] sm:$0xff]  }
 0x2f1   : > { %14516 = vmatpush3.bf16.msra.mxu1 %v15852_v28  ;;  %v15888_v28 = vld [vmem:[%s20084_s1 + $0x17a8] sm:$0xff]  }
 0x2f2   : > { %14496 = vmatpush3.bf16.msra.mxu0 %v15854_v30  ;;  %14517 = vmatprep.subr.bf16.mxu1 %v15855_v31  ;;  %v15890_v30 = vld [vmem:[%s20084_s1 + $0x1730] sm:$0xff]  }
 0x2f3   : > { %14497 = vmatprep.subr.bf16.mxu0 %v15857_v33  ;;  %v15891_v31 = vld [vmem:[%s20084_s1 + $0x17f0] sm:$0xff]   ;;  %v15893_v33 = vld [vmem:[%s20084_s1 + $0x1778] sm:$0xff]  }
 0x2f5   : > { %14518 = vmatpush3.bf16.msra.mxu1 %v15856_v32  ;;  %v15892_v32 = vld [vmem:[%s20084_s1 + $0x17b0] sm:$0xff]  }
 0x2f6   : > { %14498 = vmatpush3.bf16.msra.mxu0 %v15858_v34  ;;  %14519 = vmatprep.subr.bf16.mxu1 %v15859_v35  ;;  %v15894_v34 = vld [vmem:[%s20084_s1 + $0x1738] sm:$0xff]  }
 0x2f7   : > { %14499 = vmatprep.subr.bf16.mxu0 %v15861_v37  ;;  %v15895_v35 = vld [vmem:[%s20084_s1 + $0x17f8] sm:$0xff]  }
 0x2f8   : > { %v536_v37 = vld [vmem:[%s16448_s26 + $0x718] sm:$0xff] }
 0x2f9   : > { %14520 = vmatpush3.bf16.msra.mxu1 %v15860_v36  ;;  %v402_v36 = vld [vmem:[%s16448_s26 + $0x2e8] sm:$0xff] }
 0x2fa   : > { %14500 = vmatpush3.bf16.msra.mxu0 %v15862_v38  ;;  %14521 = vmatprep.subr.bf16.mxu1 %v15863_v39  ;;  %v670_v38 = vpack.c.bf16 %v536_v37, %v402_v36  ;;  %v15896_v39 = vld [vmem:[%s20084_s1 + $0x17b8] sm:$0xff]   ;;  %v405_v36 = vld [vmem:[%s16448_s26 + $0x300] sm:$0xff]  ;;  %v539_v37 = vld [vmem:[%s16448_s26 + $0x730] sm:$0xff] }
 0x2fb   : > { %14529 = vmatprep.subr.bf16.mxu0 %v15865_v47  ;;  %v15898_v47 = vld [vmem:[%s20084_s1 + $0x1800] sm:$0xff]  }
 0x2fd   : > { %14522 = vmatpush3.bf16.msra.mxu1 %v15864_v43  ;;  %11090 = vmatmul.mubr.bf16.vlgmr.msra.gmra.mrb[88].mxu0 %v665_v46  ;;  %v15897_v43 = vld [vmem:[%s20084_s1 + $0x1840] sm:$0xff]   ;;  %v672_v46 = vpack.c.bf16 %v538_v45, %v404_v44  ;;  %v407_v44 = vld [vmem:[%s16448_s26 + $0x310] sm:$0xff] }
 0x2fe   : > { %14530 = vmatpush3.bf16.msra.mxu0 %v15866_v51  ;;  %14551 = vmatprep.subr.bf16.mxu1 %v15867_v55  ;;  %v15899_v51 = vld [vmem:[%s20084_s1 + $0x18c0] sm:$0xff]  }
 0x2ff   : > { %14531 = vmatprep.subr.bf16.mxu0 %v15869_v57  ;;  %11171 = vmatprep.mubr.bf16.mxu0 %v670_v38  ;;  %v673_v38 = vpack.c.bf16 %v539_v37, %v405_v36  ;;  %v541_v45 = vld [vmem:[%s16448_s26 + $0x740] sm:$0xff]  ;;  %v412_v36 = vld [vmem:[%s16448_s26 + $0x338] sm:$0xff]  ;;  %v546_v37 = vld [vmem:[%s16448_s26 + $0x768] sm:$0xff] }
 0x300   : > { %11131 = vmatmul.mubr.bf16.vlgmr.msra.gmra.mrb[88].mxu1 %v667_v54  ;;  %v15901_v54 = vld [vmem:[%s20084_s1 + $0x1848] sm:$0xff]  }
 0x301   : > { %14552 = vmatpush3.bf16.msra.mxu1 %v15868_v56  ;;  %11212 = vmatprep.mubr.bf16.mxu1 %v672_v46  ;;  %v15902_v56 = vld [vmem:[%s20084_s1 + $0x1808] sm:$0xff]   ;;  %v675_v46 = vpack.c.bf16 %v541_v45, %v407_v44  ;;  %v15964_v44 = vld [vmem:[%s20084_s1 + $0x1a80] sm:$0xff]  }
 0x302   : > { %14532 = vmatpush3.bf16.msra.mxu0 %v15870_v59  ;;  %14553 = vmatprep.subr.bf16.mxu1 %v15871_v61  ;;  %v15903_v59 = vld [vmem:[%s20084_s1 + $0x18c8] sm:$0xff]  }
 0x303   : > { %14533 = vmatprep.subr.bf16.mxu0 %v15873_v2  ;;  %v15904_v61 = vld [vmem:[%s20084_s1 + $0x1888] sm:$0xff]  }
 0x304   : > { %v15965_v45 = vld [vmem:[%s20084_s1 + $0x1a48] sm:$0xff]  }
 0x305   : > { %14554 = vmatpush3.bf16.msra.mxu1 %v15872_v0 }
 0x306   : > { %14534 = vmatpush3.bf16.msra.mxu0 %v15874_v5  ;;  %14555 = vmatprep.subr.bf16.mxu1 %v15875_v8 }
 0x307   : > { %14535 = vmatprep.subr.bf16.mxu0 %v15877_v14 }
 0x309   : > { %14556 = vmatpush3.bf16.msra.mxu1 %v15876_v11 }
 0x30a   : > { %14536 = vmatpush3.bf16.msra.mxu0 %v15878_v17  ;;  %14557 = vmatprep.subr.bf16.mxu1 %v15879_v18  ;;  %v15913_v17 = vld [vmem:[%s20084_s1 + $0x1860] sm:$0xff]  }
 0x30b   : > { %14537 = vmatprep.subr.bf16.mxu0 %v15881_v21  ;;  %v15914_v18 = vld [vmem:[%s20084_s1 + $0x1820] sm:$0xff]   ;;  %v15917_v21 = vld [vmem:[%s20084_s1 + $0x1868] sm:$0xff]  }
 0x30d   : > { %14558 = vmatpush3.bf16.msra.mxu1 %v15880_v20  ;;  %v15916_v20 = vld [vmem:[%s20084_s1 + $0x18a0] sm:$0xff]  }
 0x30e   : > { %14538 = vmatpush3.bf16.msra.mxu0 %v15882_v22  ;;  %v15918_v22 = vld [vmem:[%s20084_s1 + $0x1828] sm:$0xff]  }
 0x30f   : > { %14539 = vmatprep.subr.bf16.mxu0 %v15885_v25  ;;  %v15921_v25 = vld [vmem:[%s20084_s1 + $0x1870] sm:$0xff]  }
 0x310   : > { %v14237_v58 = vpop.f32.mrb[64].mxu0 }
 0x311   : > { %v14238_v60 = vpop.f32.mrb[65].mxu0 }
 0x312   : > { %v14239_v62 = vadd.f32 %v14238_v60, %v14237_v58  ;;  %v14240_v63 = vpop.f32.mrb[66].mxu0  ;;  %14540 = vmatpush3.bf16.msra.mxu0 %v15886_v26  ;;  %v15922_v26 = vld [vmem:[%s20084_s1 + $0x1830] sm:$0xff]  }
 0x313   : > { %v14259_v1 = vpop.f32.mrb[64].mxu1  ;;  %v14241_v4 = vpop.f32.mrb[67].mxu0  ;;  %14541 = vmatprep.subr.bf16.mxu0 %v15889_v29  ;;  %v15925_v29 = vld [vmem:[%s20084_s1 + $0x1878] sm:$0xff]  }
 0x314   : > { %v10600_v3 = vadd.f32 %v14239_v62, %v18780_v19  ;;  %v14242_v6 = vadd.f32 %v14241_v4, %v14240_v63  ;;  %v14260_v7 = vpop.f32.mrb[65].mxu1 }
 0x315   : > { %v14261_v9 = vadd.f32 %v14260_v7, %v14259_v1  ;;  %v14262_v10 = vpop.f32.mrb[66].mxu1  ;;  %v15905_v1 = vld [vmem:[%s20084_s1 + $0x1850] sm:$0xff]  }
 0x316   : > { %v10603_v12 = vadd.f32 %v14242_v6, %v18788_v23  ;;  %v14263_v13 = vpop.f32.mrb[67].mxu1  ;;  %v15883_v23 = vld [vmem:[%s20084_s1 + $0x17e0] sm:$0xff]   ;;  %14542 = vmatpush3.bf16.msra.mxu0 %v15890_v30  ;;  %v15907_v7 = vld [vmem:[%s20084_s1 + $0x18d0] sm:$0xff]   ;;  %v15926_v30 = vld [vmem:[%s20084_s1 + $0x1838] sm:$0xff]  }
 0x317   : > { %v18890_v15 = vadd.f32 %v14261_v9, %v10600_v3  ;;  %v14264_v16 = vadd.f32 %v14263_v13, %v14262_v10  ;;  %14559 = vmatprep.subr.bf16.mxu1 %v15883_v23  ;;  %14543 = vmatprep.subr.bf16.mxu0 %v15893_v33  ;;  %v15906_v3 = vld [vmem:[%s20084_s1 + $0x1810] sm:$0xff]   ;;  %v15910_v13 = vld [vmem:[%s20084_s1 + $0x1818] sm:$0xff]   ;;  %v15919_v23 = vld [vmem:[%s20084_s1 + $0x18e8] sm:$0xff]  }
 0x318   : > { %14560 = vmatpush3.bf16.msra.mxu1 %v15884_v24  ;;  %v15908_v9 = vld [vmem:[%s20084_s1 + $0x1890] sm:$0xff]   ;;  %v15920_v24 = vld [vmem:[%s20084_s1 + $0x18a8] sm:$0xff]   ;;  %v540_v33 = vld [vmem:[%s16448_s26 + $0x738] sm:$0xff] }
 0x319   : > { %v18898_v19 = vadd.f32 %v14264_v16, %v10603_v12  ;;  %14561 = vmatprep.subr.bf16.mxu1 %v15887_v27  ;;  %v15909_v12 = vld [vmem:[%s20084_s1 + $0x1858] sm:$0xff]   ;;  %v15923_v27 = vld [vmem:[%s20084_s1 + $0x18f0] sm:$0xff]  }
 0x31a   : > { %14544 = vmatpush3.bf16.msra.mxu0 %v15894_v34  ;;  %v15912_v16 = vld [vmem:[%s20084_s1 + $0x1898] sm:$0xff]  }
 0x31b   : > { %14573 = vmatprep.subr.bf16.mxu0 %v15897_v43  ;;  %v15930_v43 = vld [vmem:[%s20084_s1 + $0x1900] sm:$0xff]  }
 0x31c   : > { %14562 = vmatpush3.bf16.msra.mxu1 %v15888_v28  ;;  %v15924_v28 = vld [vmem:[%s20084_s1 + $0x18b0] sm:$0xff]  }
 0x31d   : > { %14563 = vmatprep.subr.bf16.mxu1 %v15891_v31  ;;  %11172 = vmatmul.mubr.bf16.vlgmr.msra.gmra.mrb[92].mxu0 %v669_v42  ;;  %v15927_v31 = vld [vmem:[%s20084_s1 + $0x18f8] sm:$0xff]   ;;  %v676_v42 = vpack.c.bf16 %v542_v41, %v408_v40  ;;  %v411_v40 = vld [vmem:[%s16448_s26 + $0x330] sm:$0xff]  ;;  %v545_v41 = vld [vmem:[%s16448_s26 + $0x760] sm:$0xff] }
 0x31e   : > { %14574 = vmatpush3.bf16.msra.mxu0 %v15898_v47  ;;  %v15931_v47 = vld [vmem:[%s20084_s1 + $0x19c0] sm:$0xff]  }
 0x31f   : > { %14575 = vmatprep.subr.bf16.mxu0 %v15901_v54 }
 0x320   : > { %14564 = vmatpush3.bf16.msra.mxu1 %v15892_v32  ;;  %v406_v32 = vld [vmem:[%s16448_s26 + $0x308] sm:$0xff] }
 0x321   : > { %14565 = vmatprep.subr.bf16.mxu1 %v15895_v35  ;;  %v674_v34 = vpack.c.bf16 %v540_v33, %v406_v32  ;;  %v15928_v35 = vld [vmem:[%s20084_s1 + $0x18b8] sm:$0xff]   ;;  %v409_v32 = vld [vmem:[%s16448_s26 + $0x320] sm:$0xff]  ;;  %v543_v33 = vld [vmem:[%s16448_s26 + $0x750] sm:$0xff] }
 0x322   : > { %14576 = vmatpush3.bf16.msra.mxu0 %v15902_v56  ;;  %v15936_v56 = vld [vmem:[%s20084_s1 + $0x1988] sm:$0xff]  }
 0x323   : > { %14577 = vmatprep.subr.bf16.mxu0 %v15905_v1  ;;  %11253 = vmatprep.mubr.bf16.mxu0 %v674_v34  ;;  %v677_v34 = vpack.c.bf16 %v543_v33, %v409_v32  ;;  %v416_v32 = vld [vmem:[%s16448_s26 + $0x358] sm:$0xff]  ;;  %v550_v33 = vld [vmem:[%s16448_s26 + $0x788] sm:$0xff] }
 0x324   : > { %14566 = vmatpush3.bf16.msra.mxu1 %v15896_v39  ;;  %v15929_v39 = vld [vmem:[%s20084_s1 + $0x1940] sm:$0xff]  }
 0x325   : > { %14595 = vmatprep.subr.bf16.mxu1 %v15899_v51  ;;  %v15934_v51 = vld [vmem:[%s20084_s1 + $0x1908] sm:$0xff]  }
 0x326   : > { %14578 = vmatpush3.bf16.msra.mxu0 %v15906_v3  ;;  %v15940_v3 = vld [vmem:[%s20084_s1 + $0x1990] sm:$0xff]  }
 0x327   : > { %11213 = vmatmul.mubr.bf16.vlgmr.msra.gmra.mrb[92].mxu1 %v671_v50  ;;  %14579 = vmatprep.subr.bf16.mxu0 %v15909_v12  ;;  %v15944_v12 = vld [vmem:[%s20084_s1 + $0x1998] sm:$0xff]  }
 0x328   : > { %14596 = vmatpush3.bf16.msra.mxu1 %v15900_v52  ;;  %11294 = vmatprep.mubr.bf16.mxu1 %v676_v42  ;;  %v679_v42 = vpack.c.bf16 %v545_v41, %v411_v40  ;;  %v15996_v40 = vld [vmem:[%s20084_s1 + $0x1b80] sm:$0xff]  }
 0x329   : > { %14597 = vmatprep.subr.bf16.mxu1 %v15903_v59 }
 0x32a   : > { %14580 = vmatpush3.bf16.msra.mxu0 %v15910_v13  ;;  %v15945_v13 = vld [vmem:[%s20084_s1 + $0x1960] sm:$0xff]  }
 0x32b   : > { %14581 = vmatprep.subr.bf16.mxu0 %v15913_v17  ;;  %v15949_v17 = vld [vmem:[%s20084_s1 + $0x1968] sm:$0xff]  }
 0x32c   : > { %14598 = vmatpush3.bf16.msra.mxu1 %v15904_v61  ;;  %v15938_v61 = vld [vmem:[%s20084_s1 + $0x1910] sm:$0xff]  }
 0x32d   : > { %14599 = vmatprep.subr.bf16.mxu1 %v15907_v7 }
 0x32e   : > { %14582 = vmatpush3.bf16.msra.mxu0 %v15914_v18  ;;  %v15950_v18 = vld [vmem:[%s20084_s1 + $0x1928] sm:$0xff]  }
 0x32f   : > { %14583 = vmatprep.subr.bf16.mxu0 %v15917_v21  ;;  %v15953_v21 = vld [vmem:[%s20084_s1 + $0x1970] sm:$0xff]  }
 0x330   : > { %v14281_v53 = vpop.f32.mrb[68].mxu0  ;;  %14600 = vmatpush3.bf16.msra.mxu1 %v15908_v9  ;;  %v15942_v9 = vld [vmem:[%s20084_s1 + $0x1918] sm:$0xff]  }
 0x331   : > { %v14282_v55 = vpop.f32.mrb[69].mxu0 }
 0x332   : > { %v14283_v57 = vadd.f32 %v14282_v55, %v14281_v53  ;;  %v14284_v58 = vpop.f32.mrb[70].mxu0  ;;  %14584 = vmatpush3.bf16.msra.mxu0 %v15918_v22  ;;  %v15935_v53 = vld [vmem:[%s20084_s1 + $0x19c8] sm:$0xff]   ;;  %v15954_v22 = vld [vmem:[%s20084_s1 + $0x1930] sm:$0xff]  }
 0x333   : > { %v14285_v60 = vpop.f32.mrb[71].mxu0  ;;  %v14303_v63 = vpop.f32.mrb[68].mxu1  ;;  %14585 = vmatprep.subr.bf16.mxu0 %v15921_v25  ;;  %v15957_v25 = vld [vmem:[%s20084_s1 + $0x1978] sm:$0xff]  }
 0x334   : > { %v10682_v62 = vadd.f32 %v14283_v57, %v18890_v15  ;;  %v14286_v0 = vadd.f32 %v14285_v60, %v14284_v58  ;;  %v14304_v2 = vpop.f32.mrb[69].mxu1  ;;  %v15911_v15 = vld [vmem:[%s20084_s1 + $0x18d8] sm:$0xff]   ;;  %v15937_v58 = vld [vmem:[%s20084_s1 + $0x1950] sm:$0xff]  }
 0x335   : > { %v14305_v5 = vadd.f32 %v14304_v2, %v14303_v63  ;;  %v14306_v6 = vpop.f32.mrb[70].mxu1  ;;  %14601 = vmatprep.subr.bf16.mxu1 %v15911_v15  ;;  %v15947_v15 = vld [vmem:[%s20084_s1 + $0x19e0] sm:$0xff]  }
 0x336   : > { %v10685_v4 = vadd.f32 %v14286_v0, %v18898_v19  ;;  %v14307_v8 = vpop.f32.mrb[71].mxu1  ;;  %14602 = vmatpush3.bf16.msra.mxu1 %v15912_v16  ;;  %v15915_v19 = vld [vmem:[%s20084_s1 + $0x18e0] sm:$0xff]   ;;  %14586 = vmatpush3.bf16.msra.mxu0 %v15922_v26  ;;  %v15939_v0 = vld [vmem:[%s20084_s1 + $0x19d0] sm:$0xff]   ;;  %v15958_v26 = vld [vmem:[%s20084_s1 + $0x1938] sm:$0xff]  }
 0x337   : > { %v18997_v10 = vadd.f32 %v14305_v5, %v10682_v62  ;;  %v14308_v11 = vadd.f32 %v14307_v8, %v14306_v6  ;;  %14603 = vmatprep.subr.bf16.mxu1 %v15915_v19  ;;  %14587 = vmatprep.subr.bf16.mxu0 %v15925_v29  ;;  %v15941_v6 = vld [vmem:[%s20084_s1 + $0x1958] sm:$0xff]   ;;  %v15948_v16 = vld [vmem:[%s20084_s1 + $0x19a0] sm:$0xff]   ;;  %v15951_v19 = vld [vmem:[%s20084_s1 + $0x19e8] sm:$0xff]  }
 0x338   : > { %v544_v29 = vld [vmem:[%s16448_s26 + $0x758] sm:$0xff] }
 0x339   : > { %v19005_v14 = vadd.f32 %v14308_v11, %v10685_v4 }
 0x33a   : > { %14604 = vmatpush3.bf16.msra.mxu1 %v15916_v20  ;;  %14588 = vmatpush3.bf16.msra.mxu0 %v15926_v30  ;;  %v15952_v20 = vld [vmem:[%s20084_s1 + $0x19a8] sm:$0xff]  }
 0x33b   : > { %14605 = vmatprep.subr.bf16.mxu1 %v15919_v23  ;;  %14617 = vmatprep.subr.bf16.mxu0 %v15929_v39  ;;  %v15955_v23 = vld [vmem:[%s20084_s1 + $0x19f0] sm:$0xff]   ;;  %v15962_v39 = vld [vmem:[%s20084_s1 + $0x1a00] sm:$0xff]  }
 0x33d   : > { %11254 = vmatmul.mubr.bf16.vlgmr.msra.gmra.mrb[96].mxu0 %v673_v38  ;;  %v680_v38 = vpack.c.bf16 %v546_v37, %v412_v36  ;;  %v415_v36 = vld [vmem:[%s16448_s26 + $0x350] sm:$0xff]  ;;  %v549_v37 = vld [vmem:[%s16448_s26 + $0x780] sm:$0xff] }
 0x33e   : > { %14606 = vmatpush3.bf16.msra.mxu1 %v15920_v24  ;;  %14618 = vmatpush3.bf16.msra.mxu0 %v15930_v43  ;;  %v15956_v24 = vld [vmem:[%s20084_s1 + $0x19b0] sm:$0xff]   ;;  %v15963_v43 = vld [vmem:[%s20084_s1 + $0x1ac0] sm:$0xff]  }
 0x33f   : > { %14607 = vmatprep.subr.bf16.mxu1 %v15923_v27  ;;  %14619 = vmatprep.subr.bf16.mxu0 %v15933_v49  ;;  %v15959_v27 = vld [vmem:[%s20084_s1 + $0x19f8] sm:$0xff]   ;;  %v15967_v49 = vld [vmem:[%s20084_s1 + $0x1ac8] sm:$0xff]  }
 0x342   : > { %14608 = vmatpush3.bf16.msra.mxu1 %v15924_v28  ;;  %14620 = vmatpush3.bf16.msra.mxu0 %v15934_v51  ;;  %v410_v28 = vld [vmem:[%s16448_s26 + $0x328] sm:$0xff] }
 0x343   : > { %14609 = vmatprep.subr.bf16.mxu1 %v15927_v31  ;;  %14621 = vmatprep.subr.bf16.mxu0 %v15937_v58  ;;  %v678_v30 = vpack.c.bf16 %v544_v29, %v410_v28  ;;  %v15960_v31 = vld [vmem:[%s20084_s1 + $0x19b8] sm:$0xff]   ;;  %v413_v28 = vld [vmem:[%s16448_s26 + $0x340] sm:$0xff]  ;;  %v547_v29 = vld [vmem:[%s16448_s26 + $0x770] sm:$0xff] }
 0x345   : > { %11335 = vmatprep.mubr.bf16.mxu0 %v678_v30  ;;  %v681_v30 = vpack.c.bf16 %v547_v29, %v413_v28  ;;  %v420_v28 = vld [vmem:[%s16448_s26 + $0x378] sm:$0xff]  ;;  %v554_v29 = vld [vmem:[%s16448_s26 + $0x7a8] sm:$0xff] }
 0x346   : > { %14610 = vmatpush3.bf16.msra.mxu1 %v15928_v35  ;;  %14622 = vmatpush3.bf16.msra.mxu0 %v15938_v61  ;;  %v15961_v35 = vld [vmem:[%s20084_s1 + $0x1a40] sm:$0xff]  }
 0x347   : > { %14639 = vmatprep.subr.bf16.mxu1 %v15931_v47  ;;  %14623 = vmatprep.subr.bf16.mxu0 %v15941_v6  ;;  %v15966_v47 = vld [vmem:[%s20084_s1 + $0x1a08] sm:$0xff]   ;;  %v15975_v6 = vld [vmem:[%s20084_s1 + $0x1ad8] sm:$0xff]  }
 0x349   : > { %11295 = vmatmul.mubr.bf16.vlgmr.msra.gmra.mrb[96].mxu1 %v675_v46 }
 0x34a   : > { %14640 = vmatpush3.bf16.msra.mxu1 %v15932_v48  ;;  %14624 = vmatpush3.bf16.msra.mxu0 %v15942_v9  ;;  %v15977_v9 = vld [vmem:[%s20084_s1 + $0x1a60] sm:$0xff]  }
 0x34b   : > { %14641 = vmatprep.subr.bf16.mxu1 %v15935_v53  ;;  %14625 = vmatprep.subr.bf16.mxu0 %v15945_v13  ;;  %v15981_v13 = vld [vmem:[%s20084_s1 + $0x1a68] sm:$0xff]  }
 0x34c   : > { %11376 = vmatprep.mubr.bf16.mxu1 %v680_v38  ;;  %v683_v38 = vpack.c.bf16 %v549_v37, %v415_v36  ;;  %v16028_v36 = vld [vmem:[%s20084_s1 + $0x1c80] sm:$0xff]   ;;  %v16029_v37 = vld [vmem:[%s20084_s1 + $0x1c48] sm:$0xff]  }
 0x34e   : > { %14642 = vmatpush3.bf16.msra.mxu1 %v15936_v56 }
 0x34f   : > { %14643 = vmatprep.subr.bf16.mxu1 %v15939_v0 }
 0x350   : > { %v14325_v50 = vpop.f32.mrb[72].mxu0 }
 0x351   : > { %v14326_v52 = vpop.f32.mrb[73].mxu0 }
 0x352   : > { %v14327_v54 = vadd.f32 %v14326_v52, %v14325_v50  ;;  %v14328_v55 = vpop.f32.mrb[74].mxu0  ;;  %14644 = vmatpush3.bf16.msra.mxu1 %v15940_v3  ;;  %v15968_v52 = vld [vmem:[%s20084_s1 + $0x1a88] sm:$0xff]  }
 0x353   : > { %v14347_v57 = vpop.f32.mrb[72].mxu1  ;;  %v14329_v60 = vpop.f32.mrb[75].mxu0 }
 0x354   : > { %v10764_v59 = vadd.f32 %v14327_v54, %v18997_v10  ;;  %v14330_v62 = vadd.f32 %v14329_v60, %v14328_v55  ;;  %v14348_v63 = vpop.f32.mrb[73].mxu1  ;;  %v15943_v10 = vld [vmem:[%s20084_s1 + $0x19d8] sm:$0xff]   ;;  %v15969_v54 = vld [vmem:[%s20084_s1 + $0x1a50] sm:$0xff]  }
 0x355   : > { %v14349_v1 = vadd.f32 %v14348_v63, %v14347_v57  ;;  %v14350_v2 = vpop.f32.mrb[74].mxu1  ;;  %14645 = vmatprep.subr.bf16.mxu1 %v15943_v10  ;;  %v15970_v57 = vld [vmem:[%s20084_s1 + $0x1a10] sm:$0xff]   ;;  %v15978_v10 = vld [vmem:[%s20084_s1 + $0x1a20] sm:$0xff]  }
 0x356   : > { %v10767_v4 = vadd.f32 %v14330_v62, %v19005_v14  ;;  %v14351_v5 = vpop.f32.mrb[75].mxu1  ;;  %14646 = vmatpush3.bf16.msra.mxu1 %v15944_v12  ;;  %v15946_v14 = vld [vmem:[%s20084_s1 + $0x1920] sm:$0xff]   ;;  %v15971_v60 = vld [vmem:[%s20084_s1 + $0x1ad0] sm:$0xff]  }
 0x357   : > { %v19110_v7 = vadd.f32 %v14349_v1, %v10764_v59  ;;  %v14352_v8 = vadd.f32 %v14351_v5, %v14350_v2  ;;  %14626 = vmatpush3.bf16.msra.mxu0 %v15946_v14  ;;  %14647 = vmatprep.subr.bf16.mxu1 %v15947_v15  ;;  %v15972_v63 = vld [vmem:[%s20084_s1 + $0x1a90] sm:$0xff]   ;;  %v15973_v2 = vld [vmem:[%s20084_s1 + $0x1a58] sm:$0xff]   ;;  %v15980_v12 = vld [vmem:[%s20084_s1 + $0x1aa0] sm:$0xff]  }
 0x358   : > { %14627 = vmatprep.subr.bf16.mxu0 %v15949_v17  ;;  %v15974_v5 = vld [vmem:[%s20084_s1 + $0x1a18] sm:$0xff]   ;;  %v15982_v14 = vld [vmem:[%s20084_s1 + $0x1a28] sm:$0xff]   ;;  %v15985_v17 = vld [vmem:[%s20084_s1 + $0x1a70] sm:$0xff]  }
 0x359   : > { %v19118_v11 = vadd.f32 %v14352_v8, %v10767_v4  ;;  %v15976_v8 = vld [vmem:[%s20084_s1 + $0x1a98] sm:$0xff]   ;;  %v15983_v15 = vld [vmem:[%s20084_s1 + $0x1ae8] sm:$0xff]  }
 0x35a   : > { %14648 = vmatpush3.bf16.msra.mxu1 %v15948_v16  ;;  %v15984_v16 = vld [vmem:[%s20084_s1 + $0x1aa8] sm:$0xff]  }
 0x35b   : > { %14628 = vmatpush3.bf16.msra.mxu0 %v15950_v18  ;;  %14649 = vmatprep.subr.bf16.mxu1 %v15951_v19  ;;  %v15986_v18 = vld [vmem:[%s20084_s1 + $0x1a30] sm:$0xff]  }
 0x35c   : > { %14629 = vmatprep.subr.bf16.mxu0 %v15953_v21  ;;  %v15987_v19 = vld [vmem:[%s20084_s1 + $0x1af0] sm:$0xff]   ;;  %v15989_v21 = vld [vmem:[%s20084_s1 + $0x1a78] sm:$0xff]  }
 0x35e   : > { %14650 = vmatpush3.bf16.msra.mxu1 %v15952_v20  ;;  %v15988_v20 = vld [vmem:[%s20084_s1 + $0x1ab0] sm:$0xff]  }
 0x35f   : > { %14630 = vmatpush3.bf16.msra.mxu0 %v15954_v22  ;;  %14651 = vmatprep.subr.bf16.mxu1 %v15955_v23  ;;  %v15990_v22 = vld [vmem:[%s20084_s1 + $0x1a38] sm:$0xff]  }
 0x360   : > { %14631 = vmatprep.subr.bf16.mxu0 %v15957_v25  ;;  %v15991_v23 = vld [vmem:[%s20084_s1 + $0x1af8] sm:$0xff]  }
 0x361   : > { %v548_v25 = vld [vmem:[%s16448_s26 + $0x778] sm:$0xff] }
 0x362   : > { %14652 = vmatpush3.bf16.msra.mxu1 %v15956_v24  ;;  %v414_v24 = vld [vmem:[%s16448_s26 + $0x348] sm:$0xff] }
 0x363   : > { %14632 = vmatpush3.bf16.msra.mxu0 %v15958_v26  ;;  %14653 = vmatprep.subr.bf16.mxu1 %v15959_v27  ;;  %v682_v26 = vpack.c.bf16 %v548_v25, %v414_v24  ;;  %v15992_v27 = vld [vmem:[%s20084_s1 + $0x1ab8] sm:$0xff]   ;;  %v417_v24 = vld [vmem:[%s16448_s26 + $0x360] sm:$0xff]  ;;  %v551_v25 = vld [vmem:[%s16448_s26 + $0x790] sm:$0xff] }
 0x364   : > { %14661 = vmatprep.subr.bf16.mxu0 %v15961_v35  ;;  %v15994_v35 = vld [vmem:[%s20084_s1 + $0x1b00] sm:$0xff]  }
 0x366   : > { %14654 = vmatpush3.bf16.msra.mxu1 %v15960_v31  ;;  %11336 = vmatmul.mubr.bf16.vlgmr.msra.gmra.mrb[100].mxu0 %v677_v34  ;;  %v15993_v31 = vld [vmem:[%s20084_s1 + $0x1b40] sm:$0xff]   ;;  %v684_v34 = vpack.c.bf16 %v550_v33, %v416_v32  ;;  %v419_v32 = vld [vmem:[%s16448_s26 + $0x370] sm:$0xff] }
 0x367   : > { %14662 = vmatpush3.bf16.msra.mxu0 %v15962_v39  ;;  %14683 = vmatprep.subr.bf16.mxu1 %v15963_v43  ;;  %v15995_v39 = vld [vmem:[%s20084_s1 + $0x1bc0] sm:$0xff]  }
 0x368   : > { %14663 = vmatprep.subr.bf16.mxu0 %v15965_v45  ;;  %11417 = vmatprep.mubr.bf16.mxu0 %v682_v26  ;;  %v685_v26 = vpack.c.bf16 %v551_v25, %v417_v24  ;;  %v553_v33 = vld [vmem:[%s16448_s26 + $0x7a0] sm:$0xff]  ;;  %v424_v24 = vld [vmem:[%s16448_s26 + $0x398] sm:$0xff]  ;;  %v558_v25 = vld [vmem:[%s16448_s26 + $0x7c8] sm:$0xff] }
 0x369   : > { %11377 = vmatmul.mubr.bf16.vlgmr.msra.gmra.mrb[100].mxu1 %v679_v42  ;;  %v15997_v42 = vld [vmem:[%s20084_s1 + $0x1b48] sm:$0xff]  }
 0x36a   : > { %14684 = vmatpush3.bf16.msra.mxu1 %v15964_v44  ;;  %11458 = vmatprep.mubr.bf16.mxu1 %v684_v34  ;;  %v15998_v44 = vld [vmem:[%s20084_s1 + $0x1b08] sm:$0xff]   ;;  %v687_v34 = vpack.c.bf16 %v553_v33, %v419_v32  ;;  %v16060_v32 = vld [vmem:[%s20084_s1 + $0x1d80] sm:$0xff]  }
 0x36b   : > { %14664 = vmatpush3.bf16.msra.mxu0 %v15966_v47  ;;  %14685 = vmatprep.subr.bf16.mxu1 %v15967_v49  ;;  %v15999_v47 = vld [vmem:[%s20084_s1 + $0x1bc8] sm:$0xff]  }
 0x36c   : > { %14665 = vmatprep.subr.bf16.mxu0 %v15969_v54  ;;  %v16000_v49 = vld [vmem:[%s20084_s1 + $0x1b88] sm:$0xff]  }
 0x36d   : > { %v16061_v33 = vld [vmem:[%s20084_s1 + $0x1d48] sm:$0xff]  }
 0x36e   : > { %14686 = vmatpush3.bf16.msra.mxu1 %v15968_v52 }
 0x36f   : > { %14666 = vmatpush3.bf16.msra.mxu0 %v15970_v57  ;;  %14687 = vmatprep.subr.bf16.mxu1 %v15971_v60 }
 0x370   : > { %v14369_v46 = vpop.f32.mrb[76].mxu0  ;;  %14667 = vmatprep.subr.bf16.mxu0 %v15973_v2 }
 0x371   : > { %v14370_v48 = vpop.f32.mrb[77].mxu0 }
 0x372   : > { %v14371_v50 = vadd.f32 %v14370_v48, %v14369_v46  ;;  %v14372_v51 = vpop.f32.mrb[78].mxu0  ;;  %14688 = vmatpush3.bf16.msra.mxu1 %v15972_v63 }
 0x373   : > { %v14391_v53 = vpop.f32.mrb[76].mxu1  ;;  %v14373_v56 = vpop.f32.mrb[79].mxu0  ;;  %14668 = vmatpush3.bf16.msra.mxu0 %v15974_v5  ;;  %14689 = vmatprep.subr.bf16.mxu1 %v15975_v6  ;;  %v16009_v5 = vld [vmem:[%s20084_s1 + $0x1b60] sm:$0xff]  }
 0x374   : > { %v10846_v55 = vadd.f32 %v14371_v50, %v19110_v7  ;;  %v14374_v58 = vadd.f32 %v14373_v56, %v14372_v51  ;;  %v14392_v59 = vpop.f32.mrb[77].mxu1  ;;  %14669 = vmatprep.subr.bf16.mxu0 %v15977_v9  ;;  %v16010_v6 = vld [vmem:[%s20084_s1 + $0x1b20] sm:$0xff]   ;;  %v16013_v9 = vld [vmem:[%s20084_s1 + $0x1b68] sm:$0xff]  }
 0x375   : > { %v14393_v61 = vadd.f32 %v14392_v59, %v14391_v53  ;;  %v14394_v62 = vpop.f32.mrb[78].mxu1  ;;  %v16001_v53 = vld [vmem:[%s20084_s1 + $0x1b50] sm:$0xff]  }
 0x376   : > { %v10849_v0 = vadd.f32 %v14374_v58, %v19118_v11  ;;  %v14395_v1 = vpop.f32.mrb[79].mxu1  ;;  %14690 = vmatpush3.bf16.msra.mxu1 %v15976_v8  ;;  %v15979_v11 = vld [vmem:[%s20084_s1 + $0x1ae0] sm:$0xff]   ;;  %v16003_v59 = vld [vmem:[%s20084_s1 + $0x1bd0] sm:$0xff]  }
 0x377   : > { %v19220_v3 = vadd.f32 %v14393_v61, %v10846_v55  ;;  %v14396_v4 = vadd.f32 %v14395_v1, %v14394_v62  ;;  %14670 = vmatpush3.bf16.msra.mxu0 %v15978_v10  ;;  %14691 = vmatprep.subr.bf16.mxu1 %v15979_v11  ;;  %v16002_v55 = vld [vmem:[%s20084_s1 + $0x1b10] sm:$0xff]   ;;  %v16006_v1 = vld [vmem:[%s20084_s1 + $0x1b18] sm:$0xff]   ;;  %v16012_v8 = vld [vmem:[%s20084_s1 + $0x1ba0] sm:$0xff]  }
 0x378   : > { %14671 = vmatprep.subr.bf16.mxu0 %v15981_v13  ;;  %v16004_v61 = vld [vmem:[%s20084_s1 + $0x1b90] sm:$0xff]   ;;  %v16014_v10 = vld [vmem:[%s20084_s1 + $0x1b28] sm:$0xff]  }
 0x379   : > { %v19228_v7 = vadd.f32 %v14396_v4, %v10849_v0  ;;  %v16005_v0 = vld [vmem:[%s20084_s1 + $0x1b58] sm:$0xff]   ;;  %v16015_v11 = vld [vmem:[%s20084_s1 + $0x1be8] sm:$0xff]   ;;  %v16017_v13 = vld [vmem:[%s20084_s1 + $0x1b70] sm:$0xff]  }
 0x37a   : > { %14692 = vmatpush3.bf16.msra.mxu1 %v15980_v12  ;;  %v16008_v4 = vld [vmem:[%s20084_s1 + $0x1b98] sm:$0xff]   ;;  %v16016_v12 = vld [vmem:[%s20084_s1 + $0x1ba8] sm:$0xff]  }
 0x37b   : > { %14672 = vmatpush3.bf16.msra.mxu0 %v15982_v14  ;;  %14693 = vmatprep.subr.bf16.mxu1 %v15983_v15  ;;  %v16018_v14 = vld [vmem:[%s20084_s1 + $0x1b30] sm:$0xff]  }
 0x37c   : > { %14673 = vmatprep.subr.bf16.mxu0 %v15985_v17  ;;  %v16019_v15 = vld [vmem:[%s20084_s1 + $0x1bf0] sm:$0xff]   ;;  %v16021_v17 = vld [vmem:[%s20084_s1 + $0x1b78] sm:$0xff]  }
 0x37e   : > { %14694 = vmatpush3.bf16.msra.mxu1 %v15984_v16  ;;  %v16020_v16 = vld [vmem:[%s20084_s1 + $0x1bb0] sm:$0xff]  }
 0x37f   : > { %14674 = vmatpush3.bf16.msra.mxu0 %v15986_v18  ;;  %14695 = vmatprep.subr.bf16.mxu1 %v15987_v19  ;;  %v16022_v18 = vld [vmem:[%s20084_s1 + $0x1b38] sm:$0xff]  }
 0x380   : > { %14675 = vmatprep.subr.bf16.mxu0 %v15989_v21  ;;  %v16023_v19 = vld [vmem:[%s20084_s1 + $0x1bf8] sm:$0xff]  }
 0x381   : > { %v552_v21 = vld [vmem:[%s16448_s26 + $0x798] sm:$0xff] }
 0x382   : > { %14696 = vmatpush3.bf16.msra.mxu1 %v15988_v20  ;;  %v418_v20 = vld [vmem:[%s16448_s26 + $0x368] sm:$0xff] }
 0x383   : > { %14676 = vmatpush3.bf16.msra.mxu0 %v15990_v22  ;;  %14697 = vmatprep.subr.bf16.mxu1 %v15991_v23  ;;  %v686_v22 = vpack.c.bf16 %v552_v21, %v418_v20  ;;  %v16024_v23 = vld [vmem:[%s20084_s1 + $0x1bb8] sm:$0xff]   ;;  %v421_v20 = vld [vmem:[%s16448_s26 + $0x380] sm:$0xff]  ;;  %v555_v21 = vld [vmem:[%s16448_s26 + $0x7b0] sm:$0xff] }
 0x384   : > { %14705 = vmatprep.subr.bf16.mxu0 %v15993_v31  ;;  %v16026_v31 = vld [vmem:[%s20084_s1 + $0x1c00] sm:$0xff]  }
 0x386   : > { %14698 = vmatpush3.bf16.msra.mxu1 %v15992_v27  ;;  %11418 = vmatmul.mubr.bf16.vlgmr.msra.gmra.mrb[104].mxu0 %v681_v30  ;;  %v16025_v27 = vld [vmem:[%s20084_s1 + $0x1c40] sm:$0xff]   ;;  %v688_v30 = vpack.c.bf16 %v554_v29, %v420_v28  ;;  %v423_v28 = vld [vmem:[%s16448_s26 + $0x390] sm:$0xff] }
 0x387   : > { %14706 = vmatpush3.bf16.msra.mxu0 %v15994_v35  ;;  %14727 = vmatprep.subr.bf16.mxu1 %v15995_v39  ;;  %v16027_v35 = vld [vmem:[%s20084_s1 + $0x1cc0] sm:$0xff]   ;;  %v16030_v39 = vld [vmem:[%s20084_s1 + $0x1c08] sm:$0xff]  }
 0x388   : > { %14707 = vmatprep.subr.bf16.mxu0 %v15997_v42  ;;  %11499 = vmatprep.mubr.bf16.mxu0 %v686_v22  ;;  %v689_v22 = vpack.c.bf16 %v555_v21, %v421_v20  ;;  %v557_v29 = vld [vmem:[%s16448_s26 + $0x7c0] sm:$0xff]  ;;  %v428_v20 = vld [vmem:[%s16448_s26 + $0x3b8] sm:$0xff]  ;;  %v562_v21 = vld [vmem:[%s16448_s26 + $0x7e8] sm:$0xff] }
 0x389   : > { %11459 = vmatmul.mubr.bf16.vlgmr.msra.gmra.mrb[104].mxu1 %v683_v38 }
 0x38a   : > { %14728 = vmatpush3.bf16.msra.mxu1 %v15996_v40  ;;  %11540 = vmatprep.mubr.bf16.mxu1 %v688_v30  ;;  %v691_v30 = vpack.c.bf16 %v557_v29, %v423_v28  ;;  %v16092_v28 = vld [vmem:[%s20084_s1 + $0x1e80] sm:$0xff]  }
 0x38b   : > { %14708 = vmatpush3.bf16.msra.mxu0 %v15998_v44  ;;  %14729 = vmatprep.subr.bf16.mxu1 %v15999_v47  ;;  %v16032_v44 = vld [vmem:[%s20084_s1 + $0x1c88] sm:$0xff]  }
 0x38c   : > { %14709 = vmatprep.subr.bf16.mxu0 %v16001_v53 }
 0x38e   : > { %14730 = vmatpush3.bf16.msra.mxu1 %v16000_v49  ;;  %v16034_v49 = vld [vmem:[%s20084_s1 + $0x1c10] sm:$0xff]  }
 0x38f   : > { %14710 = vmatpush3.bf16.msra.mxu0 %v16002_v55  ;;  %14731 = vmatprep.subr.bf16.mxu1 %v16003_v59  ;;  %v16036_v55 = vld [vmem:[%s20084_s1 + $0x1c90] sm:$0xff]  }
 0x390   : > { %v14413_v41 = vpop.f32.mrb[80].mxu0  ;;  %14711 = vmatprep.subr.bf16.mxu0 %v16005_v0  ;;  %v16040_v0 = vld [vmem:[%s20084_s1 + $0x1c98] sm:$0xff]  }
 0x391   : > { %v14414_v43 = vpop.f32.mrb[81].mxu0 }
 0x392   : > { %v14415_v45 = vadd.f32 %v14414_v43, %v14413_v41  ;;  %v14416_v46 = vpop.f32.mrb[82].mxu0  ;;  %14732 = vmatpush3.bf16.msra.mxu1 %v16004_v61  ;;  %v16031_v41 = vld [vmem:[%s20084_s1 + $0x1cc8] sm:$0xff]   ;;  %v16038_v61 = vld [vmem:[%s20084_s1 + $0x1c18] sm:$0xff]  }
 0x393   : > { %v14417_v48 = vpop.f32.mrb[83].mxu0  ;;  %v14435_v51 = vpop.f32.mrb[80].mxu1  ;;  %14712 = vmatpush3.bf16.msra.mxu0 %v16006_v1  ;;  %v16041_v1 = vld [vmem:[%s20084_s1 + $0x1c60] sm:$0xff]  }
 0x394   : > { %v10928_v50 = vadd.f32 %v14415_v45, %v19220_v3  ;;  %v14418_v52 = vadd.f32 %v14417_v48, %v14416_v46  ;;  %v14436_v54 = vpop.f32.mrb[81].mxu1  ;;  %v16007_v3 = vld [vmem:[%s20084_s1 + $0x1bd8] sm:$0xff]   ;;  %14713 = vmatprep.subr.bf16.mxu0 %v16009_v5  ;;  %v16033_v46 = vld [vmem:[%s20084_s1 + $0x1c50] sm:$0xff]   ;;  %v16045_v5 = vld [vmem:[%s20084_s1 + $0x1c68] sm:$0xff]  }
 0x395   : > { %v14437_v57 = vadd.f32 %v14436_v54, %v14435_v51  ;;  %v14438_v58 = vpop.f32.mrb[82].mxu1  ;;  %14733 = vmatprep.subr.bf16.mxu1 %v16007_v3  ;;  %v16043_v3 = vld [vmem:[%s20084_s1 + $0x1ce0] sm:$0xff]  }
 0x396   : > { %v10931_v56 = vadd.f32 %v14418_v52, %v19228_v7  ;;  %v14439_v60 = vpop.f32.mrb[83].mxu1  ;;  %14734 = vmatpush3.bf16.msra.mxu1 %v16008_v4  ;;  %v16011_v7 = vld [vmem:[%s20084_s1 + $0x1be0] sm:$0xff]   ;;  %v16035_v52 = vld [vmem:[%s20084_s1 + $0x1cd0] sm:$0xff]  }
 0x397   : > { %v19327_v62 = vadd.f32 %v14437_v57, %v10928_v50  ;;  %v14440_v63 = vadd.f32 %v14439_v60, %v14438_v58  ;;  %14714 = vmatpush3.bf16.msra.mxu0 %v16010_v6  ;;  %14735 = vmatprep.subr.bf16.mxu1 %v16011_v7  ;;  %v16037_v58 = vld [vmem:[%s20084_s1 + $0x1c58] sm:$0xff]   ;;  %v16044_v4 = vld [vmem:[%s20084_s1 + $0x1ca0] sm:$0xff]   ;;  %v16046_v6 = vld [vmem:[%s20084_s1 + $0x1c28] sm:$0xff]  }
 0x398   : > { %14715 = vmatprep.subr.bf16.mxu0 %v16013_v9  ;;  %v16047_v7 = vld [vmem:[%s20084_s1 + $0x1ce8] sm:$0xff]   ;;  %v16049_v9 = vld [vmem:[%s20084_s1 + $0x1c70] sm:$0xff]  }
 0x399   : > { %v19335_v2 = vadd.f32 %v14440_v63, %v10931_v56 }
 0x39a   : > { %14736 = vmatpush3.bf16.msra.mxu1 %v16012_v8  ;;  %v16048_v8 = vld [vmem:[%s20084_s1 + $0x1ca8] sm:$0xff]  }
 0x39b   : > { %14716 = vmatpush3.bf16.msra.mxu0 %v16014_v10  ;;  %14737 = vmatprep.subr.bf16.mxu1 %v16015_v11  ;;  %v16050_v10 = vld [vmem:[%s20084_s1 + $0x1c30] sm:$0xff]  }
 0x39c   : > { %14717 = vmatprep.subr.bf16.mxu0 %v16017_v13  ;;  %v16051_v11 = vld [vmem:[%s20084_s1 + $0x1cf0] sm:$0xff]   ;;  %v16053_v13 = vld [vmem:[%s20084_s1 + $0x1c78] sm:$0xff]  }
 0x39e   : > { %14738 = vmatpush3.bf16.msra.mxu1 %v16016_v12  ;;  %v16052_v12 = vld [vmem:[%s20084_s1 + $0x1cb0] sm:$0xff]  }
 0x39f   : > { %14718 = vmatpush3.bf16.msra.mxu0 %v16018_v14  ;;  %14739 = vmatprep.subr.bf16.mxu1 %v16019_v15  ;;  %v16054_v14 = vld [vmem:[%s20084_s1 + $0x1c38] sm:$0xff]  }
 0x3a0   : > { %14719 = vmatprep.subr.bf16.mxu0 %v16021_v17  ;;  %v16055_v15 = vld [vmem:[%s20084_s1 + $0x1cf8] sm:$0xff]  }
 0x3a1   : > { %v556_v17 = vld [vmem:[%s16448_s26 + $0x7b8] sm:$0xff] }
 0x3a2   : > { %14740 = vmatpush3.bf16.msra.mxu1 %v16020_v16  ;;  %v422_v16 = vld [vmem:[%s16448_s26 + $0x388] sm:$0xff] }
 0x3a3   : > { %14720 = vmatpush3.bf16.msra.mxu0 %v16022_v18  ;;  %14741 = vmatprep.subr.bf16.mxu1 %v16023_v19  ;;  %v690_v18 = vpack.c.bf16 %v556_v17, %v422_v16  ;;  %v16056_v19 = vld [vmem:[%s20084_s1 + $0x1cb8] sm:$0xff]   ;;  %v425_v16 = vld [vmem:[%s16448_s26 + $0x3a0] sm:$0xff]  ;;  %v559_v17 = vld [vmem:[%s16448_s26 + $0x7d0] sm:$0xff] }
 0x3a4   : > { %14749 = vmatprep.subr.bf16.mxu0 %v16025_v27  ;;  %v16058_v27 = vld [vmem:[%s20084_s1 + $0x1d00] sm:$0xff]  }
 0x3a6   : > { %14742 = vmatpush3.bf16.msra.mxu1 %v16024_v23  ;;  %11500 = vmatmul.mubr.bf16.vlgmr.msra.gmra.mrb[108].mxu0 %v685_v26  ;;  %v16057_v23 = vld [vmem:[%s20084_s1 + $0x1d40] sm:$0xff]   ;;  %v692_v26 = vpack.c.bf16 %v558_v25, %v424_v24  ;;  %v427_v24 = vld [vmem:[%s16448_s26 + $0x3b0] sm:$0xff] }
 0x3a7   : > { %14750 = vmatpush3.bf16.msra.mxu0 %v16026_v31  ;;  %14771 = vmatprep.subr.bf16.mxu1 %v16027_v35  ;;  %v16059_v31 = vld [vmem:[%s20084_s1 + $0x1dc0] sm:$0xff]   ;;  %v16062_v35 = vld [vmem:[%s20084_s1 + $0x1d08] sm:$0xff]  }
 0x3a8   : > { %14751 = vmatprep.subr.bf16.mxu0 %v16029_v37  ;;  %11581 = vmatprep.mubr.bf16.mxu0 %v690_v18  ;;  %v16063_v37 = vld [vmem:[%s20084_s1 + $0x1dc8] sm:$0xff]   ;;  %v693_v18 = vpack.c.bf16 %v559_v17, %v425_v16  ;;  %v561_v25 = vld [vmem:[%s16448_s26 + $0x7e0] sm:$0xff]  ;;  %v432_v16 = vld [vmem:[%s16448_s26 + $0x3d8] sm:$0xff] }
 0x3a9   : > { %11541 = vmatmul.mubr.bf16.vlgmr.msra.gmra.mrb[108].mxu1 %v687_v34  ;;  %v566_v17 = vld [vmem:[%s16448_s26 + $0x808] sm:$0xff] }
 0x3aa   : > { %14772 = vmatpush3.bf16.msra.mxu1 %v16028_v36  ;;  %11622 = vmatprep.mubr.bf16.mxu1 %v692_v26  ;;  %v695_v26 = vpack.c.bf16 %v561_v25, %v427_v24  ;;  %v16124_v24 = vld [vmem:[%s20084_s1 + $0x1f80] sm:$0xff]   ;;  %v16125_v25 = vld [vmem:[%s20084_s1 + $0x1f48] sm:$0xff]  }
 0x3ab   : > { %14752 = vmatpush3.bf16.msra.mxu0 %v16030_v39  ;;  %14773 = vmatprep.subr.bf16.mxu1 %v16031_v41 }
 0x3ac   : > { %14753 = vmatprep.subr.bf16.mxu0 %v16033_v46 }
 0x3ae   : > { %14774 = vmatpush3.bf16.msra.mxu1 %v16032_v44 }
 0x3af   : > { %14754 = vmatpush3.bf16.msra.mxu0 %v16034_v49  ;;  %14775 = vmatprep.subr.bf16.mxu1 %v16035_v52 }
 0x3b0   : > { %v14457_v38 = vpop.f32.mrb[84].mxu0  ;;  %14755 = vmatprep.subr.bf16.mxu0 %v16037_v58  ;;  %v16071_v58 = vld [vmem:[%s20084_s1 + $0x1dd8] sm:$0xff]  }
 0x3b1   : > { %v14458_v40 = vpop.f32.mrb[85].mxu0 }
 0x3b2   : > { %v14459_v42 = vadd.f32 %v14458_v40, %v14457_v38  ;;  %v14460_v43 = vpop.f32.mrb[86].mxu0  ;;  %14776 = vmatpush3.bf16.msra.mxu1 %v16036_v55  ;;  %v16064_v40 = vld [vmem:[%s20084_s1 + $0x1d88] sm:$0xff]  }
 0x3b3   : > { %v14479_v45 = vpop.f32.mrb[84].mxu1  ;;  %v14461_v48 = vpop.f32.mrb[87].mxu0  ;;  %14756 = vmatpush3.bf16.msra.mxu0 %v16038_v61  ;;  %v16073_v61 = vld [vmem:[%s20084_s1 + $0x1d60] sm:$0xff]  }
 0x3b4   : > { %v11010_v47 = vadd.f32 %v14459_v42, %v19327_v62  ;;  %v14462_v50 = vadd.f32 %v14461_v48, %v14460_v43  ;;  %v14480_v51 = vpop.f32.mrb[85].mxu1  ;;  %v16039_v62 = vld [vmem:[%s20084_s1 + $0x1cd8] sm:$0xff]   ;;  %14757 = vmatprep.subr.bf16.mxu0 %v16041_v1  ;;  %v16065_v42 = vld [vmem:[%s20084_s1 + $0x1d50] sm:$0xff]   ;;  %v16077_v1 = vld [vmem:[%s20084_s1 + $0x1d68] sm:$0xff]  }
 0x3b5   : > { %v14481_v53 = vadd.f32 %v14480_v51, %v14479_v45  ;;  %v14482_v54 = vpop.f32.mrb[86].mxu1  ;;  %14777 = vmatprep.subr.bf16.mxu1 %v16039_v62  ;;  %v16066_v45 = vld [vmem:[%s20084_s1 + $0x1d10] sm:$0xff]   ;;  %v16074_v62 = vld [vmem:[%s20084_s1 + $0x1d20] sm:$0xff]  }
 0x3b6   : > { %v11013_v56 = vadd.f32 %v14462_v50, %v19335_v2  ;;  %v14483_v57 = vpop.f32.mrb[87].mxu1  ;;  %14778 = vmatpush3.bf16.msra.mxu1 %v16040_v0  ;;  %v16042_v2 = vld [vmem:[%s20084_s1 + $0x1c20] sm:$0xff]   ;;  %v16067_v48 = vld [vmem:[%s20084_s1 + $0x1dd0] sm:$0xff]  }
 0x3b7   : > { %v19440_v59 = vadd.f32 %v14481_v53, %v11010_v47  ;;  %v14484_v60 = vadd.f32 %v14483_v57, %v14482_v54  ;;  %14758 = vmatpush3.bf16.msra.mxu0 %v16042_v2  ;;  %14779 = vmatprep.subr.bf16.mxu1 %v16043_v3  ;;  %v16068_v51 = vld [vmem:[%s20084_s1 + $0x1d90] sm:$0xff]   ;;  %v16069_v54 = vld [vmem:[%s20084_s1 + $0x1d58] sm:$0xff]   ;;  %v16076_v0 = vld [vmem:[%s20084_s1 + $0x1da0] sm:$0xff]  }
 0x3b8   : > { %14759 = vmatprep.subr.bf16.mxu0 %v16045_v5  ;;  %v16070_v57 = vld [vmem:[%s20084_s1 + $0x1d18] sm:$0xff]   ;;  %v16078_v2 = vld [vmem:[%s20084_s1 + $0x1d28] sm:$0xff]   ;;  %v16081_v5 = vld [vmem:[%s20084_s1 + $0x1d70] sm:$0xff]  }
 0x3b9   : > { %v19448_v63 = vadd.f32 %v14484_v60, %v11013_v56  ;;  %v16072_v60 = vld [vmem:[%s20084_s1 + $0x1d98] sm:$0xff]   ;;  %v16079_v3 = vld [vmem:[%s20084_s1 + $0x1de8] sm:$0xff]  }
 0x3ba   : > { %14780 = vmatpush3.bf16.msra.mxu1 %v16044_v4  ;;  %v16080_v4 = vld [vmem:[%s20084_s1 + $0x1da8] sm:$0xff]  }
 0x3bb   : > { %14760 = vmatpush3.bf16.msra.mxu0 %v16046_v6  ;;  %14781 = vmatprep.subr.bf16.mxu1 %v16047_v7  ;;  %v16082_v6 = vld [vmem:[%s20084_s1 + $0x1d30] sm:$0xff]  }
 0x3bc   : > { %14761 = vmatprep.subr.bf16.mxu0 %v16049_v9  ;;  %v16083_v7 = vld [vmem:[%s20084_s1 + $0x1df0] sm:$0xff]   ;;  %v16085_v9 = vld [vmem:[%s20084_s1 + $0x1d78] sm:$0xff]  }
 0x3be   : > { %14782 = vmatpush3.bf16.msra.mxu1 %v16048_v8  ;;  %v16084_v8 = vld [vmem:[%s20084_s1 + $0x1db0] sm:$0xff]  }
 0x3bf   : > { %14762 = vmatpush3.bf16.msra.mxu0 %v16050_v10  ;;  %14783 = vmatprep.subr.bf16.mxu1 %v16051_v11  ;;  %v16086_v10 = vld [vmem:[%s20084_s1 + $0x1d38] sm:$0xff]  }
 0x3c0   : > { %14763 = vmatprep.subr.bf16.mxu0 %v16053_v13  ;;  %v16087_v11 = vld [vmem:[%s20084_s1 + $0x1df8] sm:$0xff]  }
 0x3c1   : > { %v560_v13 = vld [vmem:[%s16448_s26 + $0x7d8] sm:$0xff] }
 0x3c2   : > { %14784 = vmatpush3.bf16.msra.mxu1 %v16052_v12  ;;  %v426_v12 = vld [vmem:[%s16448_s26 + $0x3a8] sm:$0xff] }
 0x3c3   : > { %14764 = vmatpush3.bf16.msra.mxu0 %v16054_v14  ;;  %14785 = vmatprep.subr.bf16.mxu1 %v16055_v15  ;;  %v694_v14 = vpack.c.bf16 %v560_v13, %v426_v12  ;;  %v16088_v15 = vld [vmem:[%s20084_s1 + $0x1db8] sm:$0xff]   ;;  %v429_v12 = vld [vmem:[%s16448_s26 + $0x3c0] sm:$0xff]  ;;  %v563_v13 = vld [vmem:[%s16448_s26 + $0x7f0] sm:$0xff] }
 0x3c4   : > { %14793 = vmatprep.subr.bf16.mxu0 %v16057_v23  ;;  %v16090_v23 = vld [vmem:[%s20084_s1 + $0x1e00] sm:$0xff]  }
 0x3c6   : > { %14786 = vmatpush3.bf16.msra.mxu1 %v16056_v19  ;;  %11582 = vmatmul.mubr.bf16.vlgmr.msra.gmra.mrb[112].mxu0 %v689_v22  ;;  %v16089_v19 = vld [vmem:[%s20084_s1 + $0x1e40] sm:$0xff]   ;;  %v696_v22 = vpack.c.bf16 %v562_v21, %v428_v20  ;;  %v431_v20 = vld [vmem:[%s16448_s26 + $0x3d0] sm:$0xff] }
 0x3c7   : > { %14794 = vmatpush3.bf16.msra.mxu0 %v16058_v27  ;;  %14815 = vmatprep.subr.bf16.mxu1 %v16059_v31  ;;  %v16091_v27 = vld [vmem:[%s20084_s1 + $0x1ec0] sm:$0xff]  }
 0x3c8   : > { %14795 = vmatprep.subr.bf16.mxu0 %v16061_v33  ;;  %11663 = vmatprep.mubr.bf16.mxu0 %v694_v14  ;;  %v697_v14 = vpack.c.bf16 %v563_v13, %v429_v12  ;;  %v565_v21 = vld [vmem:[%s16448_s26 + $0x800] sm:$0xff]  ;;  %v436_v12 = vld [vmem:[%s16448_s26 + $0x3f8] sm:$0xff]  ;;  %v570_v13 = vld [vmem:[%s16448_s26 + $0x828] sm:$0xff] }
 0x3c9   : > { %11623 = vmatmul.mubr.bf16.vlgmr.msra.gmra.mrb[112].mxu1 %v691_v30  ;;  %v16093_v30 = vld [vmem:[%s20084_s1 + $0x1e48] sm:$0xff]  }
 0x3ca   : > { %14816 = vmatpush3.bf16.msra.mxu1 %v16060_v32  ;;  %11704 = vmatprep.mubr.bf16.mxu1 %v696_v22  ;;  %v16094_v32 = vld [vmem:[%s20084_s1 + $0x1e08] sm:$0xff]   ;;  %v699_v22 = vpack.c.bf16 %v565_v21, %v431_v20  ;;  %v16156_v20 = vld [vmem:[%s20084_s1 + $0x2080] sm:$0xff]  }
 0x3cb   : > { %14796 = vmatpush3.bf16.msra.mxu0 %v16062_v35  ;;  %14817 = vmatprep.subr.bf16.mxu1 %v16063_v37  ;;  %v16095_v35 = vld [vmem:[%s20084_s1 + $0x1ec8] sm:$0xff]  }
 0x3cc   : > { %14797 = vmatprep.subr.bf16.mxu0 %v16065_v42  ;;  %v16096_v37 = vld [vmem:[%s20084_s1 + $0x1e88] sm:$0xff]  }
 0x3cd   : > { %v16157_v21 = vld [vmem:[%s20084_s1 + $0x2048] sm:$0xff]  }
 0x3ce   : > { %14818 = vmatpush3.bf16.msra.mxu1 %v16064_v40 }
 0x3cf   : > { %14798 = vmatpush3.bf16.msra.mxu0 %v16066_v45  ;;  %14819 = vmatprep.subr.bf16.mxu1 %v16067_v48 }
 0x3d0   : > { %v14501_v34 = vpop.f32.mrb[88].mxu0  ;;  %14799 = vmatprep.subr.bf16.mxu0 %v16069_v54 }
 0x3d1   : > { %v14502_v36 = vpop.f32.mrb[89].mxu0 }
 0x3d2   : > { %v14503_v38 = vadd.f32 %v14502_v36, %v14501_v34  ;;  %v14504_v39 = vpop.f32.mrb[90].mxu0  ;;  %14820 = vmatpush3.bf16.msra.mxu1 %v16068_v51 }
 0x3d3   : > { %v14523_v41 = vpop.f32.mrb[88].mxu1  ;;  %v14505_v44 = vpop.f32.mrb[91].mxu0  ;;  %14800 = vmatpush3.bf16.msra.mxu0 %v16070_v57  ;;  %14821 = vmatprep.subr.bf16.mxu1 %v16071_v58  ;;  %v16105_v57 = vld [vmem:[%s20084_s1 + $0x1e60] sm:$0xff]  }
 0x3d4   : > { %v11092_v43 = vadd.f32 %v14503_v38, %v19440_v59  ;;  %v14506_v46 = vadd.f32 %v14505_v44, %v14504_v39  ;;  %v14524_v47 = vpop.f32.mrb[89].mxu1  ;;  %14801 = vmatprep.subr.bf16.mxu0 %v16073_v61  ;;  %v16106_v58 = vld [vmem:[%s20084_s1 + $0x1e20] sm:$0xff]   ;;  %v16109_v61 = vld [vmem:[%s20084_s1 + $0x1e68] sm:$0xff]  }
 0x3d5   : > { %v14525_v49 = vadd.f32 %v14524_v47, %v14523_v41  ;;  %v14526_v50 = vpop.f32.mrb[90].mxu1  ;;  %v16097_v41 = vld [vmem:[%s20084_s1 + $0x1e50] sm:$0xff]  }
 0x3d6   : > { %v11095_v52 = vadd.f32 %v14506_v46, %v19448_v63  ;;  %v14527_v53 = vpop.f32.mrb[91].mxu1  ;;  %14822 = vmatpush3.bf16.msra.mxu1 %v16072_v60  ;;  %v16075_v63 = vld [vmem:[%s20084_s1 + $0x1de0] sm:$0xff]   ;;  %v16099_v47 = vld [vmem:[%s20084_s1 + $0x1ed0] sm:$0xff]  }
 0x3d7   : > { %v19550_v55 = vadd.f32 %v14525_v49, %v11092_v43  ;;  %v14528_v56 = vadd.f32 %v14527_v53, %v14526_v50  ;;  %14802 = vmatpush3.bf16.msra.mxu0 %v16074_v62  ;;  %14823 = vmatprep.subr.bf16.mxu1 %v16075_v63  ;;  %v16098_v43 = vld [vmem:[%s20084_s1 + $0x1e10] sm:$0xff]   ;;  %v16102_v53 = vld [vmem:[%s20084_s1 + $0x1e18] sm:$0xff]   ;;  %v16108_v60 = vld [vmem:[%s20084_s1 + $0x1ea0] sm:$0xff]  }
 0x3d8   : > { %14803 = vmatprep.subr.bf16.mxu0 %v16077_v1  ;;  %v16100_v49 = vld [vmem:[%s20084_s1 + $0x1e90] sm:$0xff]   ;;  %v16110_v62 = vld [vmem:[%s20084_s1 + $0x1e28] sm:$0xff]  }
 0x3d9   : > { %v19558_v59 = vadd.f32 %v14528_v56, %v11095_v52  ;;  %v16101_v52 = vld [vmem:[%s20084_s1 + $0x1e58] sm:$0xff]   ;;  %v16111_v63 = vld [vmem:[%s20084_s1 + $0x1ee8] sm:$0xff]   ;;  %v16113_v1 = vld [vmem:[%s20084_s1 + $0x1e70] sm:$0xff]  }
 0x3da   : > { %14824 = vmatpush3.bf16.msra.mxu1 %v16076_v0  ;;  %v16104_v56 = vld [vmem:[%s20084_s1 + $0x1e98] sm:$0xff]   ;;  %v16112_v0 = vld [vmem:[%s20084_s1 + $0x1ea8] sm:$0xff]  }
 0x3db   : > { %14804 = vmatpush3.bf16.msra.mxu0 %v16078_v2  ;;  %14825 = vmatprep.subr.bf16.mxu1 %v16079_v3  ;;  %v16114_v2 = vld [vmem:[%s20084_s1 + $0x1e30] sm:$0xff]  }
 0x3dc   : > { %14805 = vmatprep.subr.bf16.mxu0 %v16081_v5  ;;  %v16115_v3 = vld [vmem:[%s20084_s1 + $0x1ef0] sm:$0xff]   ;;  %v16117_v5 = vld [vmem:[%s20084_s1 + $0x1e78] sm:$0xff]  }
 0x3de   : > { %14826 = vmatpush3.bf16.msra.mxu1 %v16080_v4  ;;  %v16116_v4 = vld [vmem:[%s20084_s1 + $0x1eb0] sm:$0xff]  }
 0x3df   : > { %14806 = vmatpush3.bf16.msra.mxu0 %v16082_v6  ;;  %14827 = vmatprep.subr.bf16.mxu1 %v16083_v7  ;;  %v16118_v6 = vld [vmem:[%s20084_s1 + $0x1e38] sm:$0xff]  }
 0x3e0   : > { %14807 = vmatprep.subr.bf16.mxu0 %v16085_v9  ;;  %v16119_v7 = vld [vmem:[%s20084_s1 + $0x1ef8] sm:$0xff]  }
 0x3e1   : > { %v564_v9 = vld [vmem:[%s16448_s26 + $0x7f8] sm:$0xff] }
 0x3e2   : > { %14828 = vmatpush3.bf16.msra.mxu1 %v16084_v8  ;;  %v430_v8 = vld [vmem:[%s16448_s26 + $0x3c8] sm:$0xff] }
 0x3e3   : > { %14808 = vmatpush3.bf16.msra.mxu0 %v16086_v10  ;;  %14829 = vmatprep.subr.bf16.mxu1 %v16087_v11  ;;  %v698_v10 = vpack.c.bf16 %v564_v9, %v430_v8  ;;  %v16120_v11 = vld [vmem:[%s20084_s1 + $0x1eb8] sm:$0xff]   ;;  %v433_v8 = vld [vmem:[%s16448_s26 + $0x3e0] sm:$0xff]  ;;  %v567_v9 = vld [vmem:[%s16448_s26 + $0x810] sm:$0xff] }
 0x3e4   : > { %14837 = vmatprep.subr.bf16.mxu0 %v16089_v19  ;;  %v16122_v19 = vld [vmem:[%s20084_s1 + $0x1f00] sm:$0xff]  }
 0x3e6   : > { %14830 = vmatpush3.bf16.msra.mxu1 %v16088_v15  ;;  %11664 = vmatmul.mubr.bf16.vlgmr.msra.gmra.mrb[116].mxu0 %v693_v18  ;;  %v16121_v15 = vld [vmem:[%s20084_s1 + $0x1f40] sm:$0xff]   ;;  %v700_v18 = vpack.c.bf16 %v566_v17, %v432_v16  ;;  %v435_v16 = vld [vmem:[%s16448_s26 + $0x3f0] sm:$0xff] }
 0x3e7   : > { %14838 = vmatpush3.bf16.msra.mxu0 %v16090_v23  ;;  %14859 = vmatprep.subr.bf16.mxu1 %v16091_v27  ;;  %v16123_v23 = vld [vmem:[%s20084_s1 + $0x1fc0] sm:$0xff]   ;;  %v16126_v27 = vld [vmem:[%s20084_s1 + $0x1f08] sm:$0xff]  }
 0x3e8   : > { %14839 = vmatprep.subr.bf16.mxu0 %v16093_v30  ;;  %11745 = vmatprep.mubr.bf16.mxu0 %v698_v10  ;;  %v701_v10 = vpack.c.bf16 %v567_v9, %v433_v8  ;;  %v569_v17 = vld [vmem:[%s16448_s26 + $0x820] sm:$0xff]  ;;  %v440_v8 = vld [vmem:[%s16448_s26 + $0x418] sm:$0xff]  ;;  %v574_v9 = vld [vmem:[%s16448_s26 + $0x848] sm:$0xff] }
 0x3e9   : > { %11705 = vmatmul.mubr.bf16.vlgmr.msra.gmra.mrb[116].mxu1 %v695_v26 }
 0x3ea   : > { %14860 = vmatpush3.bf16.msra.mxu1 %v16092_v28  ;;  %11786 = vmatprep.mubr.bf16.mxu1 %v700_v18  ;;  %v703_v18 = vpack.c.bf16 %v569_v17, %v435_v16 }
 0x3eb   : > { %14840 = vmatpush3.bf16.msra.mxu0 %v16094_v32  ;;  %14861 = vmatprep.subr.bf16.mxu1 %v16095_v35  ;;  %v16128_v32 = vld [vmem:[%s20084_s1 + $0x1f88] sm:$0xff]  }
 0x3ec   : > { %14841 = vmatprep.subr.bf16.mxu0 %v16097_v41 }
 0x3ee   : > { %14862 = vmatpush3.bf16.msra.mxu1 %v16096_v37  ;;  %v16130_v37 = vld [vmem:[%s20084_s1 + $0x1f10] sm:$0xff]  }
 0x3ef   : > { %14842 = vmatpush3.bf16.msra.mxu0 %v16098_v43  ;;  %14863 = vmatprep.subr.bf16.mxu1 %v16099_v47  ;;  %v16132_v43 = vld [vmem:[%s20084_s1 + $0x1f90] sm:$0xff]  }
 0x3f0   : > { %v14545_v29 = vpop.f32.mrb[92].mxu0  ;;  %14843 = vmatprep.subr.bf16.mxu0 %v16101_v52  ;;  %v16136_v52 = vld [vmem:[%s20084_s1 + $0x1f98] sm:$0xff]  }
 0x3f1   : > { %v14546_v31 = vpop.f32.mrb[93].mxu0 }
 0x3f2   : > { %v14547_v33 = vadd.f32 %v14546_v31, %v14545_v29  ;;  %v14548_v34 = vpop.f32.mrb[94].mxu0  ;;  %14864 = vmatpush3.bf16.msra.mxu1 %v16100_v49  ;;  %v16127_v29 = vld [vmem:[%s20084_s1 + $0x1fc8] sm:$0xff]   ;;  %v16134_v49 = vld [vmem:[%s20084_s1 + $0x1f18] sm:$0xff]  }
 0x3f3   : > { %v14549_v36 = vpop.f32.mrb[95].mxu0  ;;  %14844 = vmatpush3.bf16.msra.mxu0 %v16102_v53  ;;  %v16137_v53 = vld [vmem:[%s20084_s1 + $0x1f60] sm:$0xff]  }
 0x3f4   : > { %v11174_v38 = vadd.f32 %v14547_v33, %v19550_v55  ;;  %v14550_v40 = vadd.f32 %v14549_v36, %v14548_v34  ;;  %v16103_v55 = vld [vmem:[%s20084_s1 + $0x1ed8] sm:$0xff]   ;;  %14845 = vmatprep.subr.bf16.mxu0 %v16105_v57  ;;  %v16129_v34 = vld [vmem:[%s20084_s1 + $0x1f50] sm:$0xff]   ;;  %v16141_v57 = vld [vmem:[%s20084_s1 + $0x1f68] sm:$0xff]  }
 0x3f5   : > { %14865 = vmatprep.subr.bf16.mxu1 %v16103_v55  ;;  %v16139_v55 = vld [vmem:[%s20084_s1 + $0x1fe0] sm:$0xff]  }
 0x3f6   : > { %v11177_v44 = vadd.f32 %v14550_v40, %v19558_v59  ;;  %14866 = vmatpush3.bf16.msra.mxu1 %v16104_v56  ;;  %v16107_v59 = vld [vmem:[%s20084_s1 + $0x1ee0] sm:$0xff]   ;;  %v16131_v40 = vld [vmem:[%s20084_s1 + $0x1fd0] sm:$0xff]  }
 0x3f7   : > { %14846 = vmatpush3.bf16.msra.mxu0 %v16106_v58  ;;  %14867 = vmatprep.subr.bf16.mxu1 %v16107_v59  ;;  %v16140_v56 = vld [vmem:[%s20084_s1 + $0x1fa0] sm:$0xff]   ;;  %v16142_v58 = vld [vmem:[%s20084_s1 + $0x1f28] sm:$0xff]  }
 0x3f8   : > { %14847 = vmatprep.subr.bf16.mxu0 %v16109_v61  ;;  %v16143_v59 = vld [vmem:[%s20084_s1 + $0x1fe8] sm:$0xff]   ;;  %v16145_v61 = vld [vmem:[%s20084_s1 + $0x1f70] sm:$0xff]  }
 0x3fa   : > { %v14567_v39 = vpop.f32.mrb[92].mxu1  ;;  %14868 = vmatpush3.bf16.msra.mxu1 %v16108_v60  ;;  %v16144_v60 = vld [vmem:[%s20084_s1 + $0x1fa8] sm:$0xff]  }
 0x3fb   : > { %v14568_v42 = vpop.f32.mrb[93].mxu1  ;;  %14848 = vmatpush3.bf16.msra.mxu0 %v16110_v62  ;;  %14869 = vmatprep.subr.bf16.mxu1 %v16111_v63  ;;  %v16146_v62 = vld [vmem:[%s20084_s1 + $0x1f30] sm:$0xff]  }
 0x3fc   : > { %v14569_v45 = vadd.f32 %v14568_v42, %v14567_v39  ;;  %v14570_v46 = vpop.f32.mrb[94].mxu1  ;;  %14849 = vmatprep.subr.bf16.mxu0 %v16113_v1  ;;  %v16147_v63 = vld [vmem:[%s20084_s1 + $0x1ff0] sm:$0xff]   ;;  %v16149_v1 = vld [vmem:[%s20084_s1 + $0x1f78] sm:$0xff]  }
 0x3fd   : > { %v14571_v48 = vpop.f32.mrb[95].mxu1 }
 0x3fe   : > { %v19657_v50 = vadd.f32 %v14569_v45, %v11174_v38  ;;  %v14572_v51 = vadd.f32 %v14571_v48, %v14570_v46  ;;  %14870 = vmatpush3.bf16.msra.mxu1 %v16112_v0  ;;  %v16133_v46 = vld [vmem:[%s20084_s1 + $0x1f58] sm:$0xff]   ;;  %v16148_v0 = vld [vmem:[%s20084_s1 + $0x1fb0] sm:$0xff]  }
 0x3ff   : > { %14850 = vmatpush3.bf16.msra.mxu0 %v16114_v2  ;;  %14871 = vmatprep.subr.bf16.mxu1 %v16115_v3  ;;  %v16150_v2 = vld [vmem:[%s20084_s1 + $0x1f38] sm:$0xff]  }
 0x400   : > { %v19665_v54 = vadd.f32 %v14572_v51, %v11177_v44  ;;  %14851 = vmatprep.subr.bf16.mxu0 %v16117_v5  ;;  %v16151_v3 = vld [vmem:[%s20084_s1 + $0x1ff8] sm:$0xff]  }
 0x401   : > { %v568_v5 = vld [vmem:[%s16448_s26 + $0x818] sm:$0xff] }
 0x402   : > { %14872 = vmatpush3.bf16.msra.mxu1 %v16116_v4  ;;  %v434_v4 = vld [vmem:[%s16448_s26 + $0x3e8] sm:$0xff] }
 0x403   : > { %14852 = vmatpush3.bf16.msra.mxu0 %v16118_v6  ;;  %14873 = vmatprep.subr.bf16.mxu1 %v16119_v7  ;;  %v702_v6 = vpack.c.bf16 %v568_v5, %v434_v4  ;;  %v16152_v7 = vld [vmem:[%s20084_s1 + $0x1fb8] sm:$0xff]   ;;  %v437_v4 = vld [vmem:[%s16448_s26 + $0x400] sm:$0xff]  ;;  %v571_v5 = vld [vmem:[%s16448_s26 + $0x830] sm:$0xff] }
 0x404   : > { %14881 = vmatprep.subr.bf16.mxu0 %v16121_v15  ;;  %v16154_v15 = vld [vmem:[%s20084_s1 + $0x2000] sm:$0xff]  }
 0x406   : > { %14874 = vmatpush3.bf16.msra.mxu1 %v16120_v11  ;;  %11746 = vmatmul.mubr.bf16.vlgmr.msra.gmra.mrb[120].mxu0 %v697_v14  ;;  %v16153_v11 = vld [vmem:[%s20084_s1 + $0x2040] sm:$0xff]   ;;  %v704_v14 = vpack.c.bf16 %v570_v13, %v436_v12  ;;  %v439_v12 = vld [vmem:[%s16448_s26 + $0x410] sm:$0xff] }
 0x407   : > { %14882 = vmatpush3.bf16.msra.mxu0 %v16122_v19  ;;  %14903 = vmatprep.subr.bf16.mxu1 %v16123_v23  ;;  %v16155_v19 = vld [vmem:[%s20084_s1 + $0x20c0] sm:$0xff]   ;;  %v16158_v23 = vld [vmem:[%s20084_s1 + $0x2008] sm:$0xff]  }
 0x408   : > { %14883 = vmatprep.subr.bf16.mxu0 %v16125_v25  ;;  %11827 = vmatprep.mubr.bf16.mxu0 %v702_v6  ;;  %v16159_v25 = vld [vmem:[%s20084_s1 + $0x20c8] sm:$0xff]   ;;  %v16283_v6 = vmov 0   ;;  %v573_v13 = vld [vmem:[%s16448_s26 + $0x840] sm:$0xff] }
 0x409   : > { %11787 = vmatmul.mubr.bf16.vlgmr.msra.gmra.mrb[120].mxu1 %v699_v22 }
 0x40a   : > { %14904 = vmatpush3.bf16.msra.mxu1 %v16124_v24  ;;  %11868 = vmatprep.mubr.bf16.mxu1 %v704_v14  ;;  %v707_v14 = vpack.c.bf16 %v573_v13, %v439_v12 }
 0x40b   : > { %14884 = vmatpush3.bf16.msra.mxu0 %v16126_v27  ;;  %14905 = vmatprep.subr.bf16.mxu1 %v16127_v29 }
 0x40c   : > { %14885 = vmatprep.subr.bf16.mxu0 %v16129_v34 }
 0x40e   : > { %14906 = vmatpush3.bf16.msra.mxu1 %v16128_v32 }
 0x40f   : > { %14886 = vmatpush3.bf16.msra.mxu0 %v16130_v37  ;;  %14907 = vmatprep.subr.bf16.mxu1 %v16131_v40 }
 0x410   : > { %v14589_v26 = vpop.f32.mrb[96].mxu0  ;;  %14887 = vmatprep.subr.bf16.mxu0 %v16133_v46  ;;  %v16167_v46 = vld [vmem:[%s20084_s1 + $0x20d8] sm:$0xff]  }
 0x411   : > { %v14590_v28 = vpop.f32.mrb[97].mxu0 }
 0x412   : > { %v14591_v30 = vadd.f32 %v14590_v28, %v14589_v26  ;;  %v14592_v31 = vpop.f32.mrb[98].mxu0  ;;  %14908 = vmatpush3.bf16.msra.mxu1 %v16132_v43  ;;  %v16160_v28 = vld [vmem:[%s20084_s1 + $0x2088] sm:$0xff]  }
 0x413   : > { %v14593_v36 = vpop.f32.mrb[99].mxu0  ;;  %14888 = vmatpush3.bf16.msra.mxu0 %v16134_v49  ;;  %v16169_v49 = vld [vmem:[%s20084_s1 + $0x2060] sm:$0xff]  }
 0x414   : > { %v11256_v35 = vadd.f32 %v14591_v30, %v19657_v50  ;;  %v14594_v38 = vadd.f32 %v14593_v36, %v14592_v31  ;;  %v16135_v50 = vld [vmem:[%s20084_s1 + $0x1fd8] sm:$0xff]   ;;  %14889 = vmatprep.subr.bf16.mxu0 %v16137_v53  ;;  %v16161_v30 = vld [vmem:[%s20084_s1 + $0x2050] sm:$0xff]   ;;  %v16173_v53 = vld [vmem:[%s20084_s1 + $0x2068] sm:$0xff]  }
 0x415   : > { %14909 = vmatprep.subr.bf16.mxu1 %v16135_v50  ;;  %v16163_v36 = vld [vmem:[%s20084_s1 + $0x20d0] sm:$0xff]   ;;  %v16170_v50 = vld [vmem:[%s20084_s1 + $0x2020] sm:$0xff]  }
 0x416   : > { %v11259_v44 = vadd.f32 %v14594_v38, %v19665_v54  ;;  %14910 = vmatpush3.bf16.msra.mxu1 %v16136_v52  ;;  %v16138_v54 = vld [vmem:[%s20084_s1 + $0x1f20] sm:$0xff]  }
 0x417   : > { %14890 = vmatpush3.bf16.msra.mxu0 %v16138_v54  ;;  %14911 = vmatprep.subr.bf16.mxu1 %v16139_v55  ;;  %v16172_v52 = vld [vmem:[%s20084_s1 + $0x20a0] sm:$0xff]   ;;  %v16174_v54 = vld [vmem:[%s20084_s1 + $0x2028] sm:$0xff]  }
 0x418   : > { %14891 = vmatprep.subr.bf16.mxu0 %v16141_v57  ;;  %v16175_v55 = vld [vmem:[%s20084_s1 + $0x20e8] sm:$0xff]   ;;  %v16177_v57 = vld [vmem:[%s20084_s1 + $0x2070] sm:$0xff]  }
 0x41a   : > { %14912 = vmatpush3.bf16.msra.mxu1 %v16140_v56  ;;  %v16176_v56 = vld [vmem:[%s20084_s1 + $0x20a8] sm:$0xff]  }
 0x41b   : > { %14892 = vmatpush3.bf16.msra.mxu0 %v16142_v58  ;;  %14913 = vmatprep.subr.bf16.mxu1 %v16143_v59  ;;  %v16178_v58 = vld [vmem:[%s20084_s1 + $0x2030] sm:$0xff]  }
 0x41c   : > { %v14611_v33 = vpop.f32.mrb[96].mxu1  ;;  %14893 = vmatprep.subr.bf16.mxu0 %v16145_v61  ;;  %v16179_v59 = vld [vmem:[%s20084_s1 + $0x20f0] sm:$0xff]   ;;  %v16181_v61 = vld [vmem:[%s20084_s1 + $0x2078] sm:$0xff]  }
 0x41d   : > { %v14612_v39 = vpop.f32.mrb[97].mxu1 }
 0x41e   : > { %v14613_v41 = vadd.f32 %v14612_v39, %v14611_v33  ;;  %v14614_v42 = vpop.f32.mrb[98].mxu1  ;;  %14914 = vmatpush3.bf16.msra.mxu1 %v16144_v60  ;;  %v16162_v33 = vld [vmem:[%s20084_s1 + $0x2010] sm:$0xff]  }
 0x41f   : > { %v14615_v45 = vpop.f32.mrb[99].mxu1  ;;  %14894 = vmatpush3.bf16.msra.mxu0 %v16146_v62  ;;  %14915 = vmatprep.subr.bf16.mxu1 %v16147_v63  ;;  %v16164_v39 = vld [vmem:[%s20084_s1 + $0x2090] sm:$0xff]   ;;  %v16182_v62 = vld [vmem:[%s20084_s1 + $0x2038] sm:$0xff]  }
 0x420   : > { %v19770_v47 = vadd.f32 %v14613_v41, %v11256_v35  ;;  %v14616_v48 = vadd.f32 %v14615_v45, %v14614_v42  ;;  %14895 = vmatprep.subr.bf16.mxu0 %v16149_v1  ;;  %v16165_v42 = vld [vmem:[%s20084_s1 + $0x2058] sm:$0xff]   ;;  %v16180_v60 = vld [vmem:[%s20084_s1 + $0x20b0] sm:$0xff]  }
 0x421   : > { %v16166_v45 = vld [vmem:[%s20084_s1 + $0x2018] sm:$0xff]  }
 0x422   : > { %v19778_v51 = vadd.f32 %v14616_v48, %v11259_v44  ;;  %14916 = vmatpush3.bf16.msra.mxu1 %v16148_v0  ;;  %v16168_v48 = vld [vmem:[%s20084_s1 + $0x2098] sm:$0xff]   ;;  %v438_v0 = vld [vmem:[%s16448_s26 + $0x408] sm:$0xff] }
 0x423   : > { %14896 = vmatpush3.bf16.msra.mxu0 %v16150_v2  ;;  %14917 = vmatprep.subr.bf16.mxu1 %v16151_v3  ;;  %v16183_v63 = vld [vmem:[%s20084_s1 + $0x20f8] sm:$0xff]  }
 0x424   : > { %14925 = vmatprep.subr.bf16.mxu0 %v16153_v11  ;;  %v572_v1 = vld [vmem:[%s16448_s26 + $0x838] sm:$0xff]  ;;  %v16185_v11 = vld [vmem:[%s20084_s1 + $0x2100] sm:$0xff]  }
 0x425   : > { %v706_v2 = vpack.c.bf16 %v572_v1, %v438_v0  ;;  %v16184_v3 = vld [vmem:[%s20084_s1 + $0x20b8] sm:$0xff]  }
 0x426   : > { %14918 = vmatpush3.bf16.msra.mxu1 %v16152_v7  ;;  %11828 = vmatmul.mubr.bf16.vlgmr.msra.gmra.mrb[124].mxu0 %v701_v10  ;;  %v705_v7 = vpack.c.bf16 %v571_v5, %v437_v4  ;;  %v708_v10 = vpack.c.bf16 %v574_v9, %v440_v8 }
 0x427   : > { %14926 = vmatpush3.bf16.msra.mxu0 %v16154_v15  ;;  %14947 = vmatprep.subr.bf16.mxu1 %v16155_v19  ;;  %v16186_v15 = vld [vmem:[%s20084_s1 + $0x2108] sm:$0xff]  }
 0x428   : > { %14927 = vmatprep.subr.bf16.mxu0 %v16157_v21  ;;  %11909 = vmatprep.mubr.bf16.mxu0 %v706_v2 }
 0x429   : > { %11869 = vmatmul.mubr.bf16.vlgmr.msra.gmra.mrb[124].mxu1 %v703_v18  ;;  %v16187_v18 = vld [vmem:[%s20084_s1 + $0x2110] sm:$0xff]  }
 0x42a   : > { %14948 = vmatpush3.bf16.msra.mxu1 %v16156_v20  ;;  %11950 = vmatprep.mubr.bf16.mxu1 %v708_v10 }
 0x42b   : > { %14928 = vmatpush3.bf16.msra.mxu0 %v16158_v23  ;;  %14949 = vmatprep.subr.bf16.mxu1 %v16159_v25 }
 0x42c   : > { %14929 = vmatprep.subr.bf16.mxu0 %v16161_v30  ;;  %v442_v30 = vld [vmem:[%s16448_s26 + $0x428] sm:$0xff] }
 0x42e   : > { %14950 = vmatpush3.bf16.msra.mxu1 %v16160_v28 }
 0x42f   : > { %14930 = vmatpush3.bf16.msra.mxu0 %v16162_v33  ;;  %14951 = vmatprep.subr.bf16.mxu1 %v16163_v36  ;;  %v16189_v36 = vld [vmem:[%s20084_s1 + $0x2120] sm:$0xff]  }
 0x430   : > { %14931 = vmatprep.subr.bf16.mxu0 %v16165_v42  ;;  %v16194_v42 = vld [vmem:[%s20084_s1 + $0x2148] sm:$0x3f]  }
 0x432   : > { %14952 = vmatpush3.bf16.msra.mxu1 %v16164_v39  ;;  %v16191_v39 = vld [vmem:[%s20084_s1 + $0x2130] sm:$0xff]  }
 0x433   : > { %14932 = vmatpush3.bf16.msra.mxu0 %v16166_v45  ;;  %14953 = vmatprep.subr.bf16.mxu1 %v16167_v46  ;;  %v9251_v45 = vsel %vm9249_vm1, %v16194_v42, 0 }
 0x434   : > { %14933 = vmatprep.subr.bf16.mxu0 %v16169_v49 }
 0x436   : > { %14954 = vmatpush3.bf16.msra.mxu1 %v16168_v48 }
 0x437   : > { %14934 = vmatpush3.bf16.msra.mxu0 %v16170_v50 }
 0x438   : > { %14935 = vmatprep.subr.bf16.mxu0 %v16173_v53 }
 0x439   : > { %v14633_v22 = vpop.f32.mrb[100].mxu0 }
 0x43a   : > { %v14634_v24 = vpop.f32.mrb[101].mxu0 }
 0x43b   : > { %v14635_v26 = vadd.f32 %v14634_v24, %v14633_v22  ;;  %v14636_v27 = vpop.f32.mrb[102].mxu0  ;;  %14936 = vmatpush3.bf16.msra.mxu0 %v16174_v54 }
 0x43c   : > { %v14655_v29 = vpop.f32.mrb[100].mxu1  ;;  %v14637_v32 = vpop.f32.mrb[103].mxu0  ;;  %14937 = vmatprep.subr.bf16.mxu0 %v16177_v57 }
 0x43d   : > { %v11338_v31 = vadd.f32 %v14635_v26, %v19770_v47  ;;  %v14638_v34 = vadd.f32 %v14637_v32, %v14636_v27  ;;  %v14656_v35 = vpop.f32.mrb[101].mxu1  ;;  %v16188_v26 = vld [vmem:[%s20084_s1 + $0x2118] sm:$0xff]  }
 0x43e   : > { %v14657_v37 = vadd.f32 %v14656_v35, %v14655_v29  ;;  %v14658_v38 = vpop.f32.mrb[102].mxu1 }
 0x43f   : > { %v11341_v40 = vadd.f32 %v14638_v34, %v19778_v51  ;;  %v14659_v41 = vpop.f32.mrb[103].mxu1  ;;  %v16171_v51 = vld [vmem:[%s20084_s1 + $0x20e0] sm:$0xff]   ;;  %14938 = vmatpush3.bf16.msra.mxu0 %v16178_v58 }
 0x440   : > { %v19880_v43 = vadd.f32 %v14657_v37, %v11338_v31  ;;  %v14660_v44 = vadd.f32 %v14659_v41, %v14658_v38  ;;  %14955 = vmatprep.subr.bf16.mxu1 %v16171_v51  ;;  %14939 = vmatprep.subr.bf16.mxu0 %v16181_v61  ;;  %v576_v31 = vld [vmem:[%s16448_s26 + $0x858] sm:$0xff]  ;;  %v16190_v38 = vld [vmem:[%s20084_s1 + $0x2128] sm:$0xff]   ;;  %v16193_v41 = vld [vmem:[%s20084_s1 + $0x2140] sm:$0xff]  }
 0x441   : > { %14956 = vmatpush3.bf16.msra.mxu1 %v16172_v52  ;;  %v710_v33 = vpack.c.bf16 %v576_v31, %v442_v30 }
 0x442   : > { %v19888_v47 = vadd.f32 %v14660_v44, %v11341_v40  ;;  %14957 = vmatprep.subr.bf16.mxu1 %v16175_v55  ;;  %v16192_v40 = vld [vmem:[%s20084_s1 + $0x2138] sm:$0xff]   ;;  %v575_v44 = vld [vmem:[%s16448_s26 + $0x850] sm:$0xff] }
 0x443   : > { %14940 = vmatpush3.bf16.msra.mxu0 %v16182_v62 }
 0x444   : > { %11959 = vmatprep.subr.bf16.mxu0 %v16283_v6 }
 0x445   : > { %14958 = vmatpush3.bf16.msra.mxu1 %v16176_v56 }
 0x446   : > { %14959 = vmatprep.subr.bf16.mxu1 %v16179_v59  ;;  %11910 = vmatmul.mubr.bf16.vlgmr.msra.gmra.mrb[128].mxu0 %v705_v7 }
 0x447   : > { %11960 = vmatpush1.bf16.msra.mxu0 %v16185_v11  ;;  %13490 = vmatprep.mubr.msk.bf16.mxu0 %vm9245_vm0, %v710_v33 }
 0x448   : > { %11961 = vmatprep.subr.bf16.mxu0 %v16283_v6 }
 0x449   : > { %14960 = vmatpush3.bf16.msra.mxu1 %v16180_v60 }
 0x44a   : > { %14961 = vmatprep.subr.bf16.mxu1 %v16183_v63 }
 0x44b   : > { %11962 = vmatpush1.bf16.msra.mxu0 %v16186_v15  ;;  %v12002_v15 = vld [vmem:[%s20086_s3] sm:$0xff] }
 0x44c   : > { %11963 = vmatprep.subr.bf16.mxu0 %v16283_v6 }
 0x44d   : > { %14962 = vmatpush3.bf16.msra.mxu1 %v16184_v3 }
 0x44f   : > { %11964 = vmatpush1.bf16.msra.mxu0 %v16187_v18 }
 0x450   : > { %11951 = vmatmul.mubr.bf16.vlgmr.msra.gmra.mrb[128].mxu1 %v707_v14  ;;  %11965 = vmatprep.subr.bf16.mxu0 %v16283_v6 }
 0x453   : > { %11966 = vmatpush1.bf16.msra.mxu0 %v16188_v26 }
 0x454   : > { %11967 = vmatprep.subr.bf16.mxu0 %v16283_v6 }
 0x457   : > { %11968 = vmatpush1.bf16.msra.mxu0 %v16189_v36 }
 0x458   : > { %11969 = vmatprep.subr.bf16.mxu0 %v16283_v6 }
 0x459   : > { %v14677_v16 = vpop.f32.mrb[104].mxu0 }
 0x45a   : > { %v14678_v17 = vpop.f32.mrb[105].mxu0 }
 0x45b   : > { %v14679_v19 = vadd.f32 %v14678_v17, %v14677_v16  ;;  %v14680_v20 = vpop.f32.mrb[106].mxu0  ;;  %11970 = vmatpush1.bf16.msra.mxu0 %v16190_v38  ;;  %v12003_v16 = vld [vmem:[%s20086_s3 + $0x8] sm:$0xff]  ;;  %v12004_v17 = vld [vmem:[%s20086_s3 + $0x10] sm:$0xff] }
 0x45c   : > { %v14681_v21 = vpop.f32.mrb[107].mxu0  ;;  %v14699_v23 = vpop.f32.mrb[104].mxu1  ;;  %11971 = vmatprep.subr.bf16.mxu0 %v16283_v6  ;;  %v15015_v18 = vpack.c.bf16 %v12003_v16, %v12002_v15 }
 0x45d   : > { %v11420_v22 = vadd.f32 %v14679_v19, %v19880_v43  ;;  %v14682_v24 = vadd.f32 %v14681_v21, %v14680_v20  ;;  %v14700_v25 = vpop.f32.mrb[105].mxu1  ;;  %v441_v43 = vld [vmem:[%s16448_s26 + $0x420] sm:$0xff]  ;;  %v12005_v19 = vld [vmem:[%s20086_s3 + $0x18] sm:$0xff] }
 0x45e   : > { %v14701_v28 = vadd.f32 %v14700_v25, %v14699_v23  ;;  %v14702_v29 = vpop.f32.mrb[106].mxu1  ;;  %v709_v46 = vpack.c.bf16 %v575_v44, %v441_v43  ;;  %v15019_v20 = vpack.c.bf16 %v12005_v19, %v12004_v17  ;;  %v12006_v21 = vld [vmem:[%s20086_s3 + $0x20] sm:$0xff]  ;;  %15016 = vmatprep.subr.bf16.mxu1 %v15015_v18  ;;  %v12102_v44 = vld [vmem:[%s20088_s5 + $0x8] sm:$0xff] }
 0x45f   : > { %v11423_v27 = vadd.f32 %v14682_v24, %v19888_v47  ;;  %v14703_v32 = vpop.f32.mrb[107].mxu1  ;;  %11972 = vmatpush1.bf16.msra.mxu0 %v16191_v39  ;;  %15018 = vmatpush3.bf16.msra.mxu1 %v15015_v18  ;;  %v12101_v43 = vld [vmem:[%s20088_s5] sm:$0xff] }
 0x460   : > { %v11461_v34 = vadd.f32 %v14701_v28, %v11420_v22  ;;  %v14704_v35 = vadd.f32 %v14703_v32, %v14702_v29  ;;  %11973 = vmatprep.subr.bf16.mxu0 %v16283_v6  ;;  %v12007_v22 = vld [vmem:[%s20086_s3 + $0x28] sm:$0xff]  ;;  %15020 = vmatprep.subr.bf16.mxu1 %v15019_v20 }
 0x461   : > { %v15023_v23 = vpack.c.bf16 %v12007_v22, %v12006_v21 }
 0x462   : > { %v11464_v37 = vadd.f32 %v14704_v35, %v11423_v27 }
 0x463   : > { %11974 = vmatpush1.bf16.msra.mxu0 %v16192_v40  ;;  %15022 = vmatpush3.bf16.msra.mxu1 %v15019_v20  ;;  %v12008_v40 = vld [vmem:[%s20086_s3 + $0x30] sm:$0xff] }
 0x464   : > { %11975 = vmatprep.subr.bf16.mxu0 %v16283_v6  ;;  %15024 = vmatprep.subr.bf16.mxu1 %v15023_v23 }
 0x467   : > { %11976 = vmatpush1.bf16.msra.mxu0 %v16193_v41  ;;  %15026 = vmatpush3.bf16.msra.mxu1 %v15023_v23  ;;  %v12009_v41 = vld [vmem:[%s20086_s3 + $0x38] sm:$0xff] }
 0x468   : > { %11977 = vmatprep.subr.bf16.mxu0 %v16283_v6  ;;  %v15027_v42 = vpack.c.bf16 %v12009_v41, %v12008_v40  ;;  %v13491_v41 = vld [vmem:[%s20087_s4] ss:$0 sm:$0xff] }
 0x46a   : > { %15028 = vmatprep.subr.bf16.mxu1 %v15027_v42 }
 0x46b   : > { %11978 = vmatpush1.bf16.msra.mxu0 %v9251_v45  ;;  %15030 = vmatpush3.bf16.msra.mxu1 %v15027_v42  ;;  %v15031_v45 = vpack.c.bf16 %v12102_v44, %v12101_v43 }
 0x46d   : > { %15032 = vmatprep.subr.bf16.mxu1 %v15031_v45 }
 0x46e   : > { %11992 = vmatmul.mubr.bf16.vlgmr.msra.gmra.mrb[132].mxu0 %v709_v46 }
 0x479   : > { %v14721_v47 = vpop.f32.mrb[108].mxu0 }
 0x47a   : > { %v14722_v48 = vpop.f32.mrb[109].mxu0 }
 0x47b   : > { %v14723_v49 = vadd.f32 %v14722_v48, %v14721_v47  ;;  %v14724_v50 = vpop.f32.mrb[110].mxu0 }
 0x47c   : > { %v14743_v51 = vpop.f32.mrb[108].mxu1  ;;  %v14725_v52 = vpop.f32.mrb[111].mxu0 }
 0x47d   : > { %v11502_v53 = vadd.f32 %v14723_v49, %v11461_v34  ;;  %v14726_v54 = vadd.f32 %v14725_v52, %v14724_v50  ;;  %v14744_v55 = vpop.f32.mrb[109].mxu1 }
 0x47e   : > { %v14745_v56 = vadd.f32 %v14744_v55, %v14743_v51  ;;  %v14746_v57 = vpop.f32.mrb[110].mxu1 }
 0x47f   : > { %v11505_v58 = vadd.f32 %v14726_v54, %v11464_v37  ;;  %v14747_v59 = vpop.f32.mrb[111].mxu1 }
 0x480   : > { %v11543_v60 = vadd.f32 %v14745_v56, %v11502_v53  ;;  %v14748_v61 = vadd.f32 %v14747_v59, %v14746_v57 }
 0x482   : > { %v11546_v62 = vadd.f32 %v14748_v61, %v11505_v58 }
 0x499   : > { %v14765_v63 = vpop.f32.mrb[112].mxu0 }
 0x49a   : > { %v14766_v0 = vpop.f32.mrb[113].mxu0 }
 0x49b   : > { %v14767_v1 = vadd.f32 %v14766_v0, %v14765_v63  ;;  %v14768_v2 = vpop.f32.mrb[114].mxu0 }
 0x49c   : > { %v14787_v3 = vpop.f32.mrb[112].mxu1  ;;  %v14769_v4 = vpop.f32.mrb[115].mxu0 }
 0x49d   : > { %v11584_v5 = vadd.f32 %v14767_v1, %v11543_v60  ;;  %v14770_v6 = vadd.f32 %v14769_v4, %v14768_v2  ;;  %v14788_v7 = vpop.f32.mrb[113].mxu1 }
 0x49e   : > { %v14789_v8 = vadd.f32 %v14788_v7, %v14787_v3  ;;  %v14790_v9 = vpop.f32.mrb[114].mxu1 }
 0x49f   : > { %v11587_v10 = vadd.f32 %v14770_v6, %v11546_v62  ;;  %v14791_v11 = vpop.f32.mrb[115].mxu1 }
 0x4a0   : > { %v11625_v12 = vadd.f32 %v14789_v8, %v11584_v5  ;;  %v14792_v13 = vadd.f32 %v14791_v11, %v14790_v9 }
 0x4a2   : > { %v11628_v14 = vadd.f32 %v14792_v13, %v11587_v10 }
 0x4b9   : > { %v14809_v24 = vpop.f32.mrb[116].mxu0 }
 0x4ba   : > { %v14810_v25 = vpop.f32.mrb[117].mxu0 }
 0x4bb   : > { %v14811_v26 = vadd.f32 %v14810_v25, %v14809_v24  ;;  %v14812_v27 = vpop.f32.mrb[118].mxu0 }
 0x4bc   : > { %v14813_v28 = vpop.f32.mrb[119].mxu0  ;;  %v14831_v30 = vpop.f32.mrb[116].mxu1 }
 0x4bd   : > { %v11666_v29 = vadd.f32 %v14811_v26, %v11625_v12  ;;  %v14814_v31 = vadd.f32 %v14813_v28, %v14812_v27  ;;  %v14832_v32 = vpop.f32.mrb[117].mxu1 }
 0x4be   : > { %v14833_v34 = vadd.f32 %v14832_v32, %v14831_v30  ;;  %v14834_v35 = vpop.f32.mrb[118].mxu1 }
 0x4bf   : > { %v11669_v33 = vadd.f32 %v14814_v31, %v11628_v14  ;;  %v14835_v36 = vpop.f32.mrb[119].mxu1 }
 0x4c0   : > { %v11707_v37 = vadd.f32 %v14833_v34, %v11666_v29  ;;  %v14836_v38 = vadd.f32 %v14835_v36, %v14834_v35 }
 0x4c2   : > { %v11710_v39 = vadd.f32 %v14836_v38, %v11669_v33  ;;  %v12103_v38 = vld [vmem:[%s20088_s5 + $0x10] sm:$0xff] }
 0x4d9   : > { %v14853_v46 = vpop.f32.mrb[120].mxu0 }
 0x4da   : > { %v14854_v47 = vpop.f32.mrb[121].mxu0 }
 0x4db   : > { %v14855_v48 = vadd.f32 %v14854_v47, %v14853_v46  ;;  %v14856_v49 = vpop.f32.mrb[122].mxu0 }
 0x4dc   : > { %v14875_v50 = vpop.f32.mrb[120].mxu1  ;;  %v14857_v51 = vpop.f32.mrb[123].mxu0 }
 0x4dd   : > { %v11748_v52 = vadd.f32 %v14855_v48, %v11707_v37  ;;  %v14858_v53 = vadd.f32 %v14857_v51, %v14856_v49  ;;  %v14876_v54 = vpop.f32.mrb[121].mxu1  ;;  %v13494_v48 = vld [vmem:[%s20089_s6] ss:$0 sm:$0xff] }
 0x4de   : > { %v14877_v55 = vadd.f32 %v14876_v54, %v14875_v50  ;;  %v14878_v56 = vpop.f32.mrb[122].mxu1 }
 0x4df   : > { %v11751_v57 = vadd.f32 %v14858_v53, %v11710_v39  ;;  %v14879_v58 = vpop.f32.mrb[123].mxu1  ;;  %v12104_v39 = vld [vmem:[%s20088_s5 + $0x18] sm:$0xff] }
 0x4e0   : > { %v11789_v59 = vadd.f32 %v14877_v55, %v11748_v52  ;;  %v14880_v60 = vadd.f32 %v14879_v58, %v14878_v56  ;;  %v15035_v40 = vpack.c.bf16 %v12104_v39, %v12103_v38 }
 0x4e2   : > { %v11792_v61 = vadd.f32 %v14880_v60, %v11751_v57 }
 0x4f9   : > { %v14897_v62 = vpop.f32.mrb[124].mxu0 }
 0x4fa   : > { %v14898_v63 = vpop.f32.mrb[125].mxu0 }
 0x4fb   : > { %v14899_v0 = vadd.f32 %v14898_v63, %v14897_v62  ;;  %v14900_v1 = vpop.f32.mrb[126].mxu0 }
 0x4fc   : > { %v14919_v2 = vpop.f32.mrb[124].mxu1  ;;  %v14901_v3 = vpop.f32.mrb[127].mxu0 }
 0x4fd   : > { %v11830_v4 = vadd.f32 %v14899_v0, %v11789_v59  ;;  %v14902_v5 = vadd.f32 %v14901_v3, %v14900_v1  ;;  %v14920_v6 = vpop.f32.mrb[125].mxu1 }
 0x4fe   : > { %v14921_v7 = vadd.f32 %v14920_v6, %v14919_v2  ;;  %v14922_v8 = vpop.f32.mrb[126].mxu1 }
 0x4ff   : > { %v11833_v9 = vadd.f32 %v14902_v5, %v11792_v61  ;;  %v14923_v10 = vpop.f32.mrb[127].mxu1 }
 0x500   : > { %v11871_v11 = vadd.f32 %v14921_v7, %v11830_v4  ;;  %v14924_v12 = vadd.f32 %v14923_v10, %v14922_v8 }
 0x502   : > { %v11874_v13 = vadd.f32 %v14924_v12, %v11833_v9 }
 0x519   : > { %v14941_v14 = vpop.f32.mrb[128].mxu0 }
 0x51a   : > { %v14942_v15 = vpop.f32.mrb[129].mxu0 }
 0x51b   : > { %v14943_v16 = vadd.f32 %v14942_v15, %v14941_v14  ;;  %v14944_v17 = vpop.f32.mrb[130].mxu0 }
 0x51c   : > { %v14945_v19 = vpop.f32.mrb[131].mxu0 }
 0x51d   : > { %v11912_v20 = vadd.f32 %v14943_v16, %v11871_v11  ;;  %v14946_v21 = vadd.f32 %v14945_v19, %v14944_v17 }
 0x51f   : > { %v11915_v25 = vadd.f32 %v14946_v21, %v11874_v13 }
 0x523   : > { %v14963_v18 = vpop.f32.mrb[128].mxu1 }
 0x524   : > { %v14964_v22 = vpop.f32.mrb[129].mxu1 }
 0x525   : > { %v14965_v23 = vadd.f32 %v14964_v22, %v14963_v18  ;;  %v14966_v24 = vpop.f32.mrb[130].mxu1 }
 0x526   : > { %v14967_v26 = vpop.f32.mrb[131].mxu1 }
 0x527   : > { %v14968_v27 = vadd.f32 %v14967_v26, %v14966_v24  ;;  %v11953_v28 = vadd.f32 %v14965_v23, %v11912_v20 }
 0x529   : > { %v11956_v29 = vadd.f32 %v14968_v27, %v11915_v25 }
 0x541   : > { %v11993_v30 = vpop.f32.mrb[132].mxu0 }
 0x542   : > { %v11994_v31 = vadd.f32 %v11993_v30, %v11953_v28  ;;  %v11995_v32 = vpop.f32.mrb[133].mxu0 }
 0x543   : > { %v11996_v33 = vpop.f32.mrb[134].mxu0 }
 0x544   : > { %v12000_v34 = vmax.f32 %v11994_v31, 0.0  ;;  %v11997_v35 = vadd.f32 %v11996_v33, %v11956_v29  ;;  %v11998_v36 = vpop.f32.mrb[135].mxu0 }
 0x546   : > { %v12001_v37 = vmax.f32 %v11997_v35, 0.0  ;;  %15001 = vmatprep.mubr.msk.f32.mxu1 %vm12017_vm2, %v12000_v34 }
 0x548   : > { %15002 = vmatmul.mubr.msk.f32.vlgmr.msra.gmra.mrb[132].mxu1 %vm12017_vm2, %v12001_v37 }
 0x549   : > { %15034 = vmatpush3.bf16.msra.mxu1 %v15031_v45 }
 0x54a   : > { %15036 = vmatprep.subr.bf16.mxu1 %v15035_v40 }
 0x54d   : > { %15038 = vmatpush3.bf16.msra.mxu1 %v15035_v40 }
 0x61b   : > { %v15003_v42 = vpop.f32.mrb[132].mxu1 }
 0x61c   : > { %v12096_v43 = vadd.f32 %v15003_v42, %v13491_v41  ;;  %v12090_v44 = vpop.f32.mrb[133].mxu1 }
 0x61d   : > { %v12091_v45 = vadd.f32 %v13491_v41, %v12090_v44 }
 0x61e   : > { %v12100_v47 = vmax.f32 %v12096_v43, 0.0 }
 0x61f   : > { %v12099_v46 = vmax.f32 %v12091_v45, 0.0 }
 0x621   : > { %15012 = vmatprep.mubr.msk.f32.mxu1 %vm12112_vm3, %v12099_v46 }
 0x622   : > { %15013 = vmatmul.mubr.msk.f32.vlgmr.msra.gmra.mrb[134].mxu1 %vm12112_vm3, %v12100_v47 }
 0x6f3   : > { %12203 = sbr.rel (!%p16349_p4) target bundleno = 1835 (0x72b), region = 52 }
 0x6f5   : > { %v15014_v49 = vpop.f32.mrb[134].mxu1 }
 0x6f6   : > { %v12191_v50 = vadd.f32 %v15014_v49, %v13494_v48  ;;  %v12185_v51 = vpop.f32.mrb[135].mxu1 }
 0x6f7   : > { %v12186_v52 = vadd.f32 %v13494_v48, %v12185_v51 }
 0x6f8   : > { %12196 = vst.msk [vmem:[%s20038_s12 + $0x8] sm:$0xff] %vm12194_vm4, %v12191_v50 }
 0x6f9   : > { %12195 = vst.msk [vmem:[%s20038_s12] sm:$0xff] %vm12194_vm4, %v12186_v52 }
 0x6fa   : > { %s20096_s24 = smov (!%p12206_p8, %s12205_s24), 2 }
 0x6fb   : > { %s13499_s16 = sshll.u32 %s20096_s24, 7 }
 0x6fc   : > { %p13502_p9 = scmp.eq.s32.totalorder %s13499_s16, 0 }
 0x6fd   : > { %s20055_s17 = sshrl.u32 (!%p13502_p9), %s20096_s24, 1 }
 0x6fe   : > { %12214 = sbr.rel (%p13502_p9) target bundleno = 1835 (0x72b), region = 56  ;;  %p13503_p10 = scmp.le.s32.totalorder (!%p13502_p9), %s20055_s17, 0 }
 0x705   : > { %12372 = sbr.rel (%p13503_p10) target bundleno = 1814 (0x716), region = 132  ;;  %s16251_s27 = smov (!%p13503_p10), %s20049_s15  }
 0x706   : > { %s16255_s9 = smov (!%p13503_p10), %s20038_s12   ;;  %s16259_s21 = smov (!%p13503_p10), 0  }
 0x707   : > { %s16263_s18 = smov (!%p13503_p10), 0  }
 0x70c LB: >> { %v12278_v53 = vld [vmem:[%s16257_s9] sm:$0xff]  ;;  %v12280_v54 = vld [vmem:[%s16257_s9 + $0x8] sm:$0xff]  ;;  %s12282_s20 = sadd.s32 1, %s16261_s21  ;;  %s12272_s18 = sadd.s32 1, %s16265_s18   ;;  %s16265_s18 = sphi %s16263_s18, %s12272_s18   ;;  %s16261_s21 = sphi %s16259_s21, %s16260_s21   ;;  %s16257_s9 = sphi %s16255_s9, %s12287_s9   ;;  %s16253_s27 = sphi %s16251_s27, %s12288_s27  }
 0x70d   : >> { %12279 = vst [vmem:[%s16253_s27] sm:$0xff] %v12278_v53  ;;  %12281 = vst [vmem:[%s16253_s27 + $0x8] sm:$0xff] %v12280_v54  ;;  %p12283_p11 = scmp.ge.s32.totalorder %s12282_s20, %s20055_s17  ;;  %p12271_p12 = scmp.ge.s32.totalorder %s12272_s18, %s20055_s17 }
 0x70f   : >> { %s20098_s20 = smov (%p12283_p11, %s12282_s20), 0  ;;  %12274 = sbr.rel (!%p12271_p12) target bundleno = 1804 (0x70c), region = 138 }
 0x710   : >> { %s13504_s22 = sshll.u32 %s20098_s20, 4  ;;  %s16260_s21 = smov %s20098_s20  }
 0x711   : >> { %s12287_s9 = scalar_lea.vmem %s20038_s12, %s13504_s22 [#allocation2]   ;;  %s12288_s27 = scalar_lea.vmem %s20049_s15, %s13504_s22  }
 0x716 PF: > { %s20065_s19 = sand.u32 1, %s20096_s24   ;;  %s13515_s23 = sshll.u32 %s20055_s17, 4 }
 0x717   : > { %s12293_s29 = scalar_lea.vmem %s20038_s12, %s13515_s23 [#allocation2]   ;;  %s12295_s30 = scalar_lea.vmem %s20049_s15, %s13515_s23  }
 0x718   : > { %p13509_p13 = scmp.le.s32.totalorder %s20065_s19, 0 }
 0x719   : > { %s16267_s10 = smov (!%p13509_p13), %s12295_s30   ;;  %s16271_s11 = smov (!%p13509_p13), %s12293_s29  }
 0x71a   : > { %12386 = sbr.rel (%p13509_p13) target bundleno = 1835 (0x72b), region = 143  ;;  %s16275_s13 = smov (!%p13509_p13), 0  }
 0x71b   : > { %s16279_s26 = smov (!%p13509_p13), 0  }
 0x721 LB: >> { %v12305_v55 = vld [vmem:[%s16273_s11] sm:$0xff]  ;;  %s12307_s24 = sadd.s32 1, %s16277_s13  ;;  %s12299_s26 = sadd.s32 1, %s16281_s26   ;;  %s16281_s26 = sphi %s16279_s26, %s12299_s26   ;;  %s16277_s13 = sphi %s16275_s13, %s16276_s13   ;;  %s16273_s11 = sphi %s16271_s11, %s12312_s11   ;;  %s16269_s10 = sphi %s16267_s10, %s12313_s10  }
 0x722   : >> { %12306 = vst [vmem:[%s16269_s10] sm:$0xff] %v12305_v55  ;;  %p12308_p0 = scmp.ge.s32.totalorder %s12307_s24, %s20065_s19  ;;  %p12298_p1 = scmp.ge.s32.totalorder %s12299_s26, %s20065_s19 }
 0x724   : >> { %s20100_s24 = smov (%p12308_p0, %s12307_s24), 0  ;;  %12301 = sbr.rel (!%p12298_p1) target bundleno = 1825 (0x721), region = 149 }
 0x725   : >> { %s13510_s12 = sshll.u32 %s20100_s24, 3  ;;  %s16276_s13 = smov %s20100_s24  }
 0x726   : >> { %s12312_s11 = scalar_lea.vmem %s12293_s29, %s13510_s12 [#allocation2]   ;;  %s12313_s10 = scalar_lea.vmem %s12295_s30, %s13510_s12  }
 0x72b PF: > { %p14_p2 = scmp.ge.s32.totalorder %s16339_s28, 4   ;;  %s20092_s24 = smov %s16245_s25 }
 0x72c   : > { %s20093_s25 = smov %s16347_s8  ;;  %s20094_s26 = smov %s16339_s28 }
 0x72d   :  { %16 = sbr.rel (!%p14_p2) target bundleno = 2 (0x2), region = 160 }

</bundles_post_ra>
